<compile_context>
chip_gen: v7x
topology: tpu7x:2x2x1
jax: 0.10.0
libtpu: 0.0.40
codegen_flags: <defaults>
</compile_context>

<pallas_src>
import functools

import jax
import jax.numpy as jnp
from jax.experimental import pallas as pl
from jax.experimental.pallas import tpu as pltpu

# ---------------- configuration (small, consistent with the module) -------------
D_MODEL = 32          # d_model
N_LAYER = 2           # n_layer
VOCAB   = 64          # vocab_size
D_STATE = 16          # mamba d_state
D_CONV  = 4           # mamba d_conv
EXPAND  = 2           # mamba expand
D_INNER = EXPAND * D_MODEL            # 64
DT_RANK = (D_MODEL + 15) // 16        # 2
EPS     = 1e-5                        # norm_epsilon
B       = 2                           # batch
L       = 8                           # sequence length
BL      = B * L                       # 16 rows (batch-major: row = b*L + t)
BD      = B * D_INNER                 # 128 merged lane axis (lane = b*D_INNER + d)
NX      = 2 * D_STATE + D_INNER       # fused x_proj columns: [B | C | dt] = 96

# rows of the packed per-layer vector block (8, 128)
ROW_NORM  = 0
ROW_CONV  = 1                          # rows 1..4: conv taps k = 0..D_CONV-1
ROW_CONVB = ROW_CONV + D_CONV          # 5
ROW_DTB   = ROW_CONVB + 1              # 6
ROW_D     = ROW_DTB + 1                # 7
VEC_ROWS  = 8


# ---------------- small math helpers (used both in-kernel and in reference) ------
def _silu(x):
    return x * (1.0 / (1.0 + jnp.exp(-x)))


def _softplus(x):
    return jnp.maximum(x, 0.0) + jnp.log(1.0 + jnp.exp(-jnp.abs(x)))


def _rmsnorm(x, w, eps):
    var = jnp.mean(x * x, axis=-1, keepdims=True)
    return x * jax.lax.rsqrt(var + eps) * w


# =============================== Pallas kernel ===================================
def mixer_model_kernel(hidden_ref, vec_ref, w_in_ref, w_xc_ref, w_out_ref, a_neg_ref,
                       out_ref):
    """Fused forward of the whole MixerModel on a single (B*L, D_MODEL) tile."""
    hidden = hidden_ref[...]                              # (BL, D_MODEL) f32
    residual = hidden                                     # layer 0: residual is None
    t_iota = jax.lax.broadcasted_iota(jnp.int32, (L, 1), 0)  # hoisted, reused per layer

    for layer in range(N_LAYER):                          # static loop, weights indexed
        if layer > 0:
            residual = hidden + residual
        vec = vec_ref[layer]                              # (8, 128) packed small vectors
        x_norm = _rmsnorm(residual, vec[ROW_NORM:ROW_NORM + 1, :D_MODEL], EPS)

        # ---- in_proj: (BL, D) @ (D, 2*D_INNER), bf16 MXU operands ----
        xz = jnp.dot(x_norm.astype(jnp.bfloat16), w_in_ref[layer],
                     preferred_element_type=jnp.float32)  # (BL, 2*D_INNER) = (16, 128)
        # merge batch onto the lane axis: (L, B*D_INNER) = (8, 128), lane = b*64 + d
        x_m = jnp.concatenate([xz[:L, :D_INNER], xz[L:, :D_INNER]], axis=1)
        z_m = jnp.concatenate([xz[:L, D_INNER:], xz[L:, D_INNER:]], axis=1)

        # ---- causal depthwise conv1d + SiLU (zero-padded slab + static slices) ----
        # batch is on lanes, so sequence shifts cannot leak across batch elements.
        x_pad = jnp.concatenate(
            [jnp.zeros((D_CONV - 1, BD), jnp.float32), x_m], axis=0)   # (L+3, 128)
        xc = jnp.zeros((L, BD), jnp.float32)
        for k in range(D_CONV):                           # tap k touches x[t-(D_CONV-1-k)]
            xc = xc + x_pad[k:k + L] * vec[ROW_CONV + k:ROW_CONV + k + 1, :]
        xc = _silu(xc + vec[ROW_CONVB:ROW_CONVB + 1, :])                # (8, 128)

        # ---- fused x_proj + dt_proj: one matmul, columns [B | C | dt_pre] ----
        xc_rows = jnp.concatenate([xc[:, :D_INNER], xc[:, D_INNER:]], axis=0)  # (BL, 64)
        proj = jnp.dot(xc_rows.astype(jnp.bfloat16), w_xc_ref[layer],
                       preferred_element_type=jnp.float32)              # (16, 96)
        b_rows = proj[:, :D_STATE]                                       # (16, 16)
        c_rows = proj[:, D_STATE:2 * D_STATE]                            # (16, 16)
        dt_rows = proj[:, 2 * D_STATE:]                                  # (16, 64)
        dt_m = jnp.concatenate([dt_rows[:L], dt_rows[L:]], axis=1)       # (8, 128)
        dt_m = _softplus(dt_m + vec[ROW_DTB:ROW_DTB + 1, :])

        # ---- selective scan: state (D_STATE, B*D_INNER) = (16, 128), lane-dense ----
        a_neg = a_neg_ref[layer]                          # (16, 128), -exp(A) precomputed
        da_all = jnp.exp(dt_m[:, None, :] * a_neg[None, :, :])           # (L, 16, 128)
        dtu = dt_m * xc                                                  # (8, 128)
        dbu_all = jnp.concatenate(
            [b_rows[:L, :, None] * dtu[:, None, :D_INNER],
             b_rows[L:, :, None] * dtu[:, None, D_INNER:]], axis=2)      # (L, 16, 128)
        c_all = jnp.concatenate(
            [jnp.broadcast_to(c_rows[:L, :, None], (L, D_STATE, D_INNER)),
             jnp.broadcast_to(c_rows[L:, :, None], (L, D_STATE, D_INNER))],
            axis=2)                                                      # (L, 16, 128)

        h = jnp.zeros((D_STATE, BD), jnp.float32)
        y = jnp.zeros((L, BD), jnp.float32)
        for t in range(L):                                # serial recurrence: one FMA/step
            h = da_all[t] * h + dbu_all[t]
            y_t = jnp.sum(c_all[t] * h, axis=0, keepdims=True)           # XLU sublane reduce
            y = jnp.where(t_iota == t, y_t, y)            # in-loop (L, 128) accumulator

        y = y + xc * vec[ROW_D:ROW_D + 1, :]              # skip connection D * u
        y = y * _silu(z_m)                                # gate
        # un-merge lanes back to (BL, D_INNER) rows for the out_proj matmul
        y_rows = jnp.concatenate([y[:, :D_INNER], y[:, D_INNER:]], axis=0)
        hidden = jnp.dot(y_rows.astype(jnp.bfloat16), w_out_ref[layer],
                         preferred_element_type=jnp.float32)             # (BL, D_MODEL)

    residual = hidden + residual
    norm_f_w = vec_ref[N_LAYER][ROW_NORM:ROW_NORM + 1, :D_MODEL]
    out_ref[...] = _rmsnorm(residual, norm_f_w, EPS)


# =============================== wrapper =========================================
_VMEM_SPEC = pl.BlockSpec(memory_space=pltpu.MemorySpace.VMEM)  # whole array in VMEM


@jax.jit
def mixer_model_forward(input_ids, embedding, params):
    # embedding lookup (glue, plain JAX gather), flattened batch-major to (B*L, D)
    hidden = jnp.take(embedding, input_ids.reshape(-1), axis=0).astype(jnp.float32)
    out = pl.pallas_call(
        mixer_model_kernel,
        out_shape=jax.ShapeDtypeStruct((BL, D_MODEL), jnp.float32),
        in_specs=[_VMEM_SPEC] * 6,
        out_specs=_VMEM_SPEC,
    )(hidden, params["vec"], params["w_in"], params["w_xc"], params["w_out"],
      params["a_neg"])
    return out.reshape(B, L, D_MODEL)
    # TODO(synk): inference_params / allocate_inference_cache (decode-time state
    # caching) is not implemented; only the training-style forward is covered.


# =============================== parameters ======================================
def init_layer_params(key):
    ks = jax.random.split(key, 5)
    w_in = jax.random.normal(ks[0], (2 * D_INNER, D_MODEL), jnp.float32) * 0.02
    conv_w = jax.random.normal(ks[1], (D_INNER, D_CONV), jnp.float32) * 0.2
    conv_b = jnp.zeros((D_INNER,), jnp.float32)
    w_x = jax.random.normal(ks[2], (DT_RANK + 2 * D_STATE, D_INNER), jnp.float32) * 0.02
    w_dt = jax.random.normal(ks[3], (D_INNER, DT_RANK), jnp.float32) * (DT_RANK ** -0.5)
    dt_b = jnp.log(jnp.expm1(jnp.linspace(1e-3, 1e-1, D_INNER, dtype=jnp.float32)))
    a_log = jnp.log(jnp.broadcast_to(
        jnp.arange(1, D_STATE + 1, dtype=jnp.float32), (D_INNER, D_STATE)))
    d_param = jnp.ones((D_INNER,), jnp.float32)
    # out_proj rescaled by 1/sqrt(n_layer) (rescale_prenorm_residual)
    w_out = (jax.random.normal(ks[4], (D_MODEL, D_INNER), jnp.float32)
             * 0.02 / jnp.sqrt(float(N_LAYER)))
    return dict(
        norm_w=jnp.ones((D_MODEL,), jnp.float32),
        w_in_t=jnp.asarray(w_in.T),          # (D_MODEL, 2*D_INNER)
        conv_w=jnp.asarray(conv_w.T),        # (D_CONV, D_INNER)
        conv_b=conv_b,                       # (D_INNER,)
        w_x_t=jnp.asarray(w_x.T),            # (D_INNER, DT_RANK + 2*D_STATE)
        w_dt_t=jnp.asarray(w_dt.T),          # (DT_RANK, D_INNER)
        dt_b=dt_b,                           # (D_INNER,)
        a_log=a_log,                         # (D_INNER, D_STATE)
        d=d_param,                           # (D_INNER,)
        w_out_t=jnp.asarray(w_out.T),        # (D_INNER, D_MODEL)
    )


def _tile2(v):
    """Tile a (D_INNER,) vector over the two batch lane halves -> (B*D_INNER,)."""
    v = v.reshape(-1)
    return jnp.concatenate([v, v])


def pack_params(layer_params, norm_f_w):
    """Wrapper-side weight prep: stacking, dt_proj fusion, -exp(A), bf16 cast, packing."""
    # one (8,128) block of small per-layer vectors; last slot holds norm_f_w
    vec = []
    for p in layer_params:
        rows = [jnp.pad(p["norm_w"], (0, BD - D_MODEL))]
        for k in range(D_CONV):
            rows.append(_tile2(p["conv_w"][k]))
        rows.append(_tile2(p["conv_b"]))
        rows.append(_tile2(p["dt_b"]))
        rows.append(_tile2(p["d"]))
        vec.append(jnp.stack(rows))
    last = jnp.zeros((VEC_ROWS, BD), jnp.float32).at[ROW_NORM, :D_MODEL].set(norm_f_w)
    vec.append(last)
    vec = jnp.stack(vec)                                         # (N_LAYER+1, 8, 128)

    w_in = jnp.stack([p["w_in_t"] for p in layer_params]).astype(jnp.bfloat16)
    w_out = jnp.stack([p["w_out_t"] for p in layer_params]).astype(jnp.bfloat16)
    w_xc, a_neg = [], []
    for p in layer_params:
        w_x_t = p["w_x_t"]
        w_b = w_x_t[:, DT_RANK:DT_RANK + D_STATE]
        w_c = w_x_t[:, DT_RANK + D_STATE:]
        w_dt_comb = w_x_t[:, :DT_RANK] @ p["w_dt_t"]             # fold dt_proj into x_proj
        w_xc.append(jnp.concatenate([w_b, w_c, w_dt_comb], axis=1))   # (D_INNER, 96)
        an = -jnp.exp(p["a_log"].T)                              # precompute -exp(A): (16, 64)
        a_neg.append(jnp.concatenate([an, an], axis=1))          # tiled over batch lanes
    w_xc = jnp.stack(w_xc).astype(jnp.bfloat16)                  # (N_LAYER, 64, 96)
    a_neg = jnp.stack(a_neg)                                     # (N_LAYER, 16, 128) f32

    return dict(vec=vec, w_in=w_in, w_xc=w_xc, w_out=w_out, a_neg=a_neg)


# =============================== pure-JAX reference ==============================
def _ref_mixer(x, p):
    dot = functools.partial(jnp.dot, precision=jax.lax.Precision.HIGHEST)
    xz = dot(x, p["w_in_t"])
    xp, z = xz[:, :D_INNER], xz[:, D_INNER:]
    xc = jnp.zeros((L, D_INNER), jnp.float32)
    for k in range(D_CONV):
        shift = D_CONV - 1 - k
        shifted = jnp.pad(xp, ((shift, 0), (0, 0)))[:L] if shift else xp
        xc = xc + shifted * p["conv_w"][k]
    xc = _silu(xc + p["conv_b"])
    x_dbl = dot(xc, p["w_x_t"])
    dt_low = x_dbl[:, :DT_RANK]
    b_mat = x_dbl[:, DT_RANK:DT_RANK + D_STATE]
    c_mat = x_dbl[:, DT_RANK + D_STATE:]
    dt = _softplus(dot(dt_low, p["w_dt_t"]) + p["dt_b"])
    a_mat = -jnp.exp(p["a_log"])
    h = jnp.zeros((D_INNER, D_STATE), jnp.float32)
    ys = []
    for t in range(L):
        d_a = jnp.exp(dt[t][:, None] * a_mat)
        d_bu = dt[t][:, None] * b_mat[t][None, :] * xc[t][:, None]
        h = d_a * h + d_bu
        ys.append(dot(h, c_mat[t]))
    y = jnp.stack(ys) + xc * p["d"]
    y = y * _silu(z)
    return dot(y, p["w_out_t"])


def ref_forward(input_ids, embedding, layer_params, norm_f_w):
    hidden = jnp.take(embedding, input_ids, axis=0).astype(jnp.float32)
    residual = jnp.zeros_like(hidden)
    for p in layer_params:
        resid = hidden + residual
        xn = _rmsnorm(resid, p["norm_w"], EPS)
        hidden = jnp.stack([_ref_mixer(xn[b], p) for b in range(B)])
        residual = resid
    resid = hidden + residual
    return _rmsnorm(resid, norm_f_w, EPS)


# =============================== main ============================================
if __name__ == "__main__":
    key = jax.random.PRNGKey(0)
    k_emb, k_ids, k_layers = jax.random.split(key, 3)

    embedding = jax.random.normal(k_emb, (VOCAB, D_MODEL), jnp.float32) * 0.02
    input_ids = jax.random.randint(k_ids, (B, L), 0, VOCAB)
    layer_params = [init_layer_params(k) for k in jax.random.split(k_layers, N_LAYER)]
    norm_f_w = jnp.ones((D_MODEL,), jnp.float32)

    params = pack_params(layer_params, norm_f_w)

    out = jax.block_until_ready(mixer_model_forward(input_ids, embedding, params))
    assert out.shape == (B, L, D_MODEL), out.shape
    assert bool(jnp.all(jnp.isfinite(out)))

    ref = jax.block_until_ready(ref_forward(input_ids, embedding, layer_params, norm_f_w))
    # kernel matmuls use bf16 MXU operands (f32 accumulate); reference is f32 HIGHEST
    err = float(jnp.max(jnp.abs(out - ref)))
    assert jnp.allclose(out, ref, atol=2e-3, rtol=2e-3), err

    print("KERNEL_OK")
</pallas_src>

<mosaic_0001>
module attributes {stable_mosaic.version = 11 : i64} {
  func.func @mixer_model_kernel(%arg0: memref<16x32xf32, #tpu.memory_space<vmem>>, %arg1: memref<3x8x128xf32, #tpu.memory_space<vmem>>, %arg2: memref<2x32x128xbf16, #tpu.memory_space<vmem>>, %arg3: memref<2x64x96xbf16, #tpu.memory_space<vmem>>, %arg4: memref<2x64x32xbf16, #tpu.memory_space<vmem>>, %arg5: memref<2x16x128xf32, #tpu.memory_space<vmem>>, %arg6: memref<16x32xf32, #tpu.memory_space<vmem>>) attributes {dimension_semantics = [], scalar_prefetch = 0 : i64, scratch_operands = 0 : i64, tpu.core_type = #tpu.core_type<tc>} {
    %c0 = arith.constant 0 : index
    %c0_0 = arith.constant 0 : index
    %0 = vector.load %arg0[%c0, %c0_0] : memref<16x32xf32, #tpu.memory_space<vmem>>, vector<16x32xf32>
    %1 = tpu.iota {dimensions = array<i32: 0>} : vector<8x1xi32>
    %c0_1 = arith.constant 0 : index
    %c0_2 = arith.constant 0 : index
    %c0_3 = arith.constant 0 : index
    %2 = vector.load %arg1[%c0_1, %c0_2, %c0_3] : memref<3x8x128xf32, #tpu.memory_space<vmem>>, vector<1x8x128xf32>
    %3 = vector.shape_cast %2 : vector<1x8x128xf32> to vector<8x128xf32>
    %4 = vector.extract_strided_slice %3 {offsets = [0, 0], sizes = [1, 32], strides = [1, 1]} : vector<8x128xf32> to vector<1x32xf32>
    %5 = arith.mulf %0, %0 : vector<16x32xf32>
    %cst = arith.constant dense<0.000000e+00> : vector<16xf32>
    %6 = vector.multi_reduction <add>, %5, %cst [1] : vector<16x32xf32> to vector<16xf32>
    %7 = vector.shape_cast %6 : vector<16xf32> to vector<16x1xf32>
    %cst_4 = arith.constant 3.200000e+01 : f32
    %8 = vector.broadcast %cst_4 : f32 to vector<16x1xf32>
    %9 = arith.divf %7, %8 : vector<16x1xf32>
    %cst_5 = arith.constant 9.99999974E-6 : f32
    %10 = vector.broadcast %cst_5 : f32 to vector<16x1xf32>
    %11 = arith.addf %9, %10 : vector<16x1xf32>
    %12 = math.rsqrt %11 : vector<16x1xf32>
    %13 = vector.broadcast %12 : vector<16x1xf32> to vector<16x32xf32>
    %14 = arith.mulf %0, %13 : vector<16x32xf32>
    %15 = vector.broadcast %4 : vector<1x32xf32> to vector<16x32xf32>
    %16 = arith.mulf %14, %15 : vector<16x32xf32>
    %17 = arith.truncf %16 : vector<16x32xf32> to vector<16x32xbf16>
    %c0_6 = arith.constant 0 : index
    %c0_7 = arith.constant 0 : index
    %c0_8 = arith.constant 0 : index
    %18 = vector.load %arg2[%c0_6, %c0_7, %c0_8] : memref<2x32x128xbf16, #tpu.memory_space<vmem>>, vector<1x32x128xbf16>
    %19 = vector.shape_cast %18 : vector<1x32x128xbf16> to vector<32x128xbf16>
    %cst_9 = arith.constant dense<0.000000e+00> : vector<16x128xf32>
    %20 = tpu.matmul %17, %19, %cst_9 {dimension_numbers = #tpu.dot_dimension_numbers<[1], [0], [0], [1], [0, 0, 1, 1], [], []>} : vector<16x32xbf16>, vector<32x128xbf16>, vector<16x128xf32> -> vector<16x128xf32>
    %21 = vector.extract_strided_slice %20 {offsets = [0, 0], sizes = [8, 64], strides = [1, 1]} : vector<16x128xf32> to vector<8x64xf32>
    %22 = vector.extract_strided_slice %20 {offsets = [8, 0], sizes = [8, 64], strides = [1, 1]} : vector<16x128xf32> to vector<8x64xf32>
    %23 = tpu.concatenate %21, %22 in 1 : vector<8x64xf32>, vector<8x64xf32> -> vector<8x128xf32>
    %24 = vector.extract_strided_slice %20 {offsets = [0, 64], sizes = [8, 64], strides = [1, 1]} : vector<16x128xf32> to vector<8x64xf32>
    %25 = vector.extract_strided_slice %20 {offsets = [8, 64], sizes = [8, 64], strides = [1, 1]} : vector<16x128xf32> to vector<8x64xf32>
    %26 = tpu.concatenate %24, %25 in 1 : vector<8x64xf32>, vector<8x64xf32> -> vector<8x128xf32>
    %cst_10 = arith.constant 0.000000e+00 : f32
    %27 = vector.broadcast %cst_10 : f32 to vector<3x128xf32>
    %28 = tpu.concatenate %27, %23 in 0 : vector<3x128xf32>, vector<8x128xf32> -> vector<11x128xf32>
    %cst_11 = arith.constant 0.000000e+00 : f32
    %29 = vector.broadcast %cst_11 : f32 to vector<8x128xf32>
    %30 = vector.extract_strided_slice %28 {offsets = [0, 0], sizes = [8, 128], strides = [1, 1]} : vector<11x128xf32> to vector<8x128xf32>
    %31 = vector.extract_strided_slice %3 {offsets = [1, 0], sizes = [1, 128], strides = [1, 1]} : vector<8x128xf32> to vector<1x128xf32>
    %32 = vector.broadcast %31 : vector<1x128xf32> to vector<8x128xf32>
    %33 = arith.mulf %30, %32 : vector<8x128xf32>
    %34 = arith.addf %29, %33 : vector<8x128xf32>
    %35 = vector.extract_strided_slice %28 {offsets = [1, 0], sizes = [8, 128], strides = [1, 1]} : vector<11x128xf32> to vector<8x128xf32>
    %36 = vector.extract_strided_slice %3 {offsets = [2, 0], sizes = [1, 128], strides = [1, 1]} : vector<8x128xf32> to vector<1x128xf32>
    %37 = vector.broadcast %36 : vector<1x128xf32> to vector<8x128xf32>
    %38 = arith.mulf %35, %37 : vector<8x128xf32>
    %39 = arith.addf %34, %38 : vector<8x128xf32>
    %40 = vector.extract_strided_slice %28 {offsets = [2, 0], sizes = [8, 128], strides = [1, 1]} : vector<11x128xf32> to vector<8x128xf32>
    %41 = vector.extract_strided_slice %3 {offsets = [3, 0], sizes = [1, 128], strides = [1, 1]} : vector<8x128xf32> to vector<1x128xf32>
    %42 = vector.broadcast %41 : vector<1x128xf32> to vector<8x128xf32>
    %43 = arith.mulf %40, %42 : vector<8x128xf32>
    %44 = arith.addf %39, %43 : vector<8x128xf32>
    %45 = vector.extract_strided_slice %28 {offsets = [3, 0], sizes = [8, 128], strides = [1, 1]} : vector<11x128xf32> to vector<8x128xf32>
    %46 = vector.extract_strided_slice %3 {offsets = [4, 0], sizes = [1, 128], strides = [1, 1]} : vector<8x128xf32> to vector<1x128xf32>
    %47 = vector.broadcast %46 : vector<1x128xf32> to vector<8x128xf32>
    %48 = arith.mulf %45, %47 : vector<8x128xf32>
    %49 = arith.addf %44, %48 : vector<8x128xf32>
    %50 = vector.extract_strided_slice %3 {offsets = [5, 0], sizes = [1, 128], strides = [1, 1]} : vector<8x128xf32> to vector<1x128xf32>
    %51 = vector.broadcast %50 : vector<1x128xf32> to vector<8x128xf32>
    %52 = arith.addf %49, %51 : vector<8x128xf32>
    %cst_12 = arith.constant 0.000000e+00 : f32
    %53 = vector.broadcast %cst_12 : f32 to vector<8x128xf32>
    %54 = arith.subf %53, %52 : vector<8x128xf32>
    %55 = math.exp %54 : vector<8x128xf32>
    %cst_13 = arith.constant 1.000000e+00 : f32
    %56 = vector.broadcast %cst_13 : f32 to vector<8x128xf32>
    %57 = arith.addf %56, %55 : vector<8x128xf32>
    %cst_14 = arith.constant 1.000000e+00 : f32
    %58 = vector.broadcast %cst_14 : f32 to vector<8x128xf32>
    %59 = arith.divf %58, %57 : vector<8x128xf32>
    %60 = arith.mulf %52, %59 : vector<8x128xf32>
    %61 = vector.extract_strided_slice %60 {offsets = [0, 0], sizes = [8, 64], strides = [1, 1]} : vector<8x128xf32> to vector<8x64xf32>
    %62 = vector.extract_strided_slice %60 {offsets = [0, 64], sizes = [8, 64], strides = [1, 1]} : vector<8x128xf32> to vector<8x64xf32>
    %63 = tpu.concatenate %61, %62 in 0 : vector<8x64xf32>, vector<8x64xf32> -> vector<16x64xf32>
    %64 = arith.truncf %63 : vector<16x64xf32> to vector<16x64xbf16>
    %c0_15 = arith.constant 0 : index
    %c0_16 = arith.constant 0 : index
    %c0_17 = arith.constant 0 : index
    %65 = vector.load %arg3[%c0_15, %c0_16, %c0_17] : memref<2x64x96xbf16, #tpu.memory_space<vmem>>, vector<1x64x96xbf16>
    %66 = vector.shape_cast %65 : vector<1x64x96xbf16> to vector<64x96xbf16>
    %cst_18 = arith.constant dense<0.000000e+00> : vector<16x96xf32>
    %67 = tpu.matmul %64, %66, %cst_18 {dimension_numbers = #tpu.dot_dimension_numbers<[1], [0], [0], [1], [0, 0, 1, 1], [], []>} : vector<16x64xbf16>, vector<64x96xbf16>, vector<16x96xf32> -> vector<16x96xf32>
    %68 = vector.extract_strided_slice %67 {offsets = [0, 0], sizes = [16, 16], strides = [1, 1]} : vector<16x96xf32> to vector<16x16xf32>
    %69 = vector.extract_strided_slice %67 {offsets = [0, 16], sizes = [16, 16], strides = [1, 1]} : vector<16x96xf32> to vector<16x16xf32>
    %70 = vector.extract_strided_slice %67 {offsets = [0, 32], sizes = [16, 64], strides = [1, 1]} : vector<16x96xf32> to vector<16x64xf32>
    %71 = vector.extract_strided_slice %70 {offsets = [0, 0], sizes = [8, 64], strides = [1, 1]} : vector<16x64xf32> to vector<8x64xf32>
    %72 = vector.extract_strided_slice %70 {offsets = [8, 0], sizes = [8, 64], strides = [1, 1]} : vector<16x64xf32> to vector<8x64xf32>
    %73 = tpu.concatenate %71, %72 in 1 : vector<8x64xf32>, vector<8x64xf32> -> vector<8x128xf32>
    %74 = vector.extract_strided_slice %3 {offsets = [6, 0], sizes = [1, 128], strides = [1, 1]} : vector<8x128xf32> to vector<1x128xf32>
    %75 = vector.broadcast %74 : vector<1x128xf32> to vector<8x128xf32>
    %76 = arith.addf %73, %75 : vector<8x128xf32>
    %cst_19 = arith.constant 0.000000e+00 : f32
    %77 = vector.broadcast %cst_19 : f32 to vector<8x128xf32>
    %78 = arith.maximumf %76, %77 : vector<8x128xf32>
    %79 = math.absf %76 : vector<8x128xf32>
    %cst_20 = arith.constant 0.000000e+00 : f32
    %80 = vector.broadcast %cst_20 : f32 to vector<8x128xf32>
    %81 = arith.subf %80, %79 : vector<8x128xf32>
    %82 = math.exp %81 : vector<8x128xf32>
    %cst_21 = arith.constant 1.000000e+00 : f32
    %83 = vector.broadcast %cst_21 : f32 to vector<8x128xf32>
    %84 = arith.addf %83, %82 : vector<8x128xf32>
    %85 = math.log %84 : vector<8x128xf32>
    %86 = arith.addf %78, %85 : vector<8x128xf32>
    %c0_22 = arith.constant 0 : index
    %c0_23 = arith.constant 0 : index
    %c0_24 = arith.constant 0 : index
    %87 = vector.load %arg5[%c0_22, %c0_23, %c0_24] : memref<2x16x128xf32, #tpu.memory_space<vmem>>, vector<1x16x128xf32>
    %88 = vector.shape_cast %87 : vector<1x16x128xf32> to vector<16x128xf32>
    %89 = vector.shape_cast %86 : vector<8x128xf32> to vector<8x1x128xf32>
    %90 = vector.shape_cast %88 : vector<16x128xf32> to vector<1x16x128xf32>
    %91 = vector.broadcast %89 : vector<8x1x128xf32> to vector<8x16x128xf32>
    %92 = vector.broadcast %90 : vector<1x16x128xf32> to vector<8x16x128xf32>
    %93 = arith.mulf %91, %92 : vector<8x16x128xf32>
    %94 = math.exp %93 : vector<8x16x128xf32>
    %95 = arith.mulf %86, %60 : vector<8x128xf32>
    %96 = vector.extract_strided_slice %68 {offsets = [0, 0], sizes = [8, 16], strides = [1, 1]} : vector<16x16xf32> to vector<8x16xf32>
    %97 = vector.shape_cast %96 : vector<8x16xf32> to vector<8x16x1xf32>
    %98 = vector.extract_strided_slice %95 {offsets = [0, 0], sizes = [8, 64], strides = [1, 1]} : vector<8x128xf32> to vector<8x64xf32>
    %99 = vector.shape_cast %98 : vector<8x64xf32> to vector<8x1x64xf32>
    %100 = vector.broadcast %97 : vector<8x16x1xf32> to vector<8x16x64xf32>
    %101 = vector.broadcast %99 : vector<8x1x64xf32> to vector<8x16x64xf32>
    %102 = arith.mulf %100, %101 : vector<8x16x64xf32>
    %103 = vector.extract_strided_slice %68 {offsets = [8, 0], sizes = [8, 16], strides = [1, 1]} : vector<16x16xf32> to vector<8x16xf32>
    %104 = vector.shape_cast %103 : vector<8x16xf32> to vector<8x16x1xf32>
    %105 = vector.extract_strided_slice %95 {offsets = [0, 64], sizes = [8, 64], strides = [1, 1]} : vector<8x128xf32> to vector<8x64xf32>
    %106 = vector.shape_cast %105 : vector<8x64xf32> to vector<8x1x64xf32>
    %107 = vector.broadcast %104 : vector<8x16x1xf32> to vector<8x16x64xf32>
    %108 = vector.broadcast %106 : vector<8x1x64xf32> to vector<8x16x64xf32>
    %109 = arith.mulf %107, %108 : vector<8x16x64xf32>
    %110 = tpu.concatenate %102, %109 in 2 : vector<8x16x64xf32>, vector<8x16x64xf32> -> vector<8x16x128xf32>
    %111 = vector.extract_strided_slice %69 {offsets = [0, 0], sizes = [8, 16], strides = [1, 1]} : vector<16x16xf32> to vector<8x16xf32>
    %112 = vector.shape_cast %111 : vector<8x16xf32> to vector<8x16x1xf32>
    %113 = vector.shape_cast %112 : vector<8x16x1xf32> to vector<8x16x1xf32>
    %114 = vector.broadcast %113 : vector<8x16x1xf32> to vector<8x16x64xf32>
    %115 = vector.extract_strided_slice %69 {offsets = [8, 0], sizes = [8, 16], strides = [1, 1]} : vector<16x16xf32> to vector<8x16xf32>
    %116 = vector.shape_cast %115 : vector<8x16xf32> to vector<8x16x1xf32>
    %117 = vector.shape_cast %116 : vector<8x16x1xf32> to vector<8x16x1xf32>
    %118 = vector.broadcast %117 : vector<8x16x1xf32> to vector<8x16x64xf32>
    %119 = tpu.concatenate %114, %118 in 2 : vector<8x16x64xf32>, vector<8x16x64xf32> -> vector<8x16x128xf32>
    %cst_25 = arith.constant 0.000000e+00 : f32
    %120 = vector.broadcast %cst_25 : f32 to vector<16x128xf32>
    %cst_26 = arith.constant 0.000000e+00 : f32
    %121 = vector.broadcast %cst_26 : f32 to vector<8x128xf32>
    %122 = vector.extract_strided_slice %94 {offsets = [0, 0, 0], sizes = [1, 16, 128], strides = [1, 1, 1]} : vector<8x16x128xf32> to vector<1x16x128xf32>
    %123 = vector.shape_cast %122 : vector<1x16x128xf32> to vector<16x128xf32>
    %124 = arith.mulf %123, %120 : vector<16x128xf32>
    %125 = vector.extract_strided_slice %110 {offsets = [0, 0, 0], sizes = [1, 16, 128], strides = [1, 1, 1]} : vector<8x16x128xf32> to vector<1x16x128xf32>
    %126 = vector.shape_cast %125 : vector<1x16x128xf32> to vector<16x128xf32>
    %127 = arith.addf %124, %126 : vector<16x128xf32>
    %128 = vector.extract_strided_slice %119 {offsets = [0, 0, 0], sizes = [1, 16, 128], strides = [1, 1, 1]} : vector<8x16x128xf32> to vector<1x16x128xf32>
    %129 = vector.shape_cast %128 : vector<1x16x128xf32> to vector<16x128xf32>
    %130 = arith.mulf %129, %127 : vector<16x128xf32>
    %cst_27 = arith.constant dense<0.000000e+00> : vector<128xf32>
    %131 = vector.multi_reduction <add>, %130, %cst_27 [0] : vector<16x128xf32> to vector<128xf32>
    %132 = vector.shape_cast %131 : vector<128xf32> to vector<1x128xf32>
    %c0_i32 = arith.constant 0 : i32
    %133 = vector.broadcast %c0_i32 : i32 to vector<8x1xi32>
    %134 = arith.cmpi eq, %1, %133 : vector<8x1xi32>
    %135 = vector.shape_cast %134 : vector<8x1xi1> to vector<8x1xi1>
    %136 = vector.broadcast %135 : vector<8x1xi1> to vector<8x128xi1>
    %137 = vector.shape_cast %132 : vector<1x128xf32> to vector<1x128xf32>
    %138 = vector.broadcast %137 : vector<1x128xf32> to vector<8x128xf32>
    %139 = arith.select %136, %138, %121 : vector<8x128xi1>, vector<8x128xf32>
    %140 = vector.extract_strided_slice %94 {offsets = [1, 0, 0], sizes = [1, 16, 128], strides = [1, 1, 1]} : vector<8x16x128xf32> to vector<1x16x128xf32>
    %141 = vector.shape_cast %140 : vector<1x16x128xf32> to vector<16x128xf32>
    %142 = arith.mulf %141, %127 : vector<16x128xf32>
    %143 = vector.extract_strided_slice %110 {offsets = [1, 0, 0], sizes = [1, 16, 128], strides = [1, 1, 1]} : vector<8x16x128xf32> to vector<1x16x128xf32>
    %144 = vector.shape_cast %143 : vector<1x16x128xf32> to vector<16x128xf32>
    %145 = arith.addf %142, %144 : vector<16x128xf32>
    %146 = vector.extract_strided_slice %119 {offsets = [1, 0, 0], sizes = [1, 16, 128], strides = [1, 1, 1]} : vector<8x16x128xf32> to vector<1x16x128xf32>
    %147 = vector.shape_cast %146 : vector<1x16x128xf32> to vector<16x128xf32>
    %148 = arith.mulf %147, %145 : vector<16x128xf32>
    %cst_28 = arith.constant dense<0.000000e+00> : vector<128xf32>
    %149 = vector.multi_reduction <add>, %148, %cst_28 [0] : vector<16x128xf32> to vector<128xf32>
    %150 = vector.shape_cast %149 : vector<128xf32> to vector<1x128xf32>
    %c1_i32 = arith.constant 1 : i32
    %151 = vector.broadcast %c1_i32 : i32 to vector<8x1xi32>
    %152 = arith.cmpi eq, %1, %151 : vector<8x1xi32>
    %153 = vector.shape_cast %152 : vector<8x1xi1> to vector<8x1xi1>
    %154 = vector.broadcast %153 : vector<8x1xi1> to vector<8x128xi1>
    %155 = vector.shape_cast %150 : vector<1x128xf32> to vector<1x128xf32>
    %156 = vector.broadcast %155 : vector<1x128xf32> to vector<8x128xf32>
    %157 = arith.select %154, %156, %139 : vector<8x128xi1>, vector<8x128xf32>
    %158 = vector.extract_strided_slice %94 {offsets = [2, 0, 0], sizes = [1, 16, 128], strides = [1, 1, 1]} : vector<8x16x128xf32> to vector<1x16x128xf32>
    %159 = vector.shape_cast %158 : vector<1x16x128xf32> to vector<16x128xf32>
    %160 = arith.mulf %159, %145 : vector<16x128xf32>
    %161 = vector.extract_strided_slice %110 {offsets = [2, 0, 0], sizes = [1, 16, 128], strides = [1, 1, 1]} : vector<8x16x128xf32> to vector<1x16x128xf32>
    %162 = vector.shape_cast %161 : vector<1x16x128xf32> to vector<16x128xf32>
    %163 = arith.addf %160, %162 : vector<16x128xf32>
    %164 = vector.extract_strided_slice %119 {offsets = [2, 0, 0], sizes = [1, 16, 128], strides = [1, 1, 1]} : vector<8x16x128xf32> to vector<1x16x128xf32>
    %165 = vector.shape_cast %164 : vector<1x16x128xf32> to vector<16x128xf32>
    %166 = arith.mulf %165, %163 : vector<16x128xf32>
    %cst_29 = arith.constant dense<0.000000e+00> : vector<128xf32>
    %167 = vector.multi_reduction <add>, %166, %cst_29 [0] : vector<16x128xf32> to vector<128xf32>
    %168 = vector.shape_cast %167 : vector<128xf32> to vector<1x128xf32>
    %c2_i32 = arith.constant 2 : i32
    %169 = vector.broadcast %c2_i32 : i32 to vector<8x1xi32>
    %170 = arith.cmpi eq, %1, %169 : vector<8x1xi32>
    %171 = vector.shape_cast %170 : vector<8x1xi1> to vector<8x1xi1>
    %172 = vector.broadcast %171 : vector<8x1xi1> to vector<8x128xi1>
    %173 = vector.shape_cast %168 : vector<1x128xf32> to vector<1x128xf32>
    %174 = vector.broadcast %173 : vector<1x128xf32> to vector<8x128xf32>
    %175 = arith.select %172, %174, %157 : vector<8x128xi1>, vector<8x128xf32>
    %176 = vector.extract_strided_slice %94 {offsets = [3, 0, 0], sizes = [1, 16, 128], strides = [1, 1, 1]} : vector<8x16x128xf32> to vector<1x16x128xf32>
    %177 = vector.shape_cast %176 : vector<1x16x128xf32> to vector<16x128xf32>
    %178 = arith.mulf %177, %163 : vector<16x128xf32>
    %179 = vector.extract_strided_slice %110 {offsets = [3, 0, 0], sizes = [1, 16, 128], strides = [1, 1, 1]} : vector<8x16x128xf32> to vector<1x16x128xf32>
    %180 = vector.shape_cast %179 : vector<1x16x128xf32> to vector<16x128xf32>
    %181 = arith.addf %178, %180 : vector<16x128xf32>
    %182 = vector.extract_strided_slice %119 {offsets = [3, 0, 0], sizes = [1, 16, 128], strides = [1, 1, 1]} : vector<8x16x128xf32> to vector<1x16x128xf32>
    %183 = vector.shape_cast %182 : vector<1x16x128xf32> to vector<16x128xf32>
    %184 = arith.mulf %183, %181 : vector<16x128xf32>
    %cst_30 = arith.constant dense<0.000000e+00> : vector<128xf32>
    %185 = vector.multi_reduction <add>, %184, %cst_30 [0] : vector<16x128xf32> to vector<128xf32>
    %186 = vector.shape_cast %185 : vector<128xf32> to vector<1x128xf32>
    %c3_i32 = arith.constant 3 : i32
    %187 = vector.broadcast %c3_i32 : i32 to vector<8x1xi32>
    %188 = arith.cmpi eq, %1, %187 : vector<8x1xi32>
    %189 = vector.shape_cast %188 : vector<8x1xi1> to vector<8x1xi1>
    %190 = vector.broadcast %189 : vector<8x1xi1> to vector<8x128xi1>
    %191 = vector.shape_cast %186 : vector<1x128xf32> to vector<1x128xf32>
    %192 = vector.broadcast %191 : vector<1x128xf32> to vector<8x128xf32>
    %193 = arith.select %190, %192, %175 : vector<8x128xi1>, vector<8x128xf32>
    %194 = vector.extract_strided_slice %94 {offsets = [4, 0, 0], sizes = [1, 16, 128], strides = [1, 1, 1]} : vector<8x16x128xf32> to vector<1x16x128xf32>
    %195 = vector.shape_cast %194 : vector<1x16x128xf32> to vector<16x128xf32>
    %196 = arith.mulf %195, %181 : vector<16x128xf32>
    %197 = vector.extract_strided_slice %110 {offsets = [4, 0, 0], sizes = [1, 16, 128], strides = [1, 1, 1]} : vector<8x16x128xf32> to vector<1x16x128xf32>
    %198 = vector.shape_cast %197 : vector<1x16x128xf32> to vector<16x128xf32>
    %199 = arith.addf %196, %198 : vector<16x128xf32>
    %200 = vector.extract_strided_slice %119 {offsets = [4, 0, 0], sizes = [1, 16, 128], strides = [1, 1, 1]} : vector<8x16x128xf32> to vector<1x16x128xf32>
    %201 = vector.shape_cast %200 : vector<1x16x128xf32> to vector<16x128xf32>
    %202 = arith.mulf %201, %199 : vector<16x128xf32>
    %cst_31 = arith.constant dense<0.000000e+00> : vector<128xf32>
    %203 = vector.multi_reduction <add>, %202, %cst_31 [0] : vector<16x128xf32> to vector<128xf32>
    %204 = vector.shape_cast %203 : vector<128xf32> to vector<1x128xf32>
    %c4_i32 = arith.constant 4 : i32
    %205 = vector.broadcast %c4_i32 : i32 to vector<8x1xi32>
    %206 = arith.cmpi eq, %1, %205 : vector<8x1xi32>
    %207 = vector.shape_cast %206 : vector<8x1xi1> to vector<8x1xi1>
    %208 = vector.broadcast %207 : vector<8x1xi1> to vector<8x128xi1>
    %209 = vector.shape_cast %204 : vector<1x128xf32> to vector<1x128xf32>
    %210 = vector.broadcast %209 : vector<1x128xf32> to vector<8x128xf32>
    %211 = arith.select %208, %210, %193 : vector<8x128xi1>, vector<8x128xf32>
    %212 = vector.extract_strided_slice %94 {offsets = [5, 0, 0], sizes = [1, 16, 128], strides = [1, 1, 1]} : vector<8x16x128xf32> to vector<1x16x128xf32>
    %213 = vector.shape_cast %212 : vector<1x16x128xf32> to vector<16x128xf32>
    %214 = arith.mulf %213, %199 : vector<16x128xf32>
    %215 = vector.extract_strided_slice %110 {offsets = [5, 0, 0], sizes = [1, 16, 128], strides = [1, 1, 1]} : vector<8x16x128xf32> to vector<1x16x128xf32>
    %216 = vector.shape_cast %215 : vector<1x16x128xf32> to vector<16x128xf32>
    %217 = arith.addf %214, %216 : vector<16x128xf32>
    %218 = vector.extract_strided_slice %119 {offsets = [5, 0, 0], sizes = [1, 16, 128], strides = [1, 1, 1]} : vector<8x16x128xf32> to vector<1x16x128xf32>
    %219 = vector.shape_cast %218 : vector<1x16x128xf32> to vector<16x128xf32>
    %220 = arith.mulf %219, %217 : vector<16x128xf32>
    %cst_32 = arith.constant dense<0.000000e+00> : vector<128xf32>
    %221 = vector.multi_reduction <add>, %220, %cst_32 [0] : vector<16x128xf32> to vector<128xf32>
    %222 = vector.shape_cast %221 : vector<128xf32> to vector<1x128xf32>
    %c5_i32 = arith.constant 5 : i32
    %223 = vector.broadcast %c5_i32 : i32 to vector<8x1xi32>
    %224 = arith.cmpi eq, %1, %223 : vector<8x1xi32>
    %225 = vector.shape_cast %224 : vector<8x1xi1> to vector<8x1xi1>
    %226 = vector.broadcast %225 : vector<8x1xi1> to vector<8x128xi1>
    %227 = vector.shape_cast %222 : vector<1x128xf32> to vector<1x128xf32>
    %228 = vector.broadcast %227 : vector<1x128xf32> to vector<8x128xf32>
    %229 = arith.select %226, %228, %211 : vector<8x128xi1>, vector<8x128xf32>
    %230 = vector.extract_strided_slice %94 {offsets = [6, 0, 0], sizes = [1, 16, 128], strides = [1, 1, 1]} : vector<8x16x128xf32> to vector<1x16x128xf32>
    %231 = vector.shape_cast %230 : vector<1x16x128xf32> to vector<16x128xf32>
    %232 = arith.mulf %231, %217 : vector<16x128xf32>
    %233 = vector.extract_strided_slice %110 {offsets = [6, 0, 0], sizes = [1, 16, 128], strides = [1, 1, 1]} : vector<8x16x128xf32> to vector<1x16x128xf32>
    %234 = vector.shape_cast %233 : vector<1x16x128xf32> to vector<16x128xf32>
    %235 = arith.addf %232, %234 : vector<16x128xf32>
    %236 = vector.extract_strided_slice %119 {offsets = [6, 0, 0], sizes = [1, 16, 128], strides = [1, 1, 1]} : vector<8x16x128xf32> to vector<1x16x128xf32>
    %237 = vector.shape_cast %236 : vector<1x16x128xf32> to vector<16x128xf32>
    %238 = arith.mulf %237, %235 : vector<16x128xf32>
    %cst_33 = arith.constant dense<0.000000e+00> : vector<128xf32>
    %239 = vector.multi_reduction <add>, %238, %cst_33 [0] : vector<16x128xf32> to vector<128xf32>
    %240 = vector.shape_cast %239 : vector<128xf32> to vector<1x128xf32>
    %c6_i32 = arith.constant 6 : i32
    %241 = vector.broadcast %c6_i32 : i32 to vector<8x1xi32>
    %242 = arith.cmpi eq, %1, %241 : vector<8x1xi32>
    %243 = vector.shape_cast %242 : vector<8x1xi1> to vector<8x1xi1>
    %244 = vector.broadcast %243 : vector<8x1xi1> to vector<8x128xi1>
    %245 = vector.shape_cast %240 : vector<1x128xf32> to vector<1x128xf32>
    %246 = vector.broadcast %245 : vector<1x128xf32> to vector<8x128xf32>
    %247 = arith.select %244, %246, %229 : vector<8x128xi1>, vector<8x128xf32>
    %248 = vector.extract_strided_slice %94 {offsets = [7, 0, 0], sizes = [1, 16, 128], strides = [1, 1, 1]} : vector<8x16x128xf32> to vector<1x16x128xf32>
    %249 = vector.shape_cast %248 : vector<1x16x128xf32> to vector<16x128xf32>
    %250 = arith.mulf %249, %235 : vector<16x128xf32>
    %251 = vector.extract_strided_slice %110 {offsets = [7, 0, 0], sizes = [1, 16, 128], strides = [1, 1, 1]} : vector<8x16x128xf32> to vector<1x16x128xf32>
    %252 = vector.shape_cast %251 : vector<1x16x128xf32> to vector<16x128xf32>
    %253 = arith.addf %250, %252 : vector<16x128xf32>
    %254 = vector.extract_strided_slice %119 {offsets = [7, 0, 0], sizes = [1, 16, 128], strides = [1, 1, 1]} : vector<8x16x128xf32> to vector<1x16x128xf32>
    %255 = vector.shape_cast %254 : vector<1x16x128xf32> to vector<16x128xf32>
    %256 = arith.mulf %255, %253 : vector<16x128xf32>
    %cst_34 = arith.constant dense<0.000000e+00> : vector<128xf32>
    %257 = vector.multi_reduction <add>, %256, %cst_34 [0] : vector<16x128xf32> to vector<128xf32>
    %258 = vector.shape_cast %257 : vector<128xf32> to vector<1x128xf32>
    %c7_i32 = arith.constant 7 : i32
    %259 = vector.broadcast %c7_i32 : i32 to vector<8x1xi32>
    %260 = arith.cmpi eq, %1, %259 : vector<8x1xi32>
    %261 = vector.shape_cast %260 : vector<8x1xi1> to vector<8x1xi1>
    %262 = vector.broadcast %261 : vector<8x1xi1> to vector<8x128xi1>
    %263 = vector.shape_cast %258 : vector<1x128xf32> to vector<1x128xf32>
    %264 = vector.broadcast %263 : vector<1x128xf32> to vector<8x128xf32>
    %265 = arith.select %262, %264, %247 : vector<8x128xi1>, vector<8x128xf32>
    %266 = vector.extract_strided_slice %3 {offsets = [7, 0], sizes = [1, 128], strides = [1, 1]} : vector<8x128xf32> to vector<1x128xf32>
    %267 = vector.broadcast %266 : vector<1x128xf32> to vector<8x128xf32>
    %268 = arith.mulf %60, %267 : vector<8x128xf32>
    %269 = arith.addf %265, %268 : vector<8x128xf32>
    %cst_35 = arith.constant 0.000000e+00 : f32
    %270 = vector.broadcast %cst_35 : f32 to vector<8x128xf32>
    %271 = arith.subf %270, %26 : vector<8x128xf32>
    %272 = math.exp %271 : vector<8x128xf32>
    %cst_36 = arith.constant 1.000000e+00 : f32
    %273 = vector.broadcast %cst_36 : f32 to vector<8x128xf32>
    %274 = arith.addf %273, %272 : vector<8x128xf32>
    %cst_37 = arith.constant 1.000000e+00 : f32
    %275 = vector.broadcast %cst_37 : f32 to vector<8x128xf32>
    %276 = arith.divf %275, %274 : vector<8x128xf32>
    %277 = arith.mulf %26, %276 : vector<8x128xf32>
    %278 = arith.mulf %269, %277 : vector<8x128xf32>
    %279 = vector.extract_strided_slice %278 {offsets = [0, 0], sizes = [8, 64], strides = [1, 1]} : vector<8x128xf32> to vector<8x64xf32>
    %280 = vector.extract_strided_slice %278 {offsets = [0, 64], sizes = [8, 64], strides = [1, 1]} : vector<8x128xf32> to vector<8x64xf32>
    %281 = tpu.concatenate %279, %280 in 0 : vector<8x64xf32>, vector<8x64xf32> -> vector<16x64xf32>
    %282 = arith.truncf %281 : vector<16x64xf32> to vector<16x64xbf16>
    %c0_38 = arith.constant 0 : index
    %c0_39 = arith.constant 0 : index
    %c0_40 = arith.constant 0 : index
    %283 = vector.load %arg4[%c0_38, %c0_39, %c0_40] : memref<2x64x32xbf16, #tpu.memory_space<vmem>>, vector<1x64x32xbf16>
    %284 = vector.shape_cast %283 : vector<1x64x32xbf16> to vector<64x32xbf16>
    %cst_41 = arith.constant dense<0.000000e+00> : vector<16x32xf32>
    %285 = tpu.matmul %282, %284, %cst_41 {dimension_numbers = #tpu.dot_dimension_numbers<[1], [0], [0], [1], [0, 0, 1, 1], [], []>} : vector<16x64xbf16>, vector<64x32xbf16>, vector<16x32xf32> -> vector<16x32xf32>
    %286 = arith.addf %285, %0 : vector<16x32xf32>
    %c1 = arith.constant 1 : index
    %c0_42 = arith.constant 0 : index
    %c0_43 = arith.constant 0 : index
    %287 = vector.load %arg1[%c1, %c0_42, %c0_43] : memref<3x8x128xf32, #tpu.memory_space<vmem>>, vector<1x8x128xf32>
    %288 = vector.shape_cast %287 : vector<1x8x128xf32> to vector<8x128xf32>
    %289 = vector.extract_strided_slice %288 {offsets = [0, 0], sizes = [1, 32], strides = [1, 1]} : vector<8x128xf32> to vector<1x32xf32>
    %290 = arith.mulf %286, %286 : vector<16x32xf32>
    %cst_44 = arith.constant dense<0.000000e+00> : vector<16xf32>
    %291 = vector.multi_reduction <add>, %290, %cst_44 [1] : vector<16x32xf32> to vector<16xf32>
    %292 = vector.shape_cast %291 : vector<16xf32> to vector<16x1xf32>
    %cst_45 = arith.constant 3.200000e+01 : f32
    %293 = vector.broadcast %cst_45 : f32 to vector<16x1xf32>
    %294 = arith.divf %292, %293 : vector<16x1xf32>
    %cst_46 = arith.constant 9.99999974E-6 : f32
    %295 = vector.broadcast %cst_46 : f32 to vector<16x1xf32>
    %296 = arith.addf %294, %295 : vector<16x1xf32>
    %297 = math.rsqrt %296 : vector<16x1xf32>
    %298 = vector.broadcast %297 : vector<16x1xf32> to vector<16x32xf32>
    %299 = arith.mulf %286, %298 : vector<16x32xf32>
    %300 = vector.broadcast %289 : vector<1x32xf32> to vector<16x32xf32>
    %301 = arith.mulf %299, %300 : vector<16x32xf32>
    %302 = arith.truncf %301 : vector<16x32xf32> to vector<16x32xbf16>
    %c1_47 = arith.constant 1 : index
    %c0_48 = arith.constant 0 : index
    %c0_49 = arith.constant 0 : index
    %303 = vector.load %arg2[%c1_47, %c0_48, %c0_49] : memref<2x32x128xbf16, #tpu.memory_space<vmem>>, vector<1x32x128xbf16>
    %304 = vector.shape_cast %303 : vector<1x32x128xbf16> to vector<32x128xbf16>
    %cst_50 = arith.constant dense<0.000000e+00> : vector<16x128xf32>
    %305 = tpu.matmul %302, %304, %cst_50 {dimension_numbers = #tpu.dot_dimension_numbers<[1], [0], [0], [1], [0, 0, 1, 1], [], []>} : vector<16x32xbf16>, vector<32x128xbf16>, vector<16x128xf32> -> vector<16x128xf32>
    %306 = vector.extract_strided_slice %305 {offsets = [0, 0], sizes = [8, 64], strides = [1, 1]} : vector<16x128xf32> to vector<8x64xf32>
    %307 = vector.extract_strided_slice %305 {offsets = [8, 0], sizes = [8, 64], strides = [1, 1]} : vector<16x128xf32> to vector<8x64xf32>
    %308 = tpu.concatenate %306, %307 in 1 : vector<8x64xf32>, vector<8x64xf32> -> vector<8x128xf32>
    %309 = vector.extract_strided_slice %305 {offsets = [0, 64], sizes = [8, 64], strides = [1, 1]} : vector<16x128xf32> to vector<8x64xf32>
    %310 = vector.extract_strided_slice %305 {offsets = [8, 64], sizes = [8, 64], strides = [1, 1]} : vector<16x128xf32> to vector<8x64xf32>
    %311 = tpu.concatenate %309, %310 in 1 : vector<8x64xf32>, vector<8x64xf32> -> vector<8x128xf32>
    %cst_51 = arith.constant 0.000000e+00 : f32
    %312 = vector.broadcast %cst_51 : f32 to vector<3x128xf32>
    %313 = tpu.concatenate %312, %308 in 0 : vector<3x128xf32>, vector<8x128xf32> -> vector<11x128xf32>
    %cst_52 = arith.constant 0.000000e+00 : f32
    %314 = vector.broadcast %cst_52 : f32 to vector<8x128xf32>
    %315 = vector.extract_strided_slice %313 {offsets = [0, 0], sizes = [8, 128], strides = [1, 1]} : vector<11x128xf32> to vector<8x128xf32>
    %316 = vector.extract_strided_slice %288 {offsets = [1, 0], sizes = [1, 128], strides = [1, 1]} : vector<8x128xf32> to vector<1x128xf32>
    %317 = vector.broadcast %316 : vector<1x128xf32> to vector<8x128xf32>
    %318 = arith.mulf %315, %317 : vector<8x128xf32>
    %319 = arith.addf %314, %318 : vector<8x128xf32>
    %320 = vector.extract_strided_slice %313 {offsets = [1, 0], sizes = [8, 128], strides = [1, 1]} : vector<11x128xf32> to vector<8x128xf32>
    %321 = vector.extract_strided_slice %288 {offsets = [2, 0], sizes = [1, 128], strides = [1, 1]} : vector<8x128xf32> to vector<1x128xf32>
    %322 = vector.broadcast %321 : vector<1x128xf32> to vector<8x128xf32>
    %323 = arith.mulf %320, %322 : vector<8x128xf32>
    %324 = arith.addf %319, %323 : vector<8x128xf32>
    %325 = vector.extract_strided_slice %313 {offsets = [2, 0], sizes = [8, 128], strides = [1, 1]} : vector<11x128xf32> to vector<8x128xf32>
    %326 = vector.extract_strided_slice %288 {offsets = [3, 0], sizes = [1, 128], strides = [1, 1]} : vector<8x128xf32> to vector<1x128xf32>
    %327 = vector.broadcast %326 : vector<1x128xf32> to vector<8x128xf32>
    %328 = arith.mulf %325, %327 : vector<8x128xf32>
    %329 = arith.addf %324, %328 : vector<8x128xf32>
    %330 = vector.extract_strided_slice %313 {offsets = [3, 0], sizes = [8, 128], strides = [1, 1]} : vector<11x128xf32> to vector<8x128xf32>
    %331 = vector.extract_strided_slice %288 {offsets = [4, 0], sizes = [1, 128], strides = [1, 1]} : vector<8x128xf32> to vector<1x128xf32>
    %332 = vector.broadcast %331 : vector<1x128xf32> to vector<8x128xf32>
    %333 = arith.mulf %330, %332 : vector<8x128xf32>
    %334 = arith.addf %329, %333 : vector<8x128xf32>
    %335 = vector.extract_strided_slice %288 {offsets = [5, 0], sizes = [1, 128], strides = [1, 1]} : vector<8x128xf32> to vector<1x128xf32>
    %336 = vector.broadcast %335 : vector<1x128xf32> to vector<8x128xf32>
    %337 = arith.addf %334, %336 : vector<8x128xf32>
    %cst_53 = arith.constant 0.000000e+00 : f32
    %338 = vector.broadcast %cst_53 : f32 to vector<8x128xf32>
    %339 = arith.subf %338, %337 : vector<8x128xf32>
    %340 = math.exp %339 : vector<8x128xf32>
    %cst_54 = arith.constant 1.000000e+00 : f32
    %341 = vector.broadcast %cst_54 : f32 to vector<8x128xf32>
    %342 = arith.addf %341, %340 : vector<8x128xf32>
    %cst_55 = arith.constant 1.000000e+00 : f32
    %343 = vector.broadcast %cst_55 : f32 to vector<8x128xf32>
    %344 = arith.divf %343, %342 : vector<8x128xf32>
    %345 = arith.mulf %337, %344 : vector<8x128xf32>
    %346 = vector.extract_strided_slice %345 {offsets = [0, 0], sizes = [8, 64], strides = [1, 1]} : vector<8x128xf32> to vector<8x64xf32>
    %347 = vector.extract_strided_slice %345 {offsets = [0, 64], sizes = [8, 64], strides = [1, 1]} : vector<8x128xf32> to vector<8x64xf32>
    %348 = tpu.concatenate %346, %347 in 0 : vector<8x64xf32>, vector<8x64xf32> -> vector<16x64xf32>
    %349 = arith.truncf %348 : vector<16x64xf32> to vector<16x64xbf16>
    %c1_56 = arith.constant 1 : index
    %c0_57 = arith.constant 0 : index
    %c0_58 = arith.constant 0 : index
    %350 = vector.load %arg3[%c1_56, %c0_57, %c0_58] : memref<2x64x96xbf16, #tpu.memory_space<vmem>>, vector<1x64x96xbf16>
    %351 = vector.shape_cast %350 : vector<1x64x96xbf16> to vector<64x96xbf16>
    %cst_59 = arith.constant dense<0.000000e+00> : vector<16x96xf32>
    %352 = tpu.matmul %349, %351, %cst_59 {dimension_numbers = #tpu.dot_dimension_numbers<[1], [0], [0], [1], [0, 0, 1, 1], [], []>} : vector<16x64xbf16>, vector<64x96xbf16>, vector<16x96xf32> -> vector<16x96xf32>
    %353 = vector.extract_strided_slice %352 {offsets = [0, 0], sizes = [16, 16], strides = [1, 1]} : vector<16x96xf32> to vector<16x16xf32>
    %354 = vector.extract_strided_slice %352 {offsets = [0, 16], sizes = [16, 16], strides = [1, 1]} : vector<16x96xf32> to vector<16x16xf32>
    %355 = vector.extract_strided_slice %352 {offsets = [0, 32], sizes = [16, 64], strides = [1, 1]} : vector<16x96xf32> to vector<16x64xf32>
    %356 = vector.extract_strided_slice %355 {offsets = [0, 0], sizes = [8, 64], strides = [1, 1]} : vector<16x64xf32> to vector<8x64xf32>
    %357 = vector.extract_strided_slice %355 {offsets = [8, 0], sizes = [8, 64], strides = [1, 1]} : vector<16x64xf32> to vector<8x64xf32>
    %358 = tpu.concatenate %356, %357 in 1 : vector<8x64xf32>, vector<8x64xf32> -> vector<8x128xf32>
    %359 = vector.extract_strided_slice %288 {offsets = [6, 0], sizes = [1, 128], strides = [1, 1]} : vector<8x128xf32> to vector<1x128xf32>
    %360 = vector.broadcast %359 : vector<1x128xf32> to vector<8x128xf32>
    %361 = arith.addf %358, %360 : vector<8x128xf32>
    %cst_60 = arith.constant 0.000000e+00 : f32
    %362 = vector.broadcast %cst_60 : f32 to vector<8x128xf32>
    %363 = arith.maximumf %361, %362 : vector<8x128xf32>
    %364 = math.absf %361 : vector<8x128xf32>
    %cst_61 = arith.constant 0.000000e+00 : f32
    %365 = vector.broadcast %cst_61 : f32 to vector<8x128xf32>
    %366 = arith.subf %365, %364 : vector<8x128xf32>
    %367 = math.exp %366 : vector<8x128xf32>
    %cst_62 = arith.constant 1.000000e+00 : f32
    %368 = vector.broadcast %cst_62 : f32 to vector<8x128xf32>
    %369 = arith.addf %368, %367 : vector<8x128xf32>
    %370 = math.log %369 : vector<8x128xf32>
    %371 = arith.addf %363, %370 : vector<8x128xf32>
    %c1_63 = arith.constant 1 : index
    %c0_64 = arith.constant 0 : index
    %c0_65 = arith.constant 0 : index
    %372 = vector.load %arg5[%c1_63, %c0_64, %c0_65] : memref<2x16x128xf32, #tpu.memory_space<vmem>>, vector<1x16x128xf32>
    %373 = vector.shape_cast %372 : vector<1x16x128xf32> to vector<16x128xf32>
    %374 = vector.shape_cast %371 : vector<8x128xf32> to vector<8x1x128xf32>
    %375 = vector.shape_cast %373 : vector<16x128xf32> to vector<1x16x128xf32>
    %376 = vector.broadcast %374 : vector<8x1x128xf32> to vector<8x16x128xf32>
    %377 = vector.broadcast %375 : vector<1x16x128xf32> to vector<8x16x128xf32>
    %378 = arith.mulf %376, %377 : vector<8x16x128xf32>
    %379 = math.exp %378 : vector<8x16x128xf32>
    %380 = arith.mulf %371, %345 : vector<8x128xf32>
    %381 = vector.extract_strided_slice %353 {offsets = [0, 0], sizes = [8, 16], strides = [1, 1]} : vector<16x16xf32> to vector<8x16xf32>
    %382 = vector.shape_cast %381 : vector<8x16xf32> to vector<8x16x1xf32>
    %383 = vector.extract_strided_slice %380 {offsets = [0, 0], sizes = [8, 64], strides = [1, 1]} : vector<8x128xf32> to vector<8x64xf32>
    %384 = vector.shape_cast %383 : vector<8x64xf32> to vector<8x1x64xf32>
    %385 = vector.broadcast %382 : vector<8x16x1xf32> to vector<8x16x64xf32>
    %386 = vector.broadcast %384 : vector<8x1x64xf32> to vector<8x16x64xf32>
    %387 = arith.mulf %385, %386 : vector<8x16x64xf32>
    %388 = vector.extract_strided_slice %353 {offsets = [8, 0], sizes = [8, 16], strides = [1, 1]} : vector<16x16xf32> to vector<8x16xf32>
    %389 = vector.shape_cast %388 : vector<8x16xf32> to vector<8x16x1xf32>
    %390 = vector.extract_strided_slice %380 {offsets = [0, 64], sizes = [8, 64], strides = [1, 1]} : vector<8x128xf32> to vector<8x64xf32>
    %391 = vector.shape_cast %390 : vector<8x64xf32> to vector<8x1x64xf32>
    %392 = vector.broadcast %389 : vector<8x16x1xf32> to vector<8x16x64xf32>
    %393 = vector.broadcast %391 : vector<8x1x64xf32> to vector<8x16x64xf32>
    %394 = arith.mulf %392, %393 : vector<8x16x64xf32>
    %395 = tpu.concatenate %387, %394 in 2 : vector<8x16x64xf32>, vector<8x16x64xf32> -> vector<8x16x128xf32>
    %396 = vector.extract_strided_slice %354 {offsets = [0, 0], sizes = [8, 16], strides = [1, 1]} : vector<16x16xf32> to vector<8x16xf32>
    %397 = vector.shape_cast %396 : vector<8x16xf32> to vector<8x16x1xf32>
    %398 = vector.shape_cast %397 : vector<8x16x1xf32> to vector<8x16x1xf32>
    %399 = vector.broadcast %398 : vector<8x16x1xf32> to vector<8x16x64xf32>
    %400 = vector.extract_strided_slice %354 {offsets = [8, 0], sizes = [8, 16], strides = [1, 1]} : vector<16x16xf32> to vector<8x16xf32>
    %401 = vector.shape_cast %400 : vector<8x16xf32> to vector<8x16x1xf32>
    %402 = vector.shape_cast %401 : vector<8x16x1xf32> to vector<8x16x1xf32>
    %403 = vector.broadcast %402 : vector<8x16x1xf32> to vector<8x16x64xf32>
    %404 = tpu.concatenate %399, %403 in 2 : vector<8x16x64xf32>, vector<8x16x64xf32> -> vector<8x16x128xf32>
    %cst_66 = arith.constant 0.000000e+00 : f32
    %405 = vector.broadcast %cst_66 : f32 to vector<16x128xf32>
    %cst_67 = arith.constant 0.000000e+00 : f32
    %406 = vector.broadcast %cst_67 : f32 to vector<8x128xf32>
    %407 = vector.extract_strided_slice %379 {offsets = [0, 0, 0], sizes = [1, 16, 128], strides = [1, 1, 1]} : vector<8x16x128xf32> to vector<1x16x128xf32>
    %408 = vector.shape_cast %407 : vector<1x16x128xf32> to vector<16x128xf32>
    %409 = arith.mulf %408, %405 : vector<16x128xf32>
    %410 = vector.extract_strided_slice %395 {offsets = [0, 0, 0], sizes = [1, 16, 128], strides = [1, 1, 1]} : vector<8x16x128xf32> to vector<1x16x128xf32>
    %411 = vector.shape_cast %410 : vector<1x16x128xf32> to vector<16x128xf32>
    %412 = arith.addf %409, %411 : vector<16x128xf32>
    %413 = vector.extract_strided_slice %404 {offsets = [0, 0, 0], sizes = [1, 16, 128], strides = [1, 1, 1]} : vector<8x16x128xf32> to vector<1x16x128xf32>
    %414 = vector.shape_cast %413 : vector<1x16x128xf32> to vector<16x128xf32>
    %415 = arith.mulf %414, %412 : vector<16x128xf32>
    %cst_68 = arith.constant dense<0.000000e+00> : vector<128xf32>
    %416 = vector.multi_reduction <add>, %415, %cst_68 [0] : vector<16x128xf32> to vector<128xf32>
    %417 = vector.shape_cast %416 : vector<128xf32> to vector<1x128xf32>
    %c0_i32_69 = arith.constant 0 : i32
    %418 = vector.broadcast %c0_i32_69 : i32 to vector<8x1xi32>
    %419 = arith.cmpi eq, %1, %418 : vector<8x1xi32>
    %420 = vector.shape_cast %419 : vector<8x1xi1> to vector<8x1xi1>
    %421 = vector.broadcast %420 : vector<8x1xi1> to vector<8x128xi1>
    %422 = vector.shape_cast %417 : vector<1x128xf32> to vector<1x128xf32>
    %423 = vector.broadcast %422 : vector<1x128xf32> to vector<8x128xf32>
    %424 = arith.select %421, %423, %406 : vector<8x128xi1>, vector<8x128xf32>
    %425 = vector.extract_strided_slice %379 {offsets = [1, 0, 0], sizes = [1, 16, 128], strides = [1, 1, 1]} : vector<8x16x128xf32> to vector<1x16x128xf32>
    %426 = vector.shape_cast %425 : vector<1x16x128xf32> to vector<16x128xf32>
    %427 = arith.mulf %426, %412 : vector<16x128xf32>
    %428 = vector.extract_strided_slice %395 {offsets = [1, 0, 0], sizes = [1, 16, 128], strides = [1, 1, 1]} : vector<8x16x128xf32> to vector<1x16x128xf32>
    %429 = vector.shape_cast %428 : vector<1x16x128xf32> to vector<16x128xf32>
    %430 = arith.addf %427, %429 : vector<16x128xf32>
    %431 = vector.extract_strided_slice %404 {offsets = [1, 0, 0], sizes = [1, 16, 128], strides = [1, 1, 1]} : vector<8x16x128xf32> to vector<1x16x128xf32>
    %432 = vector.shape_cast %431 : vector<1x16x128xf32> to vector<16x128xf32>
    %433 = arith.mulf %432, %430 : vector<16x128xf32>
    %cst_70 = arith.constant dense<0.000000e+00> : vector<128xf32>
    %434 = vector.multi_reduction <add>, %433, %cst_70 [0] : vector<16x128xf32> to vector<128xf32>
    %435 = vector.shape_cast %434 : vector<128xf32> to vector<1x128xf32>
    %c1_i32_71 = arith.constant 1 : i32
    %436 = vector.broadcast %c1_i32_71 : i32 to vector<8x1xi32>
    %437 = arith.cmpi eq, %1, %436 : vector<8x1xi32>
    %438 = vector.shape_cast %437 : vector<8x1xi1> to vector<8x1xi1>
    %439 = vector.broadcast %438 : vector<8x1xi1> to vector<8x128xi1>
    %440 = vector.shape_cast %435 : vector<1x128xf32> to vector<1x128xf32>
    %441 = vector.broadcast %440 : vector<1x128xf32> to vector<8x128xf32>
    %442 = arith.select %439, %441, %424 : vector<8x128xi1>, vector<8x128xf32>
    %443 = vector.extract_strided_slice %379 {offsets = [2, 0, 0], sizes = [1, 16, 128], strides = [1, 1, 1]} : vector<8x16x128xf32> to vector<1x16x128xf32>
    %444 = vector.shape_cast %443 : vector<1x16x128xf32> to vector<16x128xf32>
    %445 = arith.mulf %444, %430 : vector<16x128xf32>
    %446 = vector.extract_strided_slice %395 {offsets = [2, 0, 0], sizes = [1, 16, 128], strides = [1, 1, 1]} : vector<8x16x128xf32> to vector<1x16x128xf32>
    %447 = vector.shape_cast %446 : vector<1x16x128xf32> to vector<16x128xf32>
    %448 = arith.addf %445, %447 : vector<16x128xf32>
    %449 = vector.extract_strided_slice %404 {offsets = [2, 0, 0], sizes = [1, 16, 128], strides = [1, 1, 1]} : vector<8x16x128xf32> to vector<1x16x128xf32>
    %450 = vector.shape_cast %449 : vector<1x16x128xf32> to vector<16x128xf32>
    %451 = arith.mulf %450, %448 : vector<16x128xf32>
    %cst_72 = arith.constant dense<0.000000e+00> : vector<128xf32>
    %452 = vector.multi_reduction <add>, %451, %cst_72 [0] : vector<16x128xf32> to vector<128xf32>
    %453 = vector.shape_cast %452 : vector<128xf32> to vector<1x128xf32>
    %c2_i32_73 = arith.constant 2 : i32
    %454 = vector.broadcast %c2_i32_73 : i32 to vector<8x1xi32>
    %455 = arith.cmpi eq, %1, %454 : vector<8x1xi32>
    %456 = vector.shape_cast %455 : vector<8x1xi1> to vector<8x1xi1>
    %457 = vector.broadcast %456 : vector<8x1xi1> to vector<8x128xi1>
    %458 = vector.shape_cast %453 : vector<1x128xf32> to vector<1x128xf32>
    %459 = vector.broadcast %458 : vector<1x128xf32> to vector<8x128xf32>
    %460 = arith.select %457, %459, %442 : vector<8x128xi1>, vector<8x128xf32>
    %461 = vector.extract_strided_slice %379 {offsets = [3, 0, 0], sizes = [1, 16, 128], strides = [1, 1, 1]} : vector<8x16x128xf32> to vector<1x16x128xf32>
    %462 = vector.shape_cast %461 : vector<1x16x128xf32> to vector<16x128xf32>
    %463 = arith.mulf %462, %448 : vector<16x128xf32>
    %464 = vector.extract_strided_slice %395 {offsets = [3, 0, 0], sizes = [1, 16, 128], strides = [1, 1, 1]} : vector<8x16x128xf32> to vector<1x16x128xf32>
    %465 = vector.shape_cast %464 : vector<1x16x128xf32> to vector<16x128xf32>
    %466 = arith.addf %463, %465 : vector<16x128xf32>
    %467 = vector.extract_strided_slice %404 {offsets = [3, 0, 0], sizes = [1, 16, 128], strides = [1, 1, 1]} : vector<8x16x128xf32> to vector<1x16x128xf32>
    %468 = vector.shape_cast %467 : vector<1x16x128xf32> to vector<16x128xf32>
    %469 = arith.mulf %468, %466 : vector<16x128xf32>
    %cst_74 = arith.constant dense<0.000000e+00> : vector<128xf32>
    %470 = vector.multi_reduction <add>, %469, %cst_74 [0] : vector<16x128xf32> to vector<128xf32>
    %471 = vector.shape_cast %470 : vector<128xf32> to vector<1x128xf32>
    %c3_i32_75 = arith.constant 3 : i32
    %472 = vector.broadcast %c3_i32_75 : i32 to vector<8x1xi32>
    %473 = arith.cmpi eq, %1, %472 : vector<8x1xi32>
    %474 = vector.shape_cast %473 : vector<8x1xi1> to vector<8x1xi1>
    %475 = vector.broadcast %474 : vector<8x1xi1> to vector<8x128xi1>
    %476 = vector.shape_cast %471 : vector<1x128xf32> to vector<1x128xf32>
    %477 = vector.broadcast %476 : vector<1x128xf32> to vector<8x128xf32>
    %478 = arith.select %475, %477, %460 : vector<8x128xi1>, vector<8x128xf32>
    %479 = vector.extract_strided_slice %379 {offsets = [4, 0, 0], sizes = [1, 16, 128], strides = [1, 1, 1]} : vector<8x16x128xf32> to vector<1x16x128xf32>
    %480 = vector.shape_cast %479 : vector<1x16x128xf32> to vector<16x128xf32>
    %481 = arith.mulf %480, %466 : vector<16x128xf32>
    %482 = vector.extract_strided_slice %395 {offsets = [4, 0, 0], sizes = [1, 16, 128], strides = [1, 1, 1]} : vector<8x16x128xf32> to vector<1x16x128xf32>
    %483 = vector.shape_cast %482 : vector<1x16x128xf32> to vector<16x128xf32>
    %484 = arith.addf %481, %483 : vector<16x128xf32>
    %485 = vector.extract_strided_slice %404 {offsets = [4, 0, 0], sizes = [1, 16, 128], strides = [1, 1, 1]} : vector<8x16x128xf32> to vector<1x16x128xf32>
    %486 = vector.shape_cast %485 : vector<1x16x128xf32> to vector<16x128xf32>
    %487 = arith.mulf %486, %484 : vector<16x128xf32>
    %cst_76 = arith.constant dense<0.000000e+00> : vector<128xf32>
    %488 = vector.multi_reduction <add>, %487, %cst_76 [0] : vector<16x128xf32> to vector<128xf32>
    %489 = vector.shape_cast %488 : vector<128xf32> to vector<1x128xf32>
    %c4_i32_77 = arith.constant 4 : i32
    %490 = vector.broadcast %c4_i32_77 : i32 to vector<8x1xi32>
    %491 = arith.cmpi eq, %1, %490 : vector<8x1xi32>
    %492 = vector.shape_cast %491 : vector<8x1xi1> to vector<8x1xi1>
    %493 = vector.broadcast %492 : vector<8x1xi1> to vector<8x128xi1>
    %494 = vector.shape_cast %489 : vector<1x128xf32> to vector<1x128xf32>
    %495 = vector.broadcast %494 : vector<1x128xf32> to vector<8x128xf32>
    %496 = arith.select %493, %495, %478 : vector<8x128xi1>, vector<8x128xf32>
    %497 = vector.extract_strided_slice %379 {offsets = [5, 0, 0], sizes = [1, 16, 128], strides = [1, 1, 1]} : vector<8x16x128xf32> to vector<1x16x128xf32>
    %498 = vector.shape_cast %497 : vector<1x16x128xf32> to vector<16x128xf32>
    %499 = arith.mulf %498, %484 : vector<16x128xf32>
    %500 = vector.extract_strided_slice %395 {offsets = [5, 0, 0], sizes = [1, 16, 128], strides = [1, 1, 1]} : vector<8x16x128xf32> to vector<1x16x128xf32>
    %501 = vector.shape_cast %500 : vector<1x16x128xf32> to vector<16x128xf32>
    %502 = arith.addf %499, %501 : vector<16x128xf32>
    %503 = vector.extract_strided_slice %404 {offsets = [5, 0, 0], sizes = [1, 16, 128], strides = [1, 1, 1]} : vector<8x16x128xf32> to vector<1x16x128xf32>
    %504 = vector.shape_cast %503 : vector<1x16x128xf32> to vector<16x128xf32>
    %505 = arith.mulf %504, %502 : vector<16x128xf32>
    %cst_78 = arith.constant dense<0.000000e+00> : vector<128xf32>
    %506 = vector.multi_reduction <add>, %505, %cst_78 [0] : vector<16x128xf32> to vector<128xf32>
    %507 = vector.shape_cast %506 : vector<128xf32> to vector<1x128xf32>
    %c5_i32_79 = arith.constant 5 : i32
    %508 = vector.broadcast %c5_i32_79 : i32 to vector<8x1xi32>
    %509 = arith.cmpi eq, %1, %508 : vector<8x1xi32>
    %510 = vector.shape_cast %509 : vector<8x1xi1> to vector<8x1xi1>
    %511 = vector.broadcast %510 : vector<8x1xi1> to vector<8x128xi1>
    %512 = vector.shape_cast %507 : vector<1x128xf32> to vector<1x128xf32>
    %513 = vector.broadcast %512 : vector<1x128xf32> to vector<8x128xf32>
    %514 = arith.select %511, %513, %496 : vector<8x128xi1>, vector<8x128xf32>
    %515 = vector.extract_strided_slice %379 {offsets = [6, 0, 0], sizes = [1, 16, 128], strides = [1, 1, 1]} : vector<8x16x128xf32> to vector<1x16x128xf32>
    %516 = vector.shape_cast %515 : vector<1x16x128xf32> to vector<16x128xf32>
    %517 = arith.mulf %516, %502 : vector<16x128xf32>
    %518 = vector.extract_strided_slice %395 {offsets = [6, 0, 0], sizes = [1, 16, 128], strides = [1, 1, 1]} : vector<8x16x128xf32> to vector<1x16x128xf32>
    %519 = vector.shape_cast %518 : vector<1x16x128xf32> to vector<16x128xf32>
    %520 = arith.addf %517, %519 : vector<16x128xf32>
    %521 = vector.extract_strided_slice %404 {offsets = [6, 0, 0], sizes = [1, 16, 128], strides = [1, 1, 1]} : vector<8x16x128xf32> to vector<1x16x128xf32>
    %522 = vector.shape_cast %521 : vector<1x16x128xf32> to vector<16x128xf32>
    %523 = arith.mulf %522, %520 : vector<16x128xf32>
    %cst_80 = arith.constant dense<0.000000e+00> : vector<128xf32>
    %524 = vector.multi_reduction <add>, %523, %cst_80 [0] : vector<16x128xf32> to vector<128xf32>
    %525 = vector.shape_cast %524 : vector<128xf32> to vector<1x128xf32>
    %c6_i32_81 = arith.constant 6 : i32
    %526 = vector.broadcast %c6_i32_81 : i32 to vector<8x1xi32>
    %527 = arith.cmpi eq, %1, %526 : vector<8x1xi32>
    %528 = vector.shape_cast %527 : vector<8x1xi1> to vector<8x1xi1>
    %529 = vector.broadcast %528 : vector<8x1xi1> to vector<8x128xi1>
    %530 = vector.shape_cast %525 : vector<1x128xf32> to vector<1x128xf32>
    %531 = vector.broadcast %530 : vector<1x128xf32> to vector<8x128xf32>
    %532 = arith.select %529, %531, %514 : vector<8x128xi1>, vector<8x128xf32>
    %533 = vector.extract_strided_slice %379 {offsets = [7, 0, 0], sizes = [1, 16, 128], strides = [1, 1, 1]} : vector<8x16x128xf32> to vector<1x16x128xf32>
    %534 = vector.shape_cast %533 : vector<1x16x128xf32> to vector<16x128xf32>
    %535 = arith.mulf %534, %520 : vector<16x128xf32>
    %536 = vector.extract_strided_slice %395 {offsets = [7, 0, 0], sizes = [1, 16, 128], strides = [1, 1, 1]} : vector<8x16x128xf32> to vector<1x16x128xf32>
    %537 = vector.shape_cast %536 : vector<1x16x128xf32> to vector<16x128xf32>
    %538 = arith.addf %535, %537 : vector<16x128xf32>
    %539 = vector.extract_strided_slice %404 {offsets = [7, 0, 0], sizes = [1, 16, 128], strides = [1, 1, 1]} : vector<8x16x128xf32> to vector<1x16x128xf32>
    %540 = vector.shape_cast %539 : vector<1x16x128xf32> to vector<16x128xf32>
    %541 = arith.mulf %540, %538 : vector<16x128xf32>
    %cst_82 = arith.constant dense<0.000000e+00> : vector<128xf32>
    %542 = vector.multi_reduction <add>, %541, %cst_82 [0] : vector<16x128xf32> to vector<128xf32>
    %543 = vector.shape_cast %542 : vector<128xf32> to vector<1x128xf32>
    %c7_i32_83 = arith.constant 7 : i32
    %544 = vector.broadcast %c7_i32_83 : i32 to vector<8x1xi32>
    %545 = arith.cmpi eq, %1, %544 : vector<8x1xi32>
    %546 = vector.shape_cast %545 : vector<8x1xi1> to vector<8x1xi1>
    %547 = vector.broadcast %546 : vector<8x1xi1> to vector<8x128xi1>
    %548 = vector.shape_cast %543 : vector<1x128xf32> to vector<1x128xf32>
    %549 = vector.broadcast %548 : vector<1x128xf32> to vector<8x128xf32>
    %550 = arith.select %547, %549, %532 : vector<8x128xi1>, vector<8x128xf32>
    %551 = vector.extract_strided_slice %288 {offsets = [7, 0], sizes = [1, 128], strides = [1, 1]} : vector<8x128xf32> to vector<1x128xf32>
    %552 = vector.broadcast %551 : vector<1x128xf32> to vector<8x128xf32>
    %553 = arith.mulf %345, %552 : vector<8x128xf32>
    %554 = arith.addf %550, %553 : vector<8x128xf32>
    %cst_84 = arith.constant 0.000000e+00 : f32
    %555 = vector.broadcast %cst_84 : f32 to vector<8x128xf32>
    %556 = arith.subf %555, %311 : vector<8x128xf32>
    %557 = math.exp %556 : vector<8x128xf32>
    %cst_85 = arith.constant 1.000000e+00 : f32
    %558 = vector.broadcast %cst_85 : f32 to vector<8x128xf32>
    %559 = arith.addf %558, %557 : vector<8x128xf32>
    %cst_86 = arith.constant 1.000000e+00 : f32
    %560 = vector.broadcast %cst_86 : f32 to vector<8x128xf32>
    %561 = arith.divf %560, %559 : vector<8x128xf32>
    %562 = arith.mulf %311, %561 : vector<8x128xf32>
    %563 = arith.mulf %554, %562 : vector<8x128xf32>
    %564 = vector.extract_strided_slice %563 {offsets = [0, 0], sizes = [8, 64], strides = [1, 1]} : vector<8x128xf32> to vector<8x64xf32>
    %565 = vector.extract_strided_slice %563 {offsets = [0, 64], sizes = [8, 64], strides = [1, 1]} : vector<8x128xf32> to vector<8x64xf32>
    %566 = tpu.concatenate %564, %565 in 0 : vector<8x64xf32>, vector<8x64xf32> -> vector<16x64xf32>
    %567 = arith.truncf %566 : vector<16x64xf32> to vector<16x64xbf16>
    %c1_87 = arith.constant 1 : index
    %c0_88 = arith.constant 0 : index
    %c0_89 = arith.constant 0 : index
    %568 = vector.load %arg4[%c1_87, %c0_88, %c0_89] : memref<2x64x32xbf16, #tpu.memory_space<vmem>>, vector<1x64x32xbf16>
    %569 = vector.shape_cast %568 : vector<1x64x32xbf16> to vector<64x32xbf16>
    %cst_90 = arith.constant dense<0.000000e+00> : vector<16x32xf32>
    %570 = tpu.matmul %567, %569, %cst_90 {dimension_numbers = #tpu.dot_dimension_numbers<[1], [0], [0], [1], [0, 0, 1, 1], [], []>} : vector<16x64xbf16>, vector<64x32xbf16>, vector<16x32xf32> -> vector<16x32xf32>
    %571 = arith.addf %570, %286 : vector<16x32xf32>
    %c2 = arith.constant 2 : index
    %c0_91 = arith.constant 0 : index
    %c0_92 = arith.constant 0 : index
    %572 = vector.load %arg1[%c2, %c0_91, %c0_92] : memref<3x8x128xf32, #tpu.memory_space<vmem>>, vector<1x8x128xf32>
    %573 = vector.shape_cast %572 : vector<1x8x128xf32> to vector<8x128xf32>
    %574 = vector.extract_strided_slice %573 {offsets = [0, 0], sizes = [1, 32], strides = [1, 1]} : vector<8x128xf32> to vector<1x32xf32>
    %575 = arith.mulf %571, %571 : vector<16x32xf32>
    %cst_93 = arith.constant dense<0.000000e+00> : vector<16xf32>
    %576 = vector.multi_reduction <add>, %575, %cst_93 [1] : vector<16x32xf32> to vector<16xf32>
    %577 = vector.shape_cast %576 : vector<16xf32> to vector<16x1xf32>
    %cst_94 = arith.constant 3.200000e+01 : f32
    %578 = vector.broadcast %cst_94 : f32 to vector<16x1xf32>
    %579 = arith.divf %577, %578 : vector<16x1xf32>
    %cst_95 = arith.constant 9.99999974E-6 : f32
    %580 = vector.broadcast %cst_95 : f32 to vector<16x1xf32>
    %581 = arith.addf %579, %580 : vector<16x1xf32>
    %582 = math.rsqrt %581 : vector<16x1xf32>
    %583 = vector.broadcast %582 : vector<16x1xf32> to vector<16x32xf32>
    %584 = arith.mulf %571, %583 : vector<16x32xf32>
    %585 = vector.broadcast %574 : vector<1x32xf32> to vector<16x32xf32>
    %586 = arith.mulf %584, %585 : vector<16x32xf32>
    %c0_96 = arith.constant 0 : index
    %c0_97 = arith.constant 0 : index
    %587 = vector.load %arg6[%c0_96, %c0_97] : memref<16x32xf32, #tpu.memory_space<vmem>>, vector<16x32xf32>
    tpu.vector_store %arg6[%c0_96, %c0_97], %586 {strides = array<i32>} : memref<16x32xf32, #tpu.memory_space<vmem>>, vector<16x32xf32>,
    return
  }
}

</mosaic_0001>

<bundles_post_ra>
// kernel: mixer_model_forward.1
= control target key start
LH: loop header
LB: loop body
LE: loop exit
PB: predicated region body
PF: predicated region fallthrough
CT: control target
= control target key end

     0   :  { %vm32_vm0 = vcmask 261120   ;;  %s3499_s0 = inlined_call_operand.vmem [shape: f32[16,32], index: 0, kind: input, shape index: {}]   ;;  %s3500_s1 = inlined_call_operand.vmem [shape: f32[3,8,128], index: 1, kind: input, shape index: {}]   ;;  %s3501_s2 = inlined_call_operand.vmem [shape: bf16[2,32,128], index: 2, kind: input, shape index: {}]   ;;  %s3502_s3 = inlined_call_operand.vmem [shape: bf16[2,64,96], index: 3, kind: input, shape index: {}]   ;;  %s3503_s4 = inlined_call_operand.vmem [shape: bf16[2,64,32], index: 4, kind: input, shape index: {}]   ;;  %s3504_s5 = inlined_call_operand.vmem [shape: f32[2,16,128], index: 5, kind: input, shape index: {}]   ;;  %s3505_s6 = inlined_call_operand.hbm [shape: f32[16,32], index: 6, kind: output, shape index: {}]  }
   0x1   :  { %v25_v0 = vld [vmem:[%s3499_s0] sm:$0xff]  ;;  %v26_v1 = vld [vmem:[%s3499_s0 + $0x8] sm:$0xff] }
   0x2   :  { %v30_v2 = vmul.f32 %v25_v0, %v25_v0  ;;  %v31_v3 = vmul.f32 %v26_v1, %v26_v1 }
   0x4   :  { %v33_v4 = vsel %vm32_vm0, %v30_v2, 0.0  ;;  %v36_v5 = vsel %vm32_vm0, %v31_v3, 0.0 }
   0x5   :  { %34 = vadd.xlane.f32.xlu0 %v33_v4 }
   0x9   :  { %37 = vadd.xlane.f32.xlu0 %v36_v5 }
   0xa   :  { %11 = vsyncpa [#allocation3], 0  ;;  %v2386_v6 = vld [vmem:[%s3501_s2] sm:$0xff]   ;;  %v3506_v7 = vmov 0.0   ;;  %vm2535_vm1 = vmmov 0   ;;  %v2387_v8 = vld [vmem:[%s3501_s2 + $0x8] sm:$0xff]   ;;  %v27_v14 = vlaneseq }
   0xb   :  { %2313 = vmatprep.subr.bf16.mxu0 %v3506_v7  ;;  %2317 = vmatprep.mubr.msk.bf16.mxu0 %vm2535_vm1, %v3506_v7  ;;  %v2608_v19 = vld [vmem:[%s3500_s1] sm:$0xff]  ;;  %s2536_s7 = smov 64   ;;  %v2389_v32 = vld [vmem:[%s3502_s3 + $0x8] sm:$0xff]   ;;  %v2390_v33 = vld [vmem:[%s3502_s3 + $0x10] sm:$0xff]   ;;  %vm119_vm2 = vcmask 523264   ;;  %vm129_vm3 = vcmask 1042432  }
   0xc   :  { %2314 = vmatpush3.bf16.msra.mxu0 %v2386_v6  ;;  %2321 = vmatprep.subr.bf16.mxu1 %v3506_v7  ;;  %v2600_v16 = vshrl.u32 %v27_v14, 7  ;;  %v2388_v31 = vld [vmem:[%s3502_s3] sm:$0xff]   ;;  %v2391_v34 = vld [vmem:[%s3502_s3 + $0x18] sm:$0xff]   ;;  %vm145_vm4 = vcmask 1046528   ;;  %vm159_vm5 = vcmask 1045504   ;;  %vm173_vm6 = vcmask 1044480  }
   0xd   :  { %2315 = vmatprep.subr.bf16.mxu0 %v3506_v7  ;;  %2329 = vmatprep.mubr.msk.bf16.mxu1 %vm2535_vm1, %v3506_v7  ;;  %s2537_s16 = smov 96   ;;  %s2538_s17 = smov 32  }
   0xe   :  { %3529 = vst [vmem:[#allocation5_spill] sm:$0xff] %v2600_v16  ;;  %v2603_v17 = vsub.s32 0, %v2600_v16  ;;  %2322 = vmatpush3.bf16.msra.mxu1 %v2388_v31  ;;  %v2638_v35 = vsub.s32 2, %v2600_v16  ;;  %v2641_v36 = vsub.s32 3, %v2600_v16  ;;  %v2644_v37 = vsub.s32 4, %v2600_v16  ;;  %s2540_s14 = smov [#allocation2]  }
   0xf   :  { %2323 = vmatprep.subr.bf16.mxu1 %v3506_v7  ;;  %v2647_v38 = vsub.s32 1, %v2600_v16  ;;  %v2661_v58 = vsub.s32 5, %v2600_v16 }
  0x10   :  { %2316 = vmatpush3.bf16.msra.mxu0 %v2387_v8  ;;  %v51_v21 = vrot.slane %v2608_v19, %v2603_v17  ;;  %3530 = vst [vmem:[#allocation6_spill] sm:$0xff] %v2638_v35  ;;  %3531 = vst [vmem:[#allocation7_spill] sm:$0xff] %v2641_v36  ;;  %v140_v39 = vrot.slane %v2608_v19, %v2638_v35  ;;  %v154_v40 = vrot.slane %v2608_v19, %v2641_v36 }
  0x11   :  { %2333 = vmatprep.subr.bf16.mxu0 %v3506_v7  ;;  %3532 = vst [vmem:[#allocation8_spill] sm:$0xff] %v2644_v37  ;;  %3533 = vst [vmem:[#allocation9_spill] sm:$0xff] %v2647_v38  ;;  %v168_v42 = vrot.slane %v2608_v19, %v2644_v37  ;;  %v134_v45 = vrot.slane %v2608_v19, %v2647_v38 }
  0x12   :  { %2324 = vmatpush3.bf16.msra.mxu1 %v2389_v32  ;;  %3534 = vst [vmem:[#allocation10_spill] sm:$0xff] %v2661_v58 }
  0x13   :  { %2325 = vmatprep.subr.bf16.mxu1 %v3506_v7 }
  0x16   :  { %2326 = vmatpush3.bf16.msra.mxu1 %v2390_v33 }
  0x17   :  { %2327 = vmatprep.subr.bf16.mxu1 %v3506_v7 }
  0x1a   :  { %2328 = vmatpush3.bf16.msra.mxu1 %v2391_v34 }
  0x1b   :  { %2345 = vmatprep.subr.bf16.mxu1 %v3506_v7 }
  0x92   :  { %v35_v9 = vpop.xlane.xlu0 %34 }
  0x93   :  { %v40_v10 = vmul.f32 0.03125, %v35_v9 }
  0x95   :  { %v42_v11 = vadd.f32 1e-05, %v40_v10 }
  0x96   :  { %v38_v12 = vpop.xlane.xlu0 %37 }
  0x97   :  { %2406 = vrsqrt.f32 %v42_v11  ;;  %v41_v13 = vmul.f32 0.03125, %v38_v12 }
  0x99   :  { %v43_v15 = vadd.f32 1e-05, %v41_v13 }
  0x9b   :  { %2408 = vrsqrt.f32 %v43_v15 }
  0xa1   :  { %v2407_v18 = vpop.eup %2406 }
  0xa2   :  { %v46_v20 = vmul.f32 %v2407_v18, %v25_v0 }
  0xa4   :  { %v52_v24 = vmul.f32 %v51_v21, %v46_v20 }
  0xa5   :  { %v2409_v22 = vpop.eup %2408 }
  0xa6   :  { %v47_v23 = vmul.f32 %v2409_v22, %v26_v1  ;;  %v182_v1 = vrot.slane %v2608_v19, %v2661_v58 }
  0xa8   :  { %v53_v25 = vmul.f32 %v51_v21, %v47_v23 }
  0xaa   :  { %v54_v26 = vpack.c.bf16 %v53_v25, %v52_v24 }
  0xac   :  { %2318 = vmatmul.mubr.msk.bf16.vlgmr.msra.gmra.mrb[0].mxu0 %vm32_vm0, %v54_v26 }
  0xad   :  { %2341 = vmatprep.mubr.msk.bf16.mxu0 %vm2535_vm1, %v3506_v7 }
 0x17f   :  { %v2615_v27 = vpop.f32.mrb[0].mxu0 }
 0x180   :  { %v2319_v28 = vpop.f32.mrb[1].mxu0 }
 0x181   :  { %v2617_v29 = vpop.f32.mrb[2].mxu0 }
 0x182   :  { %116 = vrot.lane.b32.xlu1 %v2617_v29, %s2536_s7  ;;  %v2320_v30 = vpop.f32.mrb[3].mxu0 }
 0x183   :  { %v2694_v30 = vsub.s32 7, %v2600_v16 }
 0x185   :  { %3537 = vst [vmem:[#allocation13_spill] sm:$0xff] %v2694_v30 }
 0x1f4   :  { %v117_v41 = vpop.permute.xlu1 %116 }
 0x1f5   :  { %v120_v43 = vsel %vm119_vm2, %v2615_v27, %v117_v41 }
 0x1f6   :  { %v127_v44 = vrot.slane %v120_v43, 5 }
 0x1f8   :  { %v130_v46 = vsel %vm129_vm3, 0.0, %v127_v44  ;;  %v142_v47 = vmul.f32 %v140_v39, %v127_v44  ;;  %v156_v48 = vmul.f32 %v154_v40, %v127_v44  ;;  %v170_v52 = vmul.f32 %v168_v42, %v127_v44 }
 0x1f9   :  { %v141_v49 = vmul.f32 %v140_v39, %v130_v46  ;;  %v155_v50 = vmul.f32 %v154_v40, %v130_v46  ;;  %v169_v51 = vmul.f32 %v168_v42, %v130_v46  ;;  %v135_v57 = vmul.f32 %v134_v45, %v130_v46 }
 0x1fa   :  { %v147_v53 = vrot.slane %v142_v47, 1  ;;  %v161_v56 = vrot.slane %v156_v48, 2  ;;  %v175_v61 = vrot.slane %v170_v52, 3 }
 0x1fb   :  { %v146_v54 = vrot.slane %v141_v49, 1  ;;  %v160_v55 = vrot.slane %v155_v50, 2  ;;  %v174_v60 = vrot.slane %v169_v51, 3 }
 0x1fd   :  { %v148_v59 = vsel %vm145_vm4, %v146_v54, %v147_v53  ;;  %v162_v63 = vsel %vm159_vm5, %v160_v55, %v161_v56  ;;  %v176_v2 = vsel %vm173_vm6, %v174_v60, %v175_v61 }
 0x1fe   :  { %v150_v62 = vadd.f32 %v148_v59, %v135_v57 }
 0x200   :  { %v164_v0 = vadd.f32 %v162_v63, %v150_v62 }
 0x202   :  { %v178_v3 = vadd.f32 %v176_v2, %v164_v0 }
 0x204   :  { %v183_v4 = vadd.f32 %v182_v1, %v178_v3 }
 0x206   :  { %v184_v5 = vsub.f32 0.0, %v183_v4 }
 0x208   :  { %v185_v6 = vmul.f32 1.442695, %v184_v5 }
 0x20a   :  { %2410 = vpow2.f32 %v185_v6 }
 0x214   :  { %v2411_v8 = vpop.eup %2410 }
 0x215   :  { %v187_v9 = vadd.f32 1.0, %v2411_v8  ;;  %v2392_v8 = vld [vmem:[%s3503_s4] sm:$0xff]  }
 0x216   :  { %2334 = vmatpush3.bf16.msra.mxu0 %v2392_v8 }
 0x217   :  { %2412 = vrcp.f32 %v187_v9  ;;  %2335 = vmatprep.subr.bf16.mxu0 %v3506_v7 }
 0x221   :  { %v2413_v10 = vpop.eup %2412 }
 0x222   :  { %v2668_v11 = vmul.f32 %v2413_v10, %v183_v4  ;;  %v2393_v10 = vld [vmem:[%s3503_s4 + $0x8] sm:$0xff]  }
 0x223   :  { %2336 = vmatpush3.bf16.msra.mxu0 %v2393_v10 }
 0x224   :  { %3535 = vst [vmem:[#allocation11_spill] sm:$0xff] %v2668_v11  ;;  %192 = vrot.lane.b32.xlu1 %v2668_v11, %s2536_s7  ;;  %2337 = vmatprep.subr.bf16.mxu0 %v3506_v7 }
 0x228   :  { %122 = vrot.lane.b32.xlu1 %v2615_v27, %s2536_s7  ;;  %v2690_v27 = vsub.s32 6, %v2600_v16 }
 0x22a   :  { %3536 = vst [vmem:[#allocation12_spill] sm:$0xff] %v2690_v27  ;;  %v284_v46 = vrot.slane %v2608_v19, %v2690_v27 }
 0x296   :  { %v193_v12 = vpop.permute.xlu1 %192 }
 0x297   :  { %v195_v13 = vpack.c.bf16 %v193_v12, %v2668_v11  ;;  %v2539_v12 = vmov 1966171168  }
 0x299   :  { %2330 = vmatmul.mubr.msk.bf16.vlgmr.msra.gmra.mrb[0].mxu1 %vm119_vm2, %v195_v13  ;;  %v300_v13 = vunpack.c.l.s4 %v2539_v12 }
 0x29a   :  { %2349 = vmatprep.mubr.msk.bf16.mxu1 %vm2535_vm1, %v3506_v7  ;;  %v2713_v44 = vpop.permute.xlu1 %122 }
 0x36c   :  { %v265_v14 = vpop.f32.mrb[0].mxu1 }
 0x36d   :  { %273 = vrot.lane.b32.xlu0 %v265_v14, %s2537_s16  ;;  %v2331_v15 = vpop.f32.mrb[1].mxu1  ;;  %v450_v21 = vrot.slane %v265_v14, %v2647_v38  ;;  %v439_v22 = vrot.slane %v265_v14, %v2603_v17  ;;  %v461_v23 = vrot.slane %v265_v14, %v2638_v35  ;;  %v472_v24 = vrot.slane %v265_v14, %v2641_v36 }
 0x36e   :  { %v2679_v18 = vpop.f32.mrb[2].mxu1  ;;  %v483_v25 = vrot.slane %v265_v14, %v2644_v37  ;;  %v494_v26 = vrot.slane %v265_v14, %v2661_v58  ;;  %v505_v28 = vrot.slane %v265_v14, %v2690_v27  ;;  %v516_v31 = vrot.slane %v265_v14, %v2694_v30 }
 0x36f   :  { %277 = vrot.lane.b32.xlu1 %v2679_v18, %s2538_s17  ;;  %v2332_v20 = vpop.f32.mrb[3].mxu1  ;;  %v644_v32 = vrot.slane %v2679_v18, %v2647_v38  ;;  %v655_v33 = vrot.slane %v2679_v18, %v2638_v35  ;;  %v666_v34 = vrot.slane %v2679_v18, %v2641_v36  ;;  %v633_v39 = vrot.slane %v2679_v18, %v2603_v17 }
 0x370   :  { %v677_v40 = vrot.slane %v2679_v18, %v2644_v37  ;;  %v688_v41 = vrot.slane %v2679_v18, %v2661_v58  ;;  %v699_v42 = vrot.slane %v2679_v18, %v2690_v27  ;;  %v710_v43 = vrot.slane %v2679_v18, %v2694_v30  ;;  %v2394_v20 = vld [vmem:[%s3503_s4 + $0x10] sm:$0xff]  }
 0x371   :  { %456 = vbcast.lane.b32.xlu0 %v450_v21, 264  ;;  %2338 = vmatpush3.bf16.msra.mxu0 %v2394_v20 }
 0x372   :  { %2339 = vmatprep.subr.bf16.mxu0 %v3506_v7 }
 0x373   :  { %441 = vbcast.lane.b32.xlu1 %v439_v22, 256 }
 0x375   :  { %467 = vbcast.lane.b32.xlu0 %v461_v23, 264 }
 0x377   :  { %445 = vbcast.lane.b32.xlu1 %v439_v22, 264 }
 0x379   :  { %478 = vbcast.lane.b32.xlu0 %v472_v24, 264 }
 0x37b   :  { %452 = vbcast.lane.b32.xlu1 %v450_v21, 256 }
 0x37d   :  { %489 = vbcast.lane.b32.xlu0 %v483_v25, 264 }
 0x37f   :  { %463 = vbcast.lane.b32.xlu1 %v461_v23, 256 }
 0x381   :  { %500 = vbcast.lane.b32.xlu0 %v494_v26, 264 }
 0x383   :  { %474 = vbcast.lane.b32.xlu1 %v472_v24, 256 }
 0x385   :  { %507 = vbcast.lane.b32.xlu0 %v505_v28, 256 }
 0x387   :  { %485 = vbcast.lane.b32.xlu1 %v483_v25, 256 }
 0x389   :  { %752 = vbcast.lane.b32.xlu0 %v439_v22, 272 }
 0x38b   :  { %496 = vbcast.lane.b32.xlu1 %v494_v26, 256 }
 0x38d   :  { %760 = vbcast.lane.b32.xlu0 %v450_v21, 272 }
 0x38f   :  { %511 = vbcast.lane.b32.xlu1 %v505_v28, 264 }
 0x391   :  { %768 = vbcast.lane.b32.xlu0 %v461_v23, 272 }
 0x393   :  { %756 = vbcast.lane.b32.xlu1 %v439_v22, 280 }
 0x395   :  { %518 = vbcast.lane.b32.xlu0 %v516_v31, 256 }
 0x397   :  { %764 = vbcast.lane.b32.xlu1 %v450_v21, 280  ;;  %v301_v21 = vunpack.c.0.s8 %v300_v13 }
 0x399   :  { %776 = vbcast.lane.b32.xlu0 %v472_v24, 272 }
 0x39b   :  { %772 = vbcast.lane.b32.xlu1 %v461_v23, 280 }
 0x39d   :  { %784 = vbcast.lane.b32.xlu0 %v483_v25, 272 }
 0x39f   :  { %522 = vbcast.lane.b32.xlu1 %v516_v31, 264 }
 0x3a1   :  { %792 = vbcast.lane.b32.xlu0 %v494_v26, 272 }
 0x3a3   :  { %780 = vbcast.lane.b32.xlu1 %v472_v24, 280 }
 0x3a5   :  { %800 = vbcast.lane.b32.xlu0 %v505_v28, 272 }
 0x3a7   :  { %788 = vbcast.lane.b32.xlu1 %v483_v25, 280 }
 0x3a9   :  { %808 = vbcast.lane.b32.xlu0 %v516_v31, 272 }
 0x3ab   :  { %796 = vbcast.lane.b32.xlu1 %v494_v26, 280  ;;  %v2395_v26 = vld [vmem:[%s3503_s4 + $0x18] sm:$0xff]  }
 0x3ac   :  { %2340 = vmatpush3.bf16.msra.mxu0 %v2395_v26 }
 0x3ad   :  { %650 = vbcast.lane.b32.xlu0 %v644_v32, 264  ;;  %2353 = vmatprep.subr.bf16.mxu0 %v3506_v7 }
 0x3af   :  { %804 = vbcast.lane.b32.xlu1 %v505_v28, 280  ;;  %v2775_v28 = vsub.s32 %v301_v21, %v2600_v16 }
 0x3b1   :  { %661 = vbcast.lane.b32.xlu0 %v655_v33, 264 }
 0x3b3   :  { %812 = vbcast.lane.b32.xlu1 %v516_v31, 280 }
 0x3b5   :  { %672 = vbcast.lane.b32.xlu0 %v666_v34, 264 }
 0x3b7   :  { %635 = vbcast.lane.b32.xlu1 %v633_v39, 256 }
 0x3b9   :  { %683 = vbcast.lane.b32.xlu0 %v677_v40, 264 }
 0x3bb   :  { %639 = vbcast.lane.b32.xlu1 %v633_v39, 264 }
 0x3bd   :  { %694 = vbcast.lane.b32.xlu0 %v688_v41, 264 }
 0x3bf   :  { %646 = vbcast.lane.b32.xlu1 %v644_v32, 256 }
 0x3c1   :  { %701 = vbcast.lane.b32.xlu0 %v699_v42, 256 }
 0x3c3   :  { %657 = vbcast.lane.b32.xlu1 %v655_v33, 256 }
 0x3c5   :  { %816 = vbcast.lane.b32.xlu0 %v633_v39, 272 }
 0x3c7   :  { %668 = vbcast.lane.b32.xlu1 %v666_v34, 256 }
 0x3c9   :  { %824 = vbcast.lane.b32.xlu0 %v644_v32, 272 }
 0x3cb   :  { %679 = vbcast.lane.b32.xlu1 %v677_v40, 256 }
 0x3cd   :  { %832 = vbcast.lane.b32.xlu0 %v655_v33, 272 }
 0x3cf   :  { %690 = vbcast.lane.b32.xlu1 %v688_v41, 256 }
 0x3d1   :  { %712 = vbcast.lane.b32.xlu0 %v710_v43, 256 }
 0x3d3   :  { %705 = vbcast.lane.b32.xlu1 %v699_v42, 264 }
 0x3d5   :  { %840 = vbcast.lane.b32.xlu0 %v666_v34, 272 }
 0x3d7   :  { %820 = vbcast.lane.b32.xlu1 %v633_v39, 280 }
 0x3d9   :  { %848 = vbcast.lane.b32.xlu0 %v677_v40, 272 }
 0x3db   :  { %828 = vbcast.lane.b32.xlu1 %v644_v32, 280 }
 0x3dd   :  { %856 = vbcast.lane.b32.xlu0 %v688_v41, 272 }
 0x3df   :  { %v274_v45 = vpop.permute.xlu0 %273  ;;  %836 = vbcast.lane.b32.xlu1 %v655_v33, 280 }
 0x3e1   :  { %864 = vbcast.lane.b32.xlu0 %v699_v42, 272  ;;  %v278_v47 = vpop.permute.xlu1 %277 }
 0x3e2   :  { %v280_v48 = vsel %vm119_vm2, %v274_v45, %v278_v47 }
 0x3e3   :  { %v285_v49 = vadd.f32 %v284_v46, %v280_v48  ;;  %v2718_v50 = vpop.permute.xlu0 %456  ;;  %716 = vbcast.lane.b32.xlu1 %v710_v43, 264  ;;  %v2799_v48 = vld [vmem:[%s3504_s5] sm:$0xff] }
 0x3e5   :  { %v287_v51 = vand.u32 2147483647, %v285_v49  ;;  %872 = vbcast.lane.b32.xlu0 %v710_v43, 272  ;;  %v2720_v52 = vpop.permute.xlu1 %441  ;;  %v286_v24 = vmax.f32 %v285_v49, 0.0  ;;  %v2804_v49 = vld [vmem:[%s3504_s5 + $0x8] sm:$0xff] }
 0x3e7   :  { %v288_v53 = vsub.f32 0.0, %v287_v51  ;;  %v2722_v54 = vpop.permute.xlu0 %467  ;;  %844 = vbcast.lane.b32.xlu1 %v666_v34, 280 }
 0x3e9   :  { %v289_v55 = vmul.f32 1.442695, %v288_v53  ;;  %v2724_v56 = vpop.permute.xlu1 %445 }
 0x3eb   :  { %2414 = vpow2.f32 %v289_v55  ;;  %v2726_v19 = vpop.permute.xlu0 %478  ;;  %852 = vbcast.lane.b32.xlu1 %v677_v40, 280 }
 0x3ed   :  { %v2728_v57 = vpop.permute.xlu1 %452 }
 0x3ef   :  { %v2730_v59 = vpop.permute.xlu0 %489  ;;  %860 = vbcast.lane.b32.xlu1 %v688_v41, 280 }
 0x3f1   :  { %v2732_v60 = vpop.permute.xlu1 %463 }
 0x3f3   :  { %v2734_v61 = vpop.permute.xlu0 %500  ;;  %868 = vbcast.lane.b32.xlu1 %v699_v42, 280 }
 0x3f5   :  { %v2415_v62 = vpop.eup %2414  ;;  %v2736_v63 = vpop.permute.xlu1 %474 }
 0x3f6   :  { %v291_v0 = vadd.f32 1.0, %v2415_v62 }
 0x3f7   :  { %v2738_v1 = vpop.permute.xlu0 %507  ;;  %876 = vbcast.lane.b32.xlu1 %v710_v43, 280 }
 0x3f8   :  { %2416 = vlog2.f32 %v291_v0 }
 0x3f9   :  { %v2740_v2 = vpop.permute.xlu1 %485 }
 0x3fb   :  { %v2742_v3 = vpop.permute.xlu0 %752 }
 0x3fd   :  { %v2744_v4 = vpop.permute.xlu1 %496 }
 0x3ff   :  { %v2746_v5 = vpop.permute.xlu0 %760 }
 0x401   :  { %v2748_v6 = vpop.permute.xlu1 %511 }
 0x402   :  { %v2417_v14 = vpop.eup %2416 }
 0x403   :  { %v2753_v9 = vpop.permute.xlu0 %768  ;;  %v293_v22 = vmul.f32 0.6931472, %v2417_v14 }
 0x405   :  { %v2759_v15 = vpop.permute.xlu1 %756  ;;  %v294_v31 = vadd.f32 %v293_v22, %v286_v24 }
 0x407   :  { %v2761_v18 = vpop.permute.xlu0 %518  ;;  %v305_v34 = vrot.slane %v294_v31, %v2775_v28  ;;  %v2814_v8 = vmul.f32 %v294_v31, %v2668_v11  ;;  %v298_v27 = vcombine.high %v294_v31, %v294_v31 }
 0x408   :  { %3538 = vst [vmem:[#allocation14_spill] sm:$0xff] %v2761_v18 }
 0x409   :  { %v2767_v23 = vpop.permute.xlu1 %764  ;;  %v321_v41 = vrot.slane %v305_v34, %v2775_v28  ;;  %v313_v45 = vcombine.high %v305_v34, %v305_v34  ;;  %v532_v22 = vrot.slane %v2814_v8, %v2775_v28 }
 0x40b   :  { %v2769_v25 = vpop.permute.xlu0 %776  ;;  %v350_v46 = vrot.slane %v321_v41, %v2603_v17  ;;  %v335_v53 = vrot.slane %v313_v45, %v2775_v28  ;;  %v343_v21 = vcombine.high %v321_v41, %v321_v41  ;;  %v540_v41 = vcombine.high %v532_v22, %v532_v22 }
 0x40d   :  { %v2778_v32 = vpop.permute.xlu1 %772  ;;  %v387_v55 = vmul.f32 %v350_v46, %v2799_v48  ;;  %v388_v0 = vmul.f32 %v350_v46, %v2804_v49  ;;  %v354_v12 = vrot.slane %v335_v53, %v2603_v17  ;;  %v358_v46 = vrot.slane %v343_v21, %v2603_v17 }
 0x40e   :  { %v345_v37 = vcombine.high %v335_v53, %v335_v53  ;;  %v312_v21 = vrot.slane %v298_v27, %v2775_v28 }
 0x40f   :  { %v2780_v33 = vpop.permute.xlu0 %784  ;;  %v403_v13 = vmul.f32 1.442695, %v387_v55  ;;  %v405_v20 = vmul.f32 1.442695, %v388_v0  ;;  %v389_v26 = vmul.f32 %v354_v12, %v2799_v48  ;;  %v390_v45 = vmul.f32 %v354_v12, %v2804_v49 }
 0x410   :  { %v548_v55 = vrot.slane %v532_v22, %v2775_v28  ;;  %v391_v36 = vmul.f32 %v358_v46, %v2799_v48  ;;  %v2838_v12 = vrot.slane %v540_v41, %v2775_v28  ;;  %v392_v31 = vmul.f32 %v358_v46, %v2804_v49 }
 0x411   :  { %v2784_v39 = vpop.permute.xlu1 %522  ;;  %2418 = vpow2.f32 %v403_v13  ;;  %v407_v0 = vmul.f32 1.442695, %v389_v26  ;;  %v409_v38 = vmul.f32 1.442695, %v390_v45  ;;  %v362_v53 = vrot.slane %v345_v37, %v2603_v17 }
 0x412   :  { %3539 = vst [vmem:[#allocation15_spill] sm:$0xff] %v2784_v39  ;;  %2420 = vpow2.f32 %v405_v20  ;;  %v577_v13 = vrot.slane %v548_v55, %v2603_v17  ;;  %v411_v30 = vmul.f32 1.442695, %v391_v36 }
 0x413   :  { %v2786_v40 = vpop.permute.xlu0 %792  ;;  %2422 = vpow2.f32 %v407_v0  ;;  %v393_v36 = vmul.f32 %v362_v53, %v2799_v48 }
 0x414   :  { %2424 = vpow2.f32 %v409_v38  ;;  %v614_v26 = vmul.f32 %v577_v13, %v2720_v52  ;;  %v2851_v38 = vrot.slane %v312_v21, %v2775_v28  ;;  %v413_v52 = vmul.f32 1.442695, %v392_v31 }
 0x415   :  { %v2789_v42 = vpop.permute.xlu1 %780  ;;  %2426 = vpow2.f32 %v411_v30  ;;  %v314_v31 = vcombine.high %v312_v21, %v312_v21 }
 0x416   :  { %2428 = vpow2.f32 %v413_v52  ;;  %v366_v30 = vrot.slane %v2851_v38, %v2603_v17 }
 0x417   :  { %v2791_v43 = vpop.permute.xlu0 %800 }
 0x419   :  { %v2794_v47 = vpop.permute.xlu1 %788 }
 0x41b   :  { %v2806_v51 = vpop.permute.xlu0 %808  ;;  %v2419_v22 = vpop.eup %2418 }
 0x41c   :  { %3540 = vst [vmem:[#allocation16_spill] sm:$0xff] %v2806_v51  ;;  %v2421_v16 = vpop.eup %2420  ;;  %v894_v0 = vmul.f32 0.0, %v2419_v22  ;;  %v394_v22 = vmul.f32 %v362_v53, %v2804_v49 }
 0x41d   :  { %v2810_v62 = vpop.permute.xlu1 %796 }
 0x41e   :  { %3541 = vst [vmem:[#allocation17_spill] sm:$0xff] %v2810_v62 }
 0x41f   :  { %v2816_v10 = vpop.permute.xlu0 %650 }
 0x421   :  { %v2819_v14 = vpop.permute.xlu1 %804 }
 0x422   :  { %3542 = vst [vmem:[#allocation18_spill] sm:$0xff] %v2819_v14  ;;  %v570_v14 = vcombine.high %v548_v55, %v548_v55 }
 0x423   :  { %v2823_v24 = vpop.permute.xlu0 %661 }
 0x425   :  { %v2826_v34 = vpop.permute.xlu1 %812 }
 0x426   :  { %3543 = vst [vmem:[#allocation19_spill] sm:$0xff] %v2826_v34  ;;  %v615_v34 = vmul.f32 %v577_v13, %v2724_v56  ;;  %v895_v56 = vmul.f32 0.0, %v2421_v16 }
 0x427   :  { %v2831_v7 = vpop.permute.xlu0 %672 }
 0x429   :  { %v636_v58 = vpop.permute.xlu1 %635 }
 0x42a   :  { %v718_v20 = vmul.f32 %v636_v58, %v577_v13  ;;  %v581_v58 = vrot.slane %v2838_v12, %v2603_v17 }
 0x42b   :  { %v2835_v35 = vpop.permute.xlu0 %683 }
 0x42c   :  { %v734_v27 = vsel %vm119_vm2, %v614_v26, %v718_v20  ;;  %v616_v20 = vmul.f32 %v581_v58, %v2728_v57  ;;  %v617_v53 = vmul.f32 %v581_v58, %v2718_v50  ;;  %v572_v50 = vcombine.high %v2838_v12, %v2838_v12 }
 0x42d   :  { %v640_v11 = vpop.permute.xlu1 %639  ;;  %v2857_v51 = vadd.f32 %v894_v0, %v734_v27  ;;  %v721_v27 = vmul.f32 %v2816_v10, %v581_v58  ;;  %v585_v0 = vrot.slane %v570_v14, %v2603_v17  ;;  %v395_v10 = vmul.f32 %v366_v30, %v2799_v48 }
 0x42e   :  { %v719_v45 = vmul.f32 %v640_v11, %v577_v13  ;;  %v589_v12 = vrot.slane %v572_v50, %v2603_v17 }
 0x42f   :  { %v2845_v41 = vpop.permute.xlu0 %694 }
 0x430   :  { %v735_v37 = vsel %vm119_vm2, %v615_v34, %v719_v45  ;;  %v2423_v34 = vpop.eup %2422  ;;  %v415_v45 = vmul.f32 1.442695, %v393_v36 }
 0x431   :  { %v647_v46 = vpop.permute.xlu1 %646  ;;  %v2860_v26 = vadd.f32 %v895_v56, %v735_v37  ;;  %v911_v57 = vmul.f32 %v2423_v34, %v2857_v51  ;;  %v417_v56 = vmul.f32 1.442695, %v394_v22  ;;  %v737_v34 = vsel %vm119_vm2, %v617_v53, %v721_v27 }
 0x432   :  { %v720_v11 = vmul.f32 %v647_v46, %v581_v58  ;;  %v2425_v46 = vpop.eup %2424  ;;  %2430 = vpow2.f32 %v415_v45  ;;  %v618_v58 = vmul.f32 %v585_v0, %v2732_v60  ;;  %v723_v53 = vmul.f32 %v2823_v24, %v585_v0 }
 0x433   :  { %v2855_v13 = vpop.permute.xlu0 %701  ;;  %v912_v37 = vmul.f32 %v2425_v46, %v2860_v26  ;;  %v2427_v14 = vpop.eup %2426  ;;  %v525_v46 = vcombine.high %v2814_v8, %v2814_v8  ;;  %2432 = vpow2.f32 %v417_v56 }
 0x434   :  { %v736_v16 = vsel %vm119_vm2, %v616_v20, %v720_v11  ;;  %v2876_v11 = vrot.slane %v314_v31, %v2775_v28  ;;  %v2429_v8 = vpop.eup %2428 }
 0x435   :  { %v658_v39 = vpop.permute.xlu1 %657  ;;  %v2873_v52 = vadd.f32 %v911_v57, %v736_v16  ;;  %v2887_v22 = vadd.f32 %v912_v37, %v737_v34  ;;  %v396_v16 = vmul.f32 %v366_v30, %v2804_v49  ;;  %v419_v57 = vmul.f32 1.442695, %v395_v10 }
 0x436   :  { %v722_v36 = vmul.f32 %v658_v39, %v585_v0  ;;  %v370_v45 = vrot.slane %v2876_v11, %v2603_v17  ;;  %v539_v60 = vrot.slane %v525_v46, %v2775_v28  ;;  %v619_v34 = vmul.f32 %v585_v0, %v2722_v54 }
 0x437   :  { %v2867_v55 = vpop.permute.xlu0 %816  ;;  %v928_v39 = vmul.f32 %v2427_v14, %v2873_v52  ;;  %v929_v37 = vmul.f32 %v2429_v8, %v2887_v22  ;;  %v421_v18 = vmul.f32 1.442695, %v396_v16  ;;  %2434 = vpow2.f32 %v419_v57 }
 0x438   :  { %v738_v27 = vsel %vm119_vm2, %v618_v58, %v722_v36  ;;  %v344_v36 = vcombine.high %v2851_v38, %v2851_v38  ;;  %v397_v24 = vmul.f32 %v370_v45, %v2799_v48  ;;  %v739_v50 = vsel %vm119_vm2, %v619_v34, %v723_v53 }
 0x439   :  { %v669_v21 = vpop.permute.xlu1 %668  ;;  %v2901_v30 = vadd.f32 %v928_v39, %v738_v27  ;;  %v2908_v58 = vrot.slane %v539_v60, %v2775_v28  ;;  %v620_v54 = vmul.f32 %v589_v12, %v2736_v63  ;;  %v2911_v0 = vadd.f32 %v929_v37, %v739_v50 }
 0x43a   :  { %v724_v10 = vmul.f32 %v669_v21, %v589_v12  ;;  %2436 = vpow2.f32 %v421_v18  ;;  %v398_v38 = vmul.f32 %v370_v45, %v2804_v49  ;;  %v374_v21 = vrot.slane %v344_v36, %v2603_v17 }
 0x43b   :  { %v2879_v20 = vpop.permute.xlu0 %824  ;;  %v423_v57 = vmul.f32 1.442695, %v397_v24  ;;  %v541_v53 = vcombine.high %v539_v60, %v539_v60  ;;  %v725_v34 = vmul.f32 %v2831_v7, %v589_v12  ;;  %v346_v63 = vcombine.high %v2876_v11, %v2876_v11 }
 0x43c   :  { %v2431_v46 = vpop.eup %2430  ;;  %v740_v27 = vsel %vm119_vm2, %v620_v54, %v724_v10  ;;  %v593_v37 = vrot.slane %v2908_v58, %v2603_v17  ;;  %v621_v45 = vmul.f32 %v589_v12, %v2726_v19  ;;  %v425_v24 = vmul.f32 1.442695, %v398_v38 }
 0x43d   :  { %v680_v31 = vpop.permute.xlu1 %679  ;;  %v945_v16 = vmul.f32 %v2431_v46, %v2901_v30  ;;  %v2433_v8 = vpop.eup %2432  ;;  %2438 = vpow2.f32 %v423_v57  ;;  %v399_v7 = vmul.f32 %v374_v21, %v2799_v48  ;;  %v2934_v60 = vsel %vm119_vm2, %v2713_v44, %v2617_v29 }
 0x43e   :  { %v946_v18 = vmul.f32 %v2433_v8, %v2911_v0  ;;  %v726_v50 = vmul.f32 %v680_v31, %v593_v37  ;;  %v2937_v11 = vrot.slane %v541_v53, %v2775_v28  ;;  %v741_v46 = vsel %vm119_vm2, %v621_v45, %v725_v34 }
 0x43f   :  { %v2899_v56 = vpop.permute.xlu0 %832  ;;  %v2928_v36 = vadd.f32 %v945_v16, %v740_v27  ;;  %v622_v19 = vmul.f32 %v593_v37, %v2740_v2  ;;  %v378_v12 = vrot.slane %v346_v63, %v2603_v17  ;;  %2440 = vpow2.f32 %v425_v24 }
 0x440   :  { %v2942_v16 = vadd.f32 %v946_v18, %v741_v46  ;;  %v400_v29 = vmul.f32 %v374_v21, %v2804_v49  ;;  %v1036_v44 = vsub.f32 0.0, %v2934_v60  ;;  %v427_v8 = vmul.f32 1.442695, %v399_v7 }
 0x441   :  { %v691_v14 = vpop.permute.xlu1 %690  ;;  %v2435_v54 = vpop.eup %2434  ;;  %v742_v57 = vsel %vm119_vm2, %v622_v19, %v726_v50  ;;  %v597_v2 = vrot.slane %v2937_v11, %v2603_v17  ;;  %v727_v34 = vmul.f32 %v2835_v35, %v593_v37  ;;  %v401_v63 = vmul.f32 %v378_v12, %v2799_v48 }
 0x442   :  { %v962_v38 = vmul.f32 %v2435_v54, %v2928_v36  ;;  %v623_v45 = vmul.f32 %v593_v37, %v2730_v59  ;;  %v429_v50 = vmul.f32 1.442695, %v400_v29  ;;  %v1037_v7 = vmul.f32 1.442695, %v1036_v44 }
 0x443   :  { %v2920_v62 = vpop.permute.xlu0 %712  ;;  %v571_v54 = vcombine.high %v2908_v58, %v2908_v58  ;;  %v728_v19 = vmul.f32 %v691_v14, %v597_v2  ;;  %2442 = vpow2.f32 %v427_v8  ;;  %v624_v35 = vmul.f32 %v597_v2, %v2744_v4 }
 0x444   :  { %v2437_v53 = vpop.eup %2436  ;;  %v2956_v24 = vadd.f32 %v962_v38, %v742_v57  ;;  %v878_v48 = vsel %vm119_vm2, %v2742_v3, %v2867_v55  ;;  %v743_v37 = vsel %vm119_vm2, %v623_v45, %v727_v34  ;;  %v431_v14 = vmul.f32 1.442695, %v401_v63 }
 0x445   :  { %v2913_v39 = vpop.permute.xlu1 %705  ;;  %v963_v18 = vmul.f32 %v2437_v53, %v2942_v16  ;;  %v880_v4 = vsel %vm119_vm2, %v2746_v5, %v2879_v20  ;;  %2444 = vpow2.f32 %v429_v50  ;;  %v601_v5 = vrot.slane %v571_v54, %v2603_v17 }
 0x446   :  { %2446 = vpow2.f32 %v1037_v7  ;;  %v729_v20 = vmul.f32 %v2845_v41, %v597_v2  ;;  %v573_v41 = vcombine.high %v2937_v11, %v2937_v11 }
 0x447   :  { %v841_v31 = vpop.permute.xlu0 %840  ;;  %v965_v29 = vadd.f32 %v963_v18, %v743_v37  ;;  %2448 = vpow2.f32 %v431_v14  ;;  %v731_v50 = vmul.f32 %v2913_v39, %v601_v5 }
 0x449   :  { %v821_v10 = vpop.permute.xlu1 %820 }
 0x44a   :  { %v879_v21 = vsel %vm119_vm2, %v2759_v15, %v821_v10  ;;  %v2439_v10 = vpop.eup %2438 }
 0x44b   :  { %v849_v59 = vpop.permute.xlu0 %848  ;;  %v899_v38 = vmul.f32 %v2860_v26, %v879_v21  ;;  %v979_v3 = vmul.f32 %v2439_v10, %v2956_v24  ;;  %v882_v26 = vsel %vm119_vm2, %v2753_v9, %v2899_v56  ;;  %v2441_v57 = vpop.eup %2440  ;;  %v625_v9 = vmul.f32 %v597_v2, %v2734_v61 }
 0x44c   :  { %v980_v53 = vmul.f32 %v2441_v57, %v965_v29  ;;  %v932_v56 = vmul.f32 %v2901_v30, %v882_v26  ;;  %v730_v2 = vmul.f32 %v2855_v13, %v601_v5 }
 0x44d   :  { %v829_v27 = vpop.permute.xlu1 %828  ;;  %v2443_v30 = vpop.eup %2442 }
 0x44e   :  { %v881_v15 = vsel %vm119_vm2, %v2767_v23, %v829_v27  ;;  %v402_v23 = vmul.f32 %v378_v12, %v2804_v49  ;;  %v898_v27 = vmul.f32 %v2857_v51, %v878_v48  ;;  %v915_v49 = vmul.f32 %v2873_v52, %v880_v4 }
 0x44f   :  { %v916_v44 = vmul.f32 %v2887_v22, %v881_v15  ;;  %v884_v51 = vsel %vm119_vm2, %v2769_v25, %v841_v31  ;;  %v857_v22 = vpop.permute.xlu0 %856  ;;  %v745_v25 = vsel %vm119_vm2, %v625_v9, %v729_v20  ;;  %v2445_v13 = vpop.eup %2444  ;;  %v3546_v9 = vld [vmem:[#allocation15_spill] sm:$0xff] }
 0x450   :  { %v900_v12 = vadd.f32 %v899_v38, %v898_v27  ;;  %v433_v18 = vmul.f32 1.442695, %v402_v23  ;;  %v982_v11 = vadd.f32 %v980_v53, %v745_v25  ;;  %v3544_v27 = vld [vmem:[#allocation17_spill] sm:$0xff] }
 0x451   :  { %v837_v46 = vpop.permute.xlu1 %836  ;;  %v917_v45 = vadd.f32 %v916_v44, %v915_v49 }
 0x452   :  { %v883_v58 = vsel %vm119_vm2, %v2778_v32, %v837_v46  ;;  %v744_v32 = vsel %vm119_vm2, %v624_v35, %v728_v19  ;;  %v901_v21 = vrot.slane %v900_v12, 4  ;;  %v886_v46 = vsel %vm119_vm2, %v2780_v33, %v849_v59 }
 0x453   :  { %v933_v8 = vmul.f32 %v2911_v0, %v883_v58  ;;  %v981_v34 = vadd.f32 %v979_v3, %v744_v32  ;;  %v949_v0 = vmul.f32 %v2928_v36, %v884_v51  ;;  %2450 = vpow2.f32 %v433_v18  ;;  %v865_v39 = vpop.permute.xlu0 %864  ;;  %v2447_v58 = vpop.eup %2446 }
 0x454   :  { %v626_v19 = vmul.f32 %v601_v5, %v2738_v1  ;;  %v627_v36 = vmul.f32 %v601_v5, %v2748_v6  ;;  %v918_v35 = vrot.slane %v917_v45, 4  ;;  %v966_v48 = vmul.f32 %v2956_v24, %v886_v46  ;;  %v2449_v5 = vpop.eup %2448 }
 0x455   :  { %v2974_v55 = vpop.permute.xlu1 %716  ;;  %v934_v31 = vadd.f32 %v933_v8, %v932_v56  ;;  %v996_v7 = vmul.f32 %v2443_v30, %v981_v34  ;;  %v888_v33 = vsel %vm119_vm2, %v2786_v40, %v857_v22  ;;  %v902_v10 = vadd.f32 %v901_v21, %v900_v12  ;;  %v3545_v12 = vld [vmem:[#allocation14_spill] sm:$0xff] }
 0x456   :  { %v746_v37 = vsel %vm119_vm2, %v626_v19, %v730_v2  ;;  %v997_v1 = vmul.f32 %v2445_v13, %v982_v11  ;;  %v605_v6 = vrot.slane %v573_v41, %v2603_v17  ;;  %v747_v14 = vsel %vm119_vm2, %v627_v36, %v731_v50  ;;  %v3549_v13 = vld [vmem:[#allocation19_spill] sm:$0xff] }
 0x457   :  { %v935_v59 = vrot.slane %v934_v31, 4  ;;  %v919_v24 = vadd.f32 %v918_v35, %v917_v45  ;;  %v983_v23 = vmul.f32 %v981_v34, %v888_v33  ;;  %v890_v40 = vsel %vm119_vm2, %v2791_v43, %v865_v39  ;;  %v873_v41 = vpop.permute.xlu0 %872 }
 0x458   :  { %v733_v32 = vmul.f32 %v2974_v55, %v605_v6  ;;  %v732_v20 = vmul.f32 %v2920_v62, %v605_v6  ;;  %v903_v8 = vrot.slane %v902_v10, 2  ;;  %v999_v51 = vadd.f32 %v997_v1, %v747_v14  ;;  %v3547_v55 = vld [vmem:[#allocation18_spill] sm:$0xff] }
 0x459   :  { %v845_v63 = vpop.permute.xlu1 %844  ;;  %v936_v26 = vadd.f32 %v935_v59, %v934_v31  ;;  %v628_v53 = vmul.f32 %v605_v6, %v3545_v12  ;;  %v629_v56 = vmul.f32 %v605_v6, %v3546_v9 }
 0x45a   :  { %v885_v52 = vsel %vm119_vm2, %v2789_v42, %v845_v63  ;;  %v920_v63 = vrot.slane %v919_v24, 2  ;;  %v904_v2 = vadd.f32 %v903_v8, %v902_v10 }
 0x45b   :  { %v950_v61 = vmul.f32 %v2942_v16, %v885_v52  ;;  %v749_v62 = vsel %vm119_vm2, %v629_v56, %v733_v32  ;;  %v748_v30 = vsel %vm119_vm2, %v628_v53, %v732_v20 }
 0x45c   :  { %v921_v36 = vadd.f32 %v920_v63, %v919_v24  ;;  %v905_v1 = vrot.slane %v904_v2, 1  ;;  %v2506_v63 = vld [vmem:[%s3500_s1] sm:$0xff] }
 0x45d   :  { %v951_v54 = vadd.f32 %v950_v61, %v949_v0  ;;  %v853_v42 = vpop.permute.xlu1 %852  ;;  %v2451_v25 = vpop.eup %2450  ;;  %v937_v0 = vrot.slane %v936_v26, 2 }
 0x45e   :  { %v887_v16 = vsel %vm119_vm2, %v2794_v47, %v853_v42  ;;  %v998_v47 = vadd.f32 %v996_v7, %v746_v37  ;;  %v1014_v46 = vmul.f32 %v2451_v25, %v999_v51 }
 0x45f   :  { %v967_v15 = vmul.f32 %v965_v29, %v887_v16  ;;  %v952_v38 = vrot.slane %v951_v54, 4  ;;  %v938_v33 = vadd.f32 %v937_v0, %v936_v26 }
 0x460   :  { %v1000_v18 = vmul.f32 %v998_v47, %v890_v40  ;;  %v1013_v45 = vmul.f32 %v2449_v5, %v998_v47  ;;  %v1016_v16 = vadd.f32 %v1014_v46, %v749_v62  ;;  %v922_v47 = vrot.slane %v921_v36, 1 }
 0x461   :  { %v968_v4 = vadd.f32 %v967_v15, %v966_v48  ;;  %v861_v3 = vpop.permute.xlu1 %860  ;;  %v953_v49 = vadd.f32 %v952_v38, %v951_v54  ;;  %v1039_v15 = vadd.f32 1.0, %v2447_v58 }
 0x462   :  { %v889_v29 = vsel %vm119_vm2, %v3544_v27, %v861_v3  ;;  %v1015_v35 = vadd.f32 %v1013_v45, %v748_v30  ;;  %v923_v58 = vadd.f32 %v922_v47, %v921_v36 }
 0x463   :  { %v969_v44 = vrot.slane %v968_v4, 4  ;;  %v984_v57 = vmul.f32 %v982_v11, %v889_v29  ;;  %v954_v21 = vrot.slane %v953_v49, 2  ;;  %v3548_v11 = vld [vmem:[#allocation16_spill] sm:$0xff]  ;;  %2452 = vrcp.f32 %v1039_v15 }
 0x464   :  { %v892_v50 = vsel %vm119_vm2, %v3548_v11, %v873_v41  ;;  %v906_v29 = vadd.f32 %v905_v1, %v904_v2 }
 0x465   :  { %v970_v22 = vadd.f32 %v969_v44, %v968_v4  ;;  %v985_v43 = vadd.f32 %v984_v57, %v983_v23  ;;  %v869_v34 = vpop.permute.xlu1 %868  ;;  %v1017_v37 = vmul.f32 %v1015_v35, %v892_v50  ;;  %v955_v10 = vadd.f32 %v954_v21, %v953_v49  ;;  %v3550_v44 = vld [vmem:[#allocation5_spill] sm:$0xff] }
 0x466   :  { %v891_v52 = vsel %vm119_vm2, %v3547_v55, %v869_v34  ;;  %v939_v23 = vrot.slane %v938_v33, 1  ;;  %vm907_vm7 = vcmp.eq.s32.totalorder %v3550_v44, 0  ;;  %vm924_vm8 = vcmp.eq.s32.totalorder %v3550_v44, 1 }
 0x467   :  { %v986_v31 = vrot.slane %v985_v43, 4  ;;  %v1001_v61 = vmul.f32 %v999_v51, %v891_v52  ;;  %v971_v7 = vrot.slane %v970_v22, 2  ;;  %v956_v40 = vrot.slane %v955_v10, 1 }
 0x468   :  { %v940_v20 = vadd.f32 %v939_v23, %v938_v33  ;;  %vm941_vm9 = vcmp.eq.s32.totalorder %v3550_v44, 2  ;;  %v910_v12 = vsel %vm907_vm7, %v906_v29, 0.0  ;;  %vm958_vm10 = vcmp.eq.s32.totalorder %v3550_v44, 3 }
 0x469   :  { %v987_v54 = vadd.f32 %v986_v31, %v985_v43  ;;  %v1002_v42 = vadd.f32 %v1001_v61, %v1000_v18  ;;  %v877_v19 = vpop.permute.xlu1 %876  ;;  %v972_v6 = vadd.f32 %v971_v7, %v970_v22  ;;  %v957_v49 = vadd.f32 %v956_v40, %v955_v10  ;;  %v3551_v18 = vld [vmem:[#allocation13_spill] sm:$0xff]  ;;  %v3552_v61 = vld [vmem:[#allocation11_spill] sm:$0xff]  ;;  %v2397_v10 = vld [vmem:[%s3501_s2 + $0x18] sm:$0xff]  }
 0x46a   :  { %v893_v48 = vsel %vm119_vm2, %v3549_v13, %v877_v19  ;;  %v927_v9 = vsel %vm924_vm8, %v923_v58, %v910_v12  ;;  %vm975_vm11 = vcmp.eq.s32.totalorder %v3550_v44, 4  ;;  %vm992_vm12 = vcmp.eq.s32.totalorder %v3550_v44, 5  ;;  %v2507_v19 = vld [vmem:[%s3499_s0] sm:$0xff]  ;;  %v2400_v12 = vld [vmem:[%s3502_s3 + $0x30] sm:$0xff]  }
 0x46b   :  { %v988_v59 = vrot.slane %v987_v54, 2  ;;  %v1003_v39 = vrot.slane %v1002_v42, 4  ;;  %v1018_v38 = vmul.f32 %v1016_v16, %v893_v48  ;;  %v973_v32 = vrot.slane %v972_v6, 1  ;;  %v2508_v16 = vld [vmem:[%s3499_s0 + $0x8] sm:$0xff]  ;;  %s2226_s0 = sshll.u32 %s2540_s14, 4  ;;  %s2227_s0 = int_to_ptr.vmem [resolvable:$true] %s2226_s0 }
 0x46c   :  { %v944_v43 = vsel %vm941_vm9, %v940_v20, %v927_v9  ;;  %v1033_v41 = vrot.slane %v2506_v63, %v3551_v18  ;;  %vm1009_vm13 = vcmp.eq.s32.totalorder %v3550_v44, 6  ;;  %vm1026_vm14 = vcmp.eq.s32.totalorder %v3550_v44, 7  ;;  %v3556_v9 = vld [vmem:[#allocation6_spill] sm:$0xff]  ;;  %v3558_v63 = vld [vmem:[#allocation8_spill] sm:$0xff]  ;;  %s2510_s15 = scalar_lea.vmem %s2227_s0, 256  ;;  %p2515_p1 = scmp.lt.s32.totalorder %s2227_s0, %s2227_s0 }
 0x46d   :  { %v1004_v14 = vadd.f32 %v1003_v39, %v1002_v42  ;;  %v989_v4 = vadd.f32 %v988_v59, %v987_v54  ;;  %v1019_v3 = vadd.f32 %v1018_v38, %v1017_v37  ;;  %v974_v53 = vadd.f32 %v973_v32, %v972_v6  ;;  %v2453_v25 = vpop.eup %2452  ;;  %v2396_v37 = vld [vmem:[%s3501_s2 + $0x10] sm:$0xff]   ;;  %p2511_p0 = scmp.ne.s32.totalorder %s2227_s0, %s2510_s15  ;;  %p2516_p2 = scmp.lt.s32.totalorder %s2510_s15, %s2510_s15 }
 0x46e   :  { %v961_v45 = vsel %vm958_vm10, %v957_v49, %v944_v43  ;;  %v1034_v30 = vmul.f32 %v1033_v41, %v3552_v61  ;;  %v1042_v21 = vmul.f32 %v2453_v25, %v2934_v60  ;;  %v3553_v54 = vmov 0.0   ;;  %2346 = vmatpush3.bf16.msra.mxu1 %v2396_v37  ;;  %v2398_v49 = vld [vmem:[%s3502_s3 + $0x20] sm:$0xff]  }
 0x46f   :  { %v1005_v24 = vrot.slane %v1004_v14, 2  ;;  %v1020_v27 = vrot.slane %v1019_v3, 4  ;;  %v990_v57 = vrot.slane %v989_v4, 1  ;;  %v978_v52 = vsel %vm975_vm11, %v974_v53, %v961_v45  ;;  %2347 = vmatprep.subr.bf16.mxu1 %v3553_v54  ;;  %v2401_v53 = vld [vmem:[%s3502_s3 + $0x38] sm:$0xff]   ;;  %p2517_p3 = por %p2516_p2, %p2515_p1 }
 0x471   :  { %v1006_v26 = vadd.f32 %v1005_v24, %v1004_v14  ;;  %v1021_v5 = vadd.f32 %v1020_v27, %v1019_v3  ;;  %v991_v56 = vadd.f32 %v990_v57, %v989_v4  ;;  %v3089_v3 = vld [vmem:[%s3500_s1 + $0x8] sm:$0xff]  ;;  %p2518_p4 = pnand %p2517_p3, %p2511_p0 }
 0x472   :  { %2348 = vmatpush3.bf16.msra.mxu1 %v2397_v10  ;;  %v1146_v40 = vrot.slane %v3089_v3, %v2603_v17  ;;  %v1260_v41 = vrot.slane %v3089_v3, %v3558_v63 }
 0x473   :  { %v1007_v8 = vrot.slane %v1006_v26, 1  ;;  %v1022_v51 = vrot.slane %v1021_v5, 2  ;;  %v995_v62 = vsel %vm992_vm12, %v991_v56, %v978_v52  ;;  %2365 = vmatprep.subr.bf16.mxu1 %v3553_v54  ;;  %v1234_v56 = vrot.slane %v3089_v3, %v3556_v9  ;;  %v3559_v52 = vld [vmem:[#allocation9_spill] sm:$0xff] }
 0x474   :  { %v1228_v25 = vrot.slane %v3089_v3, %v3559_v52 }
 0x475   :  { %v1023_v22 = vadd.f32 %v1022_v51, %v1021_v5  ;;  %v1008_v34 = vadd.f32 %v1007_v8, %v1006_v26  ;;  %v2399_v51 = vld [vmem:[%s3502_s3 + $0x28] sm:$0xff]  }
 0x477   :  { %v1024_v55 = vrot.slane %v1023_v22, 1  ;;  %v1012_v31 = vsel %vm1009_vm13, %v1008_v34, %v995_v62 }
 0x479   :  { %v1025_v0 = vadd.f32 %v1024_v55, %v1023_v22  ;;  %v3557_v22 = vld [vmem:[#allocation7_spill] sm:$0xff] }
 0x47a   :  { %v1247_v43 = vrot.slane %v3089_v3, %v3557_v22 }
 0x47b   :  { %v1029_v2 = vsel %vm1026_vm14, %v1025_v0, %v1012_v31 }
 0x47c   :  { %v1035_v46 = vadd.f32 %v1034_v30, %v1029_v2 }
 0x47e   :  { %v1043_v11 = vmul.f32 %v1042_v21, %v1035_v46 }
 0x480   :  { %1045 = vrot.lane.b32.xlu0 %v1043_v11, %s2536_s7 }
 0x4f2   :  { %v1046_v50 = vpop.permute.xlu0 %1045 }
 0x4f3   :  { %v1048_v7 = vpack.c.bf16 %v1046_v50, %v1043_v11 }
 0x4f5   :  { %2342 = vmatmul.mubr.msk.bf16.vlgmr.msra.gmra.mrb[4].mxu0 %vm119_vm2, %v1048_v7 }
 0x4f6   :  { %2361 = vmatprep.mubr.msk.bf16.mxu0 %vm2535_vm1, %v3553_v54  ;;  %2354 = vmatpush3.bf16.msra.mxu0 %v2398_v49 }
 0x4f7   :  { %2355 = vmatprep.subr.bf16.mxu0 %v3553_v54 }
 0x4fa   :  { %2356 = vmatpush3.bf16.msra.mxu0 %v2399_v51  ;;  %v3562_v51 = vld [vmem:[#allocation12_spill] sm:$0xff] }
 0x4fb   :  { %2357 = vmatprep.subr.bf16.mxu0 %v3553_v54 }
 0x4fe   :  { %2358 = vmatpush3.bf16.msra.mxu0 %v2400_v12 }
 0x4ff   :  { %2359 = vmatprep.subr.bf16.mxu0 %v3553_v54 }
 0x502   :  { %2360 = vmatpush3.bf16.msra.mxu0 %v2401_v53 }
 0x5c8   :  { %v1118_v42 = vpop.f32.mrb[4].mxu0 }
 0x5c9   :  { %v3065_v36 = vadd.f32 %v2507_v19, %v1118_v42  ;;  %v2343_v35 = vpop.f32.mrb[5].mxu0 }
 0x5ca   :  { %v1121_v60 = vpop.f32.mrb[6].mxu0 }
 0x5cb   :  { %3554 = vst [vmem:[#allocation17_spill] sm:$0xff] %v3065_v36  ;;  %v3070_v13 = vadd.f32 %v2508_v16, %v1121_v60  ;;  %v2344_v48 = vpop.f32.mrb[7].mxu0  ;;  %v1127_v33 = vmul.f32 %v3065_v36, %v3065_v36 }
 0x5cd   :  { %3555 = vst [vmem:[#allocation14_spill] sm:$0xff] %v3070_v13  ;;  %v1129_v59 = vsel %vm32_vm0, %v1127_v33, 0.0  ;;  %v1128_v39 = vmul.f32 %v3070_v13, %v3070_v13 }
 0x5ce   :  { %1130 = vadd.xlane.f32.xlu1 %v1129_v59  ;;  %v3560_v59 = vld [vmem:[#allocation10_spill] sm:$0xff] }
 0x5cf   :  { %v1132_v15 = vsel %vm32_vm0, %v1128_v39, 0.0  ;;  %v1273_v39 = vrot.slane %v3089_v3, %v3560_v59 }
 0x5d0   :  { %1133 = vadd.xlane.f32.xlu0 %v1132_v15 }
 0x65b   :  { %v1131_v38 = vpop.xlane.xlu1 %1130 }
 0x65c   :  { %v1135_v1 = vmul.f32 0.03125, %v1131_v38 }
 0x65d   :  { %v1134_v6 = vpop.xlane.xlu0 %1133 }
 0x65e   :  { %v1137_v14 = vadd.f32 1e-05, %v1135_v1  ;;  %v1136_v47 = vmul.f32 0.03125, %v1134_v6 }
 0x660   :  { %2454 = vrsqrt.f32 %v1137_v14  ;;  %v1138_v4 = vadd.f32 1e-05, %v1136_v47 }
 0x662   :  { %2456 = vrsqrt.f32 %v1138_v4 }
 0x66a   :  { %v2455_v23 = vpop.eup %2454 }
 0x66b   :  { %v1141_v24 = vmul.f32 %v2455_v23, %v3065_v36 }
 0x66c   :  { %v2457_v27 = vpop.eup %2456 }
 0x66d   :  { %v1142_v29 = vmul.f32 %v2457_v27, %v3070_v13  ;;  %v1147_v32 = vmul.f32 %v1146_v40, %v1141_v24 }
 0x66f   :  { %v1148_v26 = vmul.f32 %v1146_v40, %v1142_v29 }
 0x671   :  { %v1149_v58 = vpack.c.bf16 %v1148_v26, %v1147_v32 }
 0x673   :  { %2350 = vmatmul.mubr.msk.bf16.vlgmr.msra.gmra.mrb[4].mxu1 %vm32_vm0, %v1149_v58 }
 0x674   :  { %2373 = vmatprep.mubr.msk.bf16.mxu1 %vm2535_vm1, %v3553_v54 }
 0x746   :  { %v1204_v57 = vpop.f32.mrb[4].mxu1 }
 0x747   :  { %v2351_v5 = vpop.f32.mrb[5].mxu1 }
 0x748   :  { %v3098_v20 = vpop.f32.mrb[6].mxu1 }
 0x749   :  { %1212 = vrot.lane.b32.xlu0 %v3098_v20, %s2536_s7  ;;  %v2352_v8 = vpop.f32.mrb[7].mxu1 }
 0x7bb   :  { %v1213_v34 = vpop.permute.xlu0 %1212 }
 0x7bc   :  { %v1215_v45 = vsel %vm119_vm2, %v1204_v57, %v1213_v34 }
 0x7bd   :  { %v1222_v55 = vrot.slane %v1215_v45, 5 }
 0x7bf   :  { %v1224_v0 = vsel %vm129_vm3, 0.0, %v1222_v55  ;;  %v1236_v62 = vmul.f32 %v1234_v56, %v1222_v55  ;;  %v1249_v31 = vmul.f32 %v1247_v43, %v1222_v55  ;;  %v1262_v21 = vmul.f32 %v1260_v41, %v1222_v55 }
 0x7c0   :  { %v1235_v61 = vmul.f32 %v1234_v56, %v1224_v0  ;;  %v1248_v30 = vmul.f32 %v1247_v43, %v1224_v0  ;;  %v1261_v2 = vmul.f32 %v1260_v41, %v1224_v0  ;;  %v1229_v42 = vmul.f32 %v1228_v25, %v1224_v0 }
 0x7c1   :  { %v1240_v46 = vrot.slane %v1236_v62, 1  ;;  %v1253_v7 = vrot.slane %v1249_v31, 2  ;;  %v1266_v60 = vrot.slane %v1262_v21, 3  ;;  %v1376_v25 = vrot.slane %v3089_v3, %v3562_v51 }
 0x7c2   :  { %v1239_v11 = vrot.slane %v1235_v61, 1  ;;  %v1252_v50 = vrot.slane %v1248_v30, 2  ;;  %v1265_v35 = vrot.slane %v1261_v2, 3 }
 0x7c4   :  { %v1241_v19 = vsel %vm145_vm4, %v1239_v11, %v1240_v46  ;;  %v1254_v48 = vsel %vm159_vm5, %v1252_v50, %v1253_v7  ;;  %v1267_v15 = vsel %vm173_vm6, %v1265_v35, %v1266_v60 }
 0x7c5   :  { %v1243_v16 = vadd.f32 %v1241_v19, %v1229_v42 }
 0x7c7   :  { %v1256_v33 = vadd.f32 %v1254_v48, %v1243_v16 }
 0x7c9   :  { %v1269_v37 = vadd.f32 %v1267_v15, %v1256_v33 }
 0x7cb   :  { %v1274_v10 = vadd.f32 %v1273_v39, %v1269_v37  ;;  %v2402_v39 = vld [vmem:[%s3503_s4 + $0x20] sm:$0xff]   ;;  %v2403_v37 = vld [vmem:[%s3503_s4 + $0x28] sm:$0xff]  }
 0x7cc   :  { %2366 = vmatpush3.bf16.msra.mxu1 %v2402_v39 }
 0x7cd   :  { %v1275_v38 = vsub.f32 0.0, %v1274_v10  ;;  %2367 = vmatprep.subr.bf16.mxu1 %v3553_v54 }
 0x7cf   :  { %v1276_v1 = vmul.f32 1.442695, %v1275_v38 }
 0x7d0   :  { %2368 = vmatpush3.bf16.msra.mxu1 %v2403_v37 }
 0x7d1   :  { %2458 = vpow2.f32 %v1276_v1  ;;  %v2404_v1 = vld [vmem:[%s3503_s4 + $0x30] sm:$0xff]   ;;  %2369 = vmatprep.subr.bf16.mxu1 %v3553_v54 }
 0x7d4   :  { %2370 = vmatpush3.bf16.msra.mxu1 %v2404_v1 }
 0x7d5   :  { %2371 = vmatprep.subr.bf16.mxu1 %v3553_v54 }
 0x7db   :  { %v2459_v6 = vpop.eup %2458 }
 0x7dc   :  { %v1278_v14 = vadd.f32 1.0, %v2459_v6 }
 0x7de   :  { %2460 = vrcp.f32 %v1278_v14 }
 0x7e8   :  { %v2461_v47 = vpop.eup %2460 }
 0x7e9   :  { %v3132_v4 = vmul.f32 %v2461_v47, %v1274_v10 }
 0x7eb   :  { %3561 = vst [vmem:[#allocation15_spill] sm:$0xff] %v3132_v4  ;;  %1283 = vrot.lane.b32.xlu1 %v3132_v4, %s2536_s7 }
 0x7ef   :  { %1217 = vrot.lane.b32.xlu1 %v1204_v57, %s2536_s7 }
 0x85d   :  { %v1284_v23 = vpop.permute.xlu1 %1283 }
 0x85e   :  { %v1286_v24 = vpack.c.bf16 %v1284_v23, %v3132_v4 }
 0x860   :  { %2362 = vmatmul.mubr.msk.bf16.vlgmr.msra.gmra.mrb[8].mxu0 %vm119_vm2, %v1286_v24 }
 0x933   :  { %v1357_v40 = vpop.f32.mrb[8].mxu0 }
 0x934   :  { %1365 = vrot.lane.b32.xlu1 %v1357_v40, %s2537_s16  ;;  %v2363_v27 = vpop.f32.mrb[9].mxu0  ;;  %v1532_v26 = vrot.slane %v1357_v40, %v2603_v17  ;;  %v1543_v58 = vrot.slane %v1357_v40, %v3559_v52  ;;  %v1554_v57 = vrot.slane %v1357_v40, %v3556_v9  ;;  %v1565_v5 = vrot.slane %v1357_v40, %v3557_v22 }
 0x935   :  { %v3140_v29 = vpop.f32.mrb[10].mxu0  ;;  %v1576_v8 = vrot.slane %v1357_v40, %v3558_v63  ;;  %v1587_v49 = vrot.slane %v1357_v40, %v3560_v59  ;;  %v1598_v12 = vrot.slane %v1357_v40, %v3562_v51  ;;  %v1609_v53 = vrot.slane %v1357_v40, %v3551_v18  ;;  %v2405_v40 = vld [vmem:[%s3503_s4 + $0x38] sm:$0xff]  }
 0x936   :  { %1369 = vrot.lane.b32.xlu0 %v3140_v29, %s2538_s17  ;;  %v2364_v32 = vpop.f32.mrb[11].mxu0  ;;  %v1726_v56 = vrot.slane %v3140_v29, %v2603_v17  ;;  %v1737_v43 = vrot.slane %v3140_v29, %v3559_v52  ;;  %v1748_v34 = vrot.slane %v3140_v29, %v3556_v9  ;;  %v1759_v41 = vrot.slane %v3140_v29, %v3557_v22 }
 0x937   :  { %v1770_v45 = vrot.slane %v3140_v29, %v3558_v63  ;;  %v1781_v55 = vrot.slane %v3140_v29, %v3560_v59  ;;  %v1792_v9 = vrot.slane %v3140_v29, %v3562_v51  ;;  %v1803_v22 = vrot.slane %v3140_v29, %v3551_v18  ;;  %v3168_v63 = vpop.permute.xlu1 %1217  ;;  %2372 = vmatpush3.bf16.msra.mxu1 %v2405_v40 }
 0x938   :  { %1534 = vbcast.lane.b32.xlu1 %v1532_v26, 256 }
 0x93a   :  { %1538 = vbcast.lane.b32.xlu0 %v1532_v26, 264 }
 0x93c   :  { %1545 = vbcast.lane.b32.xlu1 %v1543_v58, 256 }
 0x93e   :  { %1549 = vbcast.lane.b32.xlu0 %v1543_v58, 264 }
 0x940   :  { %1556 = vbcast.lane.b32.xlu1 %v1554_v57, 256 }
 0x942   :  { %1560 = vbcast.lane.b32.xlu0 %v1554_v57, 264 }
 0x944   :  { %1567 = vbcast.lane.b32.xlu1 %v1565_v5, 256 }
 0x946   :  { %1571 = vbcast.lane.b32.xlu0 %v1565_v5, 264 }
 0x948   :  { %1578 = vbcast.lane.b32.xlu1 %v1576_v8, 256 }
 0x94a   :  { %1582 = vbcast.lane.b32.xlu0 %v1576_v8, 264 }
 0x94c   :  { %1589 = vbcast.lane.b32.xlu1 %v1587_v49, 256 }
 0x94e   :  { %1593 = vbcast.lane.b32.xlu0 %v1587_v49, 264 }
 0x950   :  { %1604 = vbcast.lane.b32.xlu1 %v1598_v12, 264 }
 0x952   :  { %1600 = vbcast.lane.b32.xlu0 %v1598_v12, 256 }
 0x954   :  { %1849 = vbcast.lane.b32.xlu1 %v1532_v26, 280 }
 0x956   :  { %1845 = vbcast.lane.b32.xlu0 %v1532_v26, 272 }
 0x958   :  { %1857 = vbcast.lane.b32.xlu1 %v1543_v58, 280 }
 0x95a   :  { %1853 = vbcast.lane.b32.xlu0 %v1543_v58, 272 }
 0x95c   :  { %1865 = vbcast.lane.b32.xlu1 %v1554_v57, 280 }
 0x95e   :  { %1861 = vbcast.lane.b32.xlu0 %v1554_v57, 272 }
 0x960   :  { %1615 = vbcast.lane.b32.xlu1 %v1609_v53, 264 }
 0x962   :  { %1611 = vbcast.lane.b32.xlu0 %v1609_v53, 256 }
 0x964   :  { %1873 = vbcast.lane.b32.xlu1 %v1565_v5, 280 }
 0x966   :  { %1869 = vbcast.lane.b32.xlu0 %v1565_v5, 272 }
 0x968   :  { %1881 = vbcast.lane.b32.xlu1 %v1576_v8, 280 }
 0x96a   :  { %1877 = vbcast.lane.b32.xlu0 %v1576_v8, 272 }
 0x96c   :  { %1889 = vbcast.lane.b32.xlu1 %v1587_v49, 280 }
 0x96e   :  { %1885 = vbcast.lane.b32.xlu0 %v1587_v49, 272 }
 0x970   :  { %1897 = vbcast.lane.b32.xlu1 %v1598_v12, 280 }
 0x972   :  { %1893 = vbcast.lane.b32.xlu0 %v1598_v12, 272 }
 0x974   :  { %1905 = vbcast.lane.b32.xlu1 %v1609_v53, 280 }
 0x976   :  { %1901 = vbcast.lane.b32.xlu0 %v1609_v53, 272  ;;  %v3241_v53 = vld [vmem:[%s3504_s5 + $0x18] sm:$0xff] }
 0x978   :  { %1728 = vbcast.lane.b32.xlu1 %v1726_v56, 256 }
 0x97a   :  { %1732 = vbcast.lane.b32.xlu0 %v1726_v56, 264 }
 0x97c   :  { %1739 = vbcast.lane.b32.xlu1 %v1737_v43, 256 }
 0x97e   :  { %1743 = vbcast.lane.b32.xlu0 %v1737_v43, 264 }
 0x980   :  { %1750 = vbcast.lane.b32.xlu1 %v1748_v34, 256 }
 0x982   :  { %1754 = vbcast.lane.b32.xlu0 %v1748_v34, 264 }
 0x984   :  { %1761 = vbcast.lane.b32.xlu1 %v1759_v41, 256 }
 0x986   :  { %1765 = vbcast.lane.b32.xlu0 %v1759_v41, 264 }
 0x988   :  { %1772 = vbcast.lane.b32.xlu1 %v1770_v45, 256 }
 0x98a   :  { %1776 = vbcast.lane.b32.xlu0 %v1770_v45, 264 }
 0x98c   :  { %1783 = vbcast.lane.b32.xlu1 %v1781_v55, 256 }
 0x98e   :  { %1787 = vbcast.lane.b32.xlu0 %v1781_v55, 264 }
 0x990   :  { %1798 = vbcast.lane.b32.xlu1 %v1792_v9, 264 }
 0x992   :  { %1794 = vbcast.lane.b32.xlu0 %v1792_v9, 256 }
 0x994   :  { %1913 = vbcast.lane.b32.xlu1 %v1726_v56, 280 }
 0x996   :  { %1909 = vbcast.lane.b32.xlu0 %v1726_v56, 272  ;;  %v3246_v56 = vld [vmem:[%s3504_s5 + $0x10] sm:$0xff] }
 0x998   :  { %1921 = vbcast.lane.b32.xlu1 %v1737_v43, 280 }
 0x99a   :  { %1917 = vbcast.lane.b32.xlu0 %v1737_v43, 272 }
 0x99c   :  { %1929 = vbcast.lane.b32.xlu1 %v1748_v34, 280 }
 0x99e   :  { %1925 = vbcast.lane.b32.xlu0 %v1748_v34, 272 }
 0x9a0   :  { %1809 = vbcast.lane.b32.xlu1 %v1803_v22, 264 }
 0x9a2   :  { %1805 = vbcast.lane.b32.xlu0 %v1803_v22, 256 }
 0x9a4   :  { %1937 = vbcast.lane.b32.xlu1 %v1759_v41, 280 }
 0x9a6   :  { %v1366_v52 = vpop.permute.xlu1 %1365  ;;  %1933 = vbcast.lane.b32.xlu0 %v1759_v41, 272 }
 0x9a8   :  { %v1370_v0 = vpop.permute.xlu0 %1369  ;;  %1945 = vbcast.lane.b32.xlu1 %v1770_v45, 280 }
 0x9a9   :  { %v1372_v62 = vsel %vm119_vm2, %v1366_v52, %v1370_v0 }
 0x9aa   :  { %v1377_v31 = vadd.f32 %v1376_v25, %v1372_v62  ;;  %v3173_v61 = vpop.permute.xlu1 %1534  ;;  %1941 = vbcast.lane.b32.xlu0 %v1770_v45, 272 }
 0x9ac   :  { %v1379_v30 = vand.u32 2147483647, %v1377_v31  ;;  %v3175_v2 = vpop.permute.xlu0 %1538  ;;  %1953 = vbcast.lane.b32.xlu1 %v1781_v55, 280  ;;  %v1378_v47 = vmax.f32 %v1377_v31, 0.0 }
 0x9ae   :  { %v1380_v21 = vsub.f32 0.0, %v1379_v30  ;;  %v3177_v46 = vpop.permute.xlu1 %1545  ;;  %1949 = vbcast.lane.b32.xlu0 %v1781_v55, 272 }
 0x9b0   :  { %v1381_v11 = vmul.f32 1.442695, %v1380_v21  ;;  %v3179_v50 = vpop.permute.xlu0 %1549  ;;  %1961 = vbcast.lane.b32.xlu1 %v1792_v9, 280 }
 0x9b2   :  { %2462 = vpow2.f32 %v1381_v11  ;;  %v3181_v3 = vpop.permute.xlu1 %1556  ;;  %1957 = vbcast.lane.b32.xlu0 %v1792_v9, 272 }
 0x9b4   :  { %v3183_v7 = vpop.permute.xlu0 %1560  ;;  %1969 = vbcast.lane.b32.xlu1 %v1803_v22, 280 }
 0x9b6   :  { %v3185_v42 = vpop.permute.xlu1 %1567  ;;  %1965 = vbcast.lane.b32.xlu0 %v1803_v22, 272 }
 0x9b8   :  { %v3187_v19 = vpop.permute.xlu0 %1571 }
 0x9ba   :  { %v3189_v35 = vpop.permute.xlu1 %1578 }
 0x9bc   :  { %v2463_v60 = vpop.eup %2462  ;;  %v3191_v16 = vpop.permute.xlu0 %1582 }
 0x9bd   :  { %v1383_v48 = vadd.f32 1.0, %v2463_v60 }
 0x9be   :  { %v3193_v33 = vpop.permute.xlu1 %1589 }
 0x9bf   :  { %2464 = vlog2.f32 %v1383_v48 }
 0x9c0   :  { %v3195_v59 = vpop.permute.xlu0 %1593 }
 0x9c2   :  { %v3200_v15 = vpop.permute.xlu1 %1604 }
 0x9c4   :  { %v3206_v10 = vpop.permute.xlu0 %1600 }
 0x9c6   :  { %v3208_v38 = vpop.permute.xlu1 %1849 }
 0x9c8   :  { %v3214_v6 = vpop.permute.xlu0 %1845 }
 0x9c9   :  { %v2465_v14 = vpop.eup %2464 }
 0x9ca   :  { %v1385_v23 = vmul.f32 0.6931472, %v2465_v14  ;;  %v3216_v24 = vpop.permute.xlu1 %1857 }
 0x9cc   :  { %v1386_v27 = vadd.f32 %v1385_v23, %v1378_v47  ;;  %v3222_v29 = vpop.permute.xlu0 %1853 }
 0x9ce   :  { %v1398_v32 = vrot.slane %v1386_v27, %v2775_v28  ;;  %v3225_v26 = vpop.permute.xlu1 %1865  ;;  %v1391_v43 = vcombine.high %v1386_v27, %v1386_v27  ;;  %v1528_v34 = vmul.f32 %v1386_v27, %v3132_v4 }
 0x9d0   :  { %v3227_v58 = vpop.permute.xlu0 %1861  ;;  %v1414_v57 = vrot.slane %v1398_v32, %v2775_v28  ;;  %v1406_v5 = vcombine.high %v1398_v32, %v1398_v32  ;;  %v1405_v0 = vrot.slane %v1391_v43, %v2775_v28  ;;  %v1625_v62 = vrot.slane %v1528_v34, %v2775_v28 }
 0x9d2   :  { %v3230_v8 = vpop.permute.xlu1 %1615  ;;  %v1443_v51 = vrot.slane %v1414_v57, %v2603_v17  ;;  %v1428_v54 = vrot.slane %v1406_v5, %v2775_v28  ;;  %v1436_v45 = vcombine.high %v1414_v57, %v1414_v57  ;;  %v1407_v37 = vcombine.high %v1405_v0, %v1405_v0 }
 0x9d3   :  { %v1421_v1 = vrot.slane %v1405_v0, %v2775_v28  ;;  %v1641_v14 = vrot.slane %v1625_v62, %v2775_v28  ;;  %v1633_v47 = vcombine.high %v1625_v62, %v1625_v62  ;;  %v1618_v57 = vcombine.high %v1528_v34, %v1528_v34 }
 0x9d4   :  { %v3232_v49 = vpop.permute.xlu0 %1611  ;;  %v1481_v55 = vmul.f32 %v3241_v53, %v1443_v51  ;;  %v1480_v9 = vmul.f32 %v3246_v56, %v1443_v51  ;;  %v1447_v22 = vrot.slane %v1428_v54, %v2603_v17  ;;  %v1438_v30 = vcombine.high %v1428_v54, %v1428_v54 }
 0x9d5   :  { %v1451_v21 = vrot.slane %v1436_v45, %v2603_v17  ;;  %v3275_v43 = vrot.slane %v1407_v37, %v2775_v28  ;;  %v1437_v45 = vcombine.high %v1421_v1, %v1421_v1  ;;  %v3284_v62 = vrot.slane %v1618_v57, %v2775_v28 }
 0x9d6   :  { %v3236_v12 = vpop.permute.xlu1 %1873  ;;  %v1496_v25 = vmul.f32 1.442695, %v1480_v9  ;;  %v1498_v11 = vmul.f32 1.442695, %v1481_v55  ;;  %v1482_v48 = vmul.f32 %v3246_v56, %v1447_v22  ;;  %v1483_v39 = vmul.f32 %v3241_v53, %v1447_v22 }
 0x9d7   :  { %v1455_v40 = vrot.slane %v1438_v30, %v2603_v17  ;;  %v1484_v32 = vmul.f32 %v3246_v56, %v1451_v21  ;;  %v1485_v54 = vmul.f32 %v3241_v53, %v1451_v21  ;;  %v1459_v55 = vrot.slane %v1421_v1, %v2603_v17 }
 0x9d8   :  { %v3249_v41 = vpop.permute.xlu0 %1869  ;;  %2466 = vpow2.f32 %v1496_v25  ;;  %v1500_v27 = vmul.f32 1.442695, %v1482_v48  ;;  %v1502_v51 = vmul.f32 1.442695, %v1483_v39  ;;  %v1655_v9 = vrot.slane %v1633_v47, %v2775_v28 }
 0x9d9   :  { %2468 = vpow2.f32 %v1498_v11  ;;  %v1670_v25 = vrot.slane %v1641_v14, %v2603_v17  ;;  %v1504_v0 = vmul.f32 1.442695, %v1484_v32  ;;  %v1486_v34 = vmul.f32 %v3246_v56, %v1455_v40 }
 0x9da   :  { %v3254_v52 = vpop.permute.xlu1 %1881  ;;  %2470 = vpow2.f32 %v1500_v27  ;;  %v1506_v21 = vmul.f32 1.442695, %v1485_v54  ;;  %v1487_v11 = vmul.f32 %v3241_v53, %v1455_v40  ;;  %v1463_v48 = vrot.slane %v3275_v43, %v2603_v17 }
 0x9db   :  { %2472 = vpow2.f32 %v1502_v51  ;;  %v1674_v39 = vrot.slane %v1655_v9, %v2603_v17  ;;  %v1663_v37 = vcombine.high %v1641_v14, %v1641_v14  ;;  %v1488_v47 = vmul.f32 %v3246_v56, %v1459_v55 }
 0x9dc   :  { %v3258_v31 = vpop.permute.xlu0 %1877  ;;  %v1467_v32 = vrot.slane %v1437_v45, %v2603_v17  ;;  %v1707_v57 = vmul.f32 %v1670_v25, %v3173_v61  ;;  %2474 = vpow2.f32 %v1504_v0  ;;  %v1508_v51 = vmul.f32 1.442695, %v1486_v34 }
 0x9dd   :  { %v1708_v54 = vmul.f32 %v1670_v25, %v3175_v2  ;;  %v1665_v40 = vcombine.high %v1655_v9, %v1655_v9  ;;  %v3300_v13 = vrot.slane %v3284_v62, %v2775_v28  ;;  %v1489_v14 = vmul.f32 %v3241_v53, %v1459_v55 }
 0x9de   :  { %v3261_v60 = vpop.permute.xlu1 %1889  ;;  %v1634_v18 = vcombine.high %v3284_v62, %v3284_v62  ;;  %2476 = vpow2.f32 %v1506_v21  ;;  %v1510_v45 = vmul.f32 1.442695, %v1487_v11  ;;  %v1709_v61 = vmul.f32 %v1674_v39, %v3177_v46 }
 0x9df   :  { %v1678_v0 = vrot.slane %v1663_v37, %v2603_v17  ;;  %v1512_v34 = vmul.f32 1.442695, %v1488_v47  ;;  %2478 = vpow2.f32 %v1508_v51  ;;  %v1490_v55 = vmul.f32 %v3246_v56, %v1463_v48 }
 0x9e0   :  { %v3267_v23 = vpop.permute.xlu0 %1885  ;;  %v1514_v21 = vmul.f32 1.442695, %v1489_v14  ;;  %2480 = vpow2.f32 %v1510_v45  ;;  %v1491_v47 = vmul.f32 %v3241_v53, %v1463_v48  ;;  %v1492_v48 = vmul.f32 %v3246_v56, %v1467_v32 }
 0x9e1   :  { %3563 = vst [vmem:[#allocation18_spill] sm:$0xff] %v3267_v23  ;;  %2482 = vpow2.f32 %v1512_v34  ;;  %v1516_v14 = vmul.f32 1.442695, %v1490_v55 }
 0x9e2   :  { %v3271_v5 = vpop.permute.xlu1 %1897  ;;  %v2467_v27 = vpop.eup %2466  ;;  %2484 = vpow2.f32 %v1514_v21 }
 0x9e3   :  { %3564 = vst [vmem:[#allocation16_spill] sm:$0xff] %v3271_v5  ;;  %v2469_v4 = vpop.eup %2468  ;;  %v1987_v9 = vmul.f32 0.0, %v2467_v27  ;;  %v1710_v5 = vmul.f32 %v1674_v39, %v3179_v50  ;;  %2486 = vpow2.f32 %v1516_v14 }
 0x9e4   :  { %v3279_v22 = vpop.permute.xlu0 %1893  ;;  %v1988_v62 = vmul.f32 0.0, %v2469_v4  ;;  %v2471_v11 = vpop.eup %2470 }
 0x9e5   :  { %3565 = vst [vmem:[#allocation19_spill] sm:$0xff] %v3279_v22  ;;  %v2473_v4 = vpop.eup %2472 }
 0x9e6   :  { %v3286_v30 = vpop.permute.xlu1 %1905 }
 0x9e7   :  { %3566 = vst [vmem:[#allocation5_spill] sm:$0xff] %v3286_v30 }
 0x9e8   :  { %v3292_v1 = vpop.permute.xlu0 %1901 }
 0x9e9   :  { %3567 = vst [vmem:[#allocation11_spill] sm:$0xff] %v3292_v1 }
 0x9ea   :  { %v1729_v36 = vpop.permute.xlu1 %1728 }
 0x9eb   :  { %v1811_v1 = vmul.f32 %v1729_v36, %v1670_v25 }
 0x9ec   :  { %v1733_v2 = vpop.permute.xlu0 %1732 }
 0x9ed   :  { %v1827_v30 = vsel %vm119_vm2, %v1707_v57, %v1811_v1  ;;  %v1812_v22 = vmul.f32 %v1733_v2, %v1670_v25  ;;  %v1711_v1 = vmul.f32 %v1678_v0, %v3181_v3  ;;  %v1682_v25 = vrot.slane %v1665_v40, %v2603_v17  ;;  %v2475_v40 = vpop.eup %2474 }
 0x9ee   :  { %v1740_v23 = vpop.permute.xlu1 %1739  ;;  %v3310_v36 = vadd.f32 %v1987_v9, %v1827_v30  ;;  %v1493_v3 = vmul.f32 %v3241_v53, %v1467_v32  ;;  %v1518_v9 = vmul.f32 1.442695, %v1491_v47  ;;  %v1712_v32 = vmul.f32 %v1678_v0, %v3183_v7 }
 0x9ef   :  { %v1828_v46 = vsel %vm119_vm2, %v1708_v54, %v1812_v22  ;;  %v1813_v37 = vmul.f32 %v1740_v23, %v1674_v39  ;;  %v1713_v21 = vmul.f32 %v1682_v25, %v3185_v42  ;;  %v1439_v42 = vcombine.high %v3275_v43, %v3275_v43 }
 0x9f0   :  { %v1744_v27 = vpop.permute.xlu0 %1743  ;;  %v3316_v57 = vadd.f32 %v1988_v62, %v1828_v46  ;;  %v2001_v50 = vmul.f32 %v2471_v11, %v3310_v36  ;;  %v2477_v11 = vpop.eup %2476  ;;  %2488 = vpow2.f32 %v1518_v9  ;;  %v1714_v14 = vmul.f32 %v1682_v25, %v3187_v19 }
 0x9f1   :  { %v1829_v30 = vsel %vm119_vm2, %v1709_v61, %v1813_v37  ;;  %v1814_v51 = vmul.f32 %v1744_v27, %v1674_v39  ;;  %v1686_v39 = vrot.slane %v3300_v13, %v2603_v17  ;;  %v3329_v61 = vrot.slane %v1634_v18, %v2775_v28  ;;  %v2479_v18 = vpop.eup %2478 }
 0x9f2   :  { %v1751_v22 = vpop.permute.xlu1 %1750  ;;  %v2002_v23 = vmul.f32 %v2473_v4, %v3316_v57  ;;  %v3321_v54 = vadd.f32 %v2001_v50, %v1829_v30  ;;  %v1522_v28 = vmul.f32 1.442695, %v1493_v3  ;;  %v1520_v30 = vmul.f32 1.442695, %v1492_v48 }
 0x9f3   :  { %v1830_v45 = vsel %vm119_vm2, %v1710_v5, %v1814_v51  ;;  %v1815_v2 = vmul.f32 %v1751_v22, %v1678_v0  ;;  %v1715_v3 = vmul.f32 %v1686_v39, %v3189_v35  ;;  %v1690_v9 = vrot.slane %v3329_v61, %v2603_v17 }
 0x9f4   :  { %v1755_v34 = vpop.permute.xlu0 %1754  ;;  %v3331_v55 = vadd.f32 %v2002_v23, %v1830_v45  ;;  %v2015_v62 = vmul.f32 %v2475_v40, %v3321_v54  ;;  %2490 = vpow2.f32 %v1522_v28  ;;  %v1664_v19 = vcombine.high %v3300_v13, %v3300_v13 }
 0x9f5   :  { %v1831_v46 = vsel %vm119_vm2, %v1711_v1, %v1815_v2  ;;  %v1816_v5 = vmul.f32 %v1755_v34, %v1678_v0  ;;  %v2481_v1 = vpop.eup %2480  ;;  %2492 = vpow2.f32 %v1520_v30  ;;  %v1717_v13 = vmul.f32 %v1690_v9, %v3193_v33 }
 0x9f6   :  { %v1762_v37 = vpop.permute.xlu1 %1761  ;;  %v2016_v47 = vmul.f32 %v2477_v11, %v3331_v55  ;;  %v3338_v27 = vadd.f32 %v2015_v62, %v1831_v46  ;;  %v2483_v2 = vpop.eup %2482  ;;  %v1694_v30 = vrot.slane %v1664_v19, %v2603_v17 }
 0x9f7   :  { %v1832_v50 = vsel %vm119_vm2, %v1712_v32, %v1816_v5  ;;  %v1817_v4 = vmul.f32 %v1762_v37, %v1682_v25  ;;  %v2485_v11 = vpop.eup %2484  ;;  %v1716_v32 = vmul.f32 %v1686_v39, %v3191_v16 }
 0x9f8   :  { %v1766_v51 = vpop.permute.xlu0 %1765  ;;  %v3341_v7 = vadd.f32 %v2016_v47, %v1832_v50  ;;  %v2029_v0 = vmul.f32 %v2479_v18, %v3338_v27  ;;  %v2487_v18 = vpop.eup %2486 }
 0x9f9   :  { %v1833_v22 = vsel %vm119_vm2, %v1713_v21, %v1817_v4  ;;  %v1818_v23 = vmul.f32 %v1766_v51, %v1682_v25  ;;  %v1471_v21 = vrot.slane %v1439_v42, %v2603_v17 }
 0x9fa   :  { %v1773_v40 = vpop.permute.xlu1 %1772  ;;  %v2030_v45 = vmul.f32 %v2481_v1, %v3341_v7  ;;  %v3350_v48 = vadd.f32 %v2029_v0, %v1833_v22  ;;  %v2489_v0 = vpop.eup %2488  ;;  %v1718_v1 = vmul.f32 %v1690_v9, %v3195_v59 }
 0x9fb   :  { %v1834_v34 = vsel %vm119_vm2, %v1714_v14, %v1818_v23  ;;  %v1819_v43 = vmul.f32 %v1773_v40, %v1686_v39  ;;  %v1495_v22 = vmul.f32 %v3241_v53, %v1471_v21  ;;  %v1494_v19 = vmul.f32 %v3246_v56, %v1471_v21 }
 0x9fc   :  { %v1777_v25 = vpop.permute.xlu0 %1776  ;;  %v3357_v62 = vadd.f32 %v2030_v45, %v1834_v34  ;;  %v2043_v35 = vmul.f32 %v2483_v2, %v3350_v48 }
 0x9fd   :  { %v1835_v46 = vsel %vm119_vm2, %v1715_v3, %v1819_v43  ;;  %v1820_v5 = vmul.f32 %v1777_v25, %v1686_v39  ;;  %v1720_v25 = vmul.f32 %v1694_v30, %v3200_v15 }
 0x9fe   :  { %v1784_v37 = vpop.permute.xlu1 %1783  ;;  %v2044_v47 = vmul.f32 %v2485_v11, %v3357_v62  ;;  %v3364_v28 = vadd.f32 %v2043_v35, %v1835_v46  ;;  %v2491_v2 = vpop.eup %2490  ;;  %v1526_v35 = vmul.f32 1.442695, %v1495_v22 }
 0x9ff   :  { %v1836_v50 = vsel %vm119_vm2, %v1716_v32, %v1820_v5  ;;  %v1821_v4 = vmul.f32 %v1784_v37, %v1690_v9  ;;  %v2493_v59 = vpop.eup %2492 }
 0xa00   :  { %v1788_v51 = vpop.permute.xlu0 %1787  ;;  %v3369_v16 = vadd.f32 %v2044_v47, %v1836_v50  ;;  %v2057_v39 = vmul.f32 %v2487_v18, %v3364_v28  ;;  %v1524_v18 = vmul.f32 1.442695, %v1494_v19  ;;  %2494 = vpow2.f32 %v1526_v35 }
 0xa01   :  { %v1837_v42 = vsel %vm119_vm2, %v1717_v13, %v1821_v4  ;;  %v1822_v14 = vmul.f32 %v1788_v51, %v1690_v9  ;;  %v1719_v9 = vmul.f32 %v1694_v30, %v3206_v10 }
 0xa02   :  { %v1799_v23 = vpop.permute.xlu1 %1798  ;;  %v2058_v33 = vmul.f32 %v2489_v0, %v3369_v16  ;;  %v3376_v3 = vadd.f32 %v2057_v39, %v1837_v42  ;;  %2496 = vpow2.f32 %v1524_v18 }
 0xa03   :  { %v1838_v40 = vsel %vm119_vm2, %v1718_v1, %v1822_v14  ;;  %v1824_v45 = vmul.f32 %v1799_v23, %v1694_v30 }
 0xa04   :  { %v1795_v34 = vpop.permute.xlu0 %1794  ;;  %v3379_v43 = vadd.f32 %v2058_v33, %v1838_v40  ;;  %v2071_v46 = vmul.f32 %v2493_v59, %v3376_v3 }
 0xa05   :  { %v1823_v53 = vmul.f32 %v1795_v34, %v1694_v30  ;;  %v1840_v5 = vsel %vm119_vm2, %v1720_v25, %v1824_v45  ;;  %v1666_v30 = vcombine.high %v3329_v61, %v3329_v61 }
 0xa06   :  { %v1914_v11 = vpop.permute.xlu1 %1913  ;;  %v2072_v32 = vmul.f32 %v2491_v2, %v3379_v43 }
 0xa07   :  { %v1839_v37 = vsel %vm119_vm2, %v1719_v9, %v1823_v53  ;;  %v1972_v47 = vsel %vm119_vm2, %v3208_v38, %v1914_v11 }
 0xa08   :  { %v1992_v56 = vmul.f32 %v3316_v57, %v1972_v47  ;;  %v1910_v21 = vpop.permute.xlu0 %1909  ;;  %v3391_v15 = vadd.f32 %v2072_v32, %v1840_v5  ;;  %v3393_v10 = vadd.f32 %v2071_v46, %v1839_v37 }
 0xa09   :  { %v1971_v13 = vsel %vm119_vm2, %v3214_v6, %v1910_v21 }
 0xa0a   :  { %v1991_v50 = vmul.f32 %v3310_v36, %v1971_v13  ;;  %v1922_v4 = vpop.permute.xlu1 %1921  ;;  %v1698_v36 = vrot.slane %v1666_v30, %v2603_v17  ;;  %v2495_v2 = vpop.eup %2494 }
 0xa0b   :  { %v1974_v38 = vsel %vm119_vm2, %v3216_v24, %v1922_v4 }
 0xa0c   :  { %v1993_v57 = vadd.f32 %v1992_v56, %v1991_v50  ;;  %v2006_v51 = vmul.f32 %v3331_v55, %v1974_v38  ;;  %v1918_v39 = vpop.permute.xlu0 %1917  ;;  %v2497_v35 = vpop.eup %2496 }
 0xa0d   :  { %v1973_v0 = vsel %vm119_vm2, %v3222_v29, %v1918_v39  ;;  %v3415_v29 = vsel %vm119_vm2, %v3168_v63, %v3098_v20  ;;  %v1721_v20 = vmul.f32 %v1698_v36, %v3232_v49  ;;  %v2085_v47 = vmul.f32 %v2497_v35, %v3393_v10 }
 0xa0e   :  { %v1994_v1 = vrot.slane %v1993_v57, 4  ;;  %v2005_v6 = vmul.f32 %v3321_v54, %v1973_v0  ;;  %v1930_v42 = vpop.permute.xlu1 %1929  ;;  %v2105_v9 = vsub.f32 0.0, %v3415_v29 }
 0xa0f   :  { %v1976_v61 = vsel %vm119_vm2, %v3225_v26, %v1930_v42  ;;  %v1722_v26 = vmul.f32 %v1698_v36, %v3230_v8 }
 0xa10   :  { %v1995_v14 = vadd.f32 %v1994_v1, %v1993_v57  ;;  %v2007_v22 = vadd.f32 %v2006_v51, %v2005_v6  ;;  %v2020_v24 = vmul.f32 %v3341_v7, %v1976_v61  ;;  %v1926_v23 = vpop.permute.xlu0 %1925  ;;  %v2106_v13 = vmul.f32 1.442695, %v2105_v9  ;;  %v3570_v9 = vld [vmem:[#allocation19_spill] sm:$0xff] }
 0xa11   :  { %v1975_v55 = vsel %vm119_vm2, %v3227_v58, %v1926_v23  ;;  %v2086_v58 = vmul.f32 %v2495_v2, %v3391_v15 }
 0xa12   :  { %v1996_v54 = vrot.slane %v1995_v14, 2  ;;  %v2008_v33 = vrot.slane %v2007_v22, 4  ;;  %v2019_v40 = vmul.f32 %v3338_v27, %v1975_v55  ;;  %v1810_v45 = vpop.permute.xlu1 %1809  ;;  %2498 = vpow2.f32 %v2106_v13 }
 0xa13   :  { %v1826_v34 = vmul.f32 %v1810_v45, %v1698_v36 }
 0xa14   :  { %v1997_v19 = vadd.f32 %v1996_v54, %v1995_v14  ;;  %v2009_v7 = vadd.f32 %v2008_v33, %v2007_v22  ;;  %v2021_v59 = vadd.f32 %v2020_v24, %v2019_v40  ;;  %v1806_v25 = vpop.permute.xlu0 %1805  ;;  %v3568_v40 = vld [vmem:[#allocation18_spill] sm:$0xff] }
 0xa15   :  { %v1842_v63 = vsel %vm119_vm2, %v1722_v26, %v1826_v34  ;;  %v1825_v53 = vmul.f32 %v1806_v25, %v1698_v36 }
 0xa16   :  { %v1998_v27 = vrot.slane %v1997_v19, 1  ;;  %v2010_v11 = vrot.slane %v2009_v7, 2  ;;  %v2022_v32 = vrot.slane %v2021_v59, 4  ;;  %v1938_v46 = vpop.permute.xlu1 %1937  ;;  %v2088_v8 = vadd.f32 %v2086_v58, %v1842_v63 }
 0xa17   :  { %v1841_v5 = vsel %vm119_vm2, %v1721_v20, %v1825_v53  ;;  %v1978_v37 = vsel %vm119_vm2, %v3236_v12, %v1938_v46 }
 0xa18   :  { %v2011_v56 = vadd.f32 %v2010_v11, %v2009_v7  ;;  %v2023_v21 = vadd.f32 %v2022_v32, %v2021_v59  ;;  %v2034_v49 = vmul.f32 %v3357_v62, %v1978_v37  ;;  %v1934_v18 = vpop.permute.xlu0 %1933  ;;  %v1999_v50 = vadd.f32 %v1998_v27, %v1997_v19  ;;  %v3569_v19 = vld [vmem:[#allocation16_spill] sm:$0xff]  ;;  %v3571_v32 = vld [vmem:[#allocation5_spill] sm:$0xff] }
 0xa19   :  { %v1977_v4 = vsel %vm119_vm2, %v3249_v41, %v1934_v18  ;;  %v2087_v30 = vadd.f32 %v2085_v47, %v1841_v5 }
 0xa1a   :  { %v2012_v38 = vrot.slane %v2011_v56, 1  ;;  %v2024_v57 = vrot.slane %v2023_v21, 2  ;;  %v2033_v51 = vmul.f32 %v3350_v48, %v1977_v4  ;;  %v1946_v39 = vpop.permute.xlu1 %1945  ;;  %v2000_v36 = vsel %vm907_vm7, %v1999_v50, 0.0 }
 0xa1b   :  { %v1980_v12 = vsel %vm119_vm2, %v3254_v52, %v1946_v39 }
 0xa1c   :  { %v2013_v0 = vadd.f32 %v2012_v38, %v2011_v56  ;;  %v2025_v1 = vadd.f32 %v2024_v57, %v2023_v21  ;;  %v2035_v6 = vadd.f32 %v2034_v49, %v2033_v51  ;;  %v2048_v62 = vmul.f32 %v3369_v16, %v1980_v12  ;;  %v1942_v42 = vpop.permute.xlu0 %1941  ;;  %v3572_v49 = vld [vmem:[#allocation11_spill] sm:$0xff] }
 0xa1d   :  { %v1979_v41 = vsel %vm119_vm2, %v3258_v31, %v1942_v42 }
 0xa1e   :  { %v2014_v48 = vsel %vm924_vm8, %v2013_v0, %v2000_v36  ;;  %v2026_v61 = vrot.slane %v2025_v1, 1  ;;  %v2036_v14 = vrot.slane %v2035_v6, 4  ;;  %v2047_v52 = vmul.f32 %v3364_v28, %v1979_v41  ;;  %v1954_v22 = vpop.permute.xlu1 %1953 }
 0xa1f   :  { %v1982_v24 = vsel %vm119_vm2, %v3261_v60, %v1954_v22 }
 0xa20   :  { %v2027_v16 = vadd.f32 %v2026_v61, %v2025_v1  ;;  %v2037_v23 = vadd.f32 %v2036_v14, %v2035_v6  ;;  %v2049_v55 = vadd.f32 %v2048_v62, %v2047_v52  ;;  %v2062_v54 = vmul.f32 %v3379_v43, %v1982_v24  ;;  %v1950_v33 = vpop.permute.xlu0 %1949  ;;  %v2509_v24 = vld [vmem:[%s3500_s1 + $0x8] sm:$0xff] }
 0xa21   :  { %v1981_v31 = vsel %vm119_vm2, %v3568_v40, %v1950_v33  ;;  %v3574_v40 = vld [vmem:[#allocation15_spill] sm:$0xff] }
 0xa22   :  { %v2028_v45 = vsel %vm941_vm9, %v2027_v16, %v2014_v48  ;;  %v2038_v2 = vrot.slane %v2037_v23, 2  ;;  %v2050_v26 = vrot.slane %v2049_v55, 4  ;;  %v2061_v28 = vmul.f32 %v3376_v3, %v1981_v31  ;;  %v1962_v34 = vpop.permute.xlu1 %1961  ;;  %v2499_v3 = vpop.eup %2498  ;;  %v3573_v16 = vld [vmem:[#allocation13_spill] sm:$0xff] }
 0xa23   :  { %v1984_v60 = vsel %vm119_vm2, %v3569_v19, %v1962_v34  ;;  %v2108_v38 = vadd.f32 1.0, %v2499_v3 }
 0xa24   :  { %v2039_v7 = vadd.f32 %v2038_v2, %v2037_v23  ;;  %v2051_v59 = vadd.f32 %v2050_v26, %v2049_v55  ;;  %v2063_v25 = vadd.f32 %v2062_v54, %v2061_v28  ;;  %v2076_v43 = vmul.f32 %v3391_v15, %v1984_v60  ;;  %v1958_v58 = vpop.permute.xlu0 %1957 }
 0xa25   :  { %v1983_v20 = vsel %vm119_vm2, %v3570_v9, %v1958_v58  ;;  %2500 = vrcp.f32 %v2108_v38  ;;  %v2102_v23 = vrot.slane %v2509_v24, %v3573_v16  ;;  %v3576_v9 = vld [vmem:[#allocation14_spill] sm:$0xff] }
 0xa26   :  { %v2040_v63 = vrot.slane %v2039_v7, 1  ;;  %v2052_v53 = vrot.slane %v2051_v59, 2  ;;  %v2064_v35 = vrot.slane %v2063_v25, 4  ;;  %v2075_v27 = vmul.f32 %v3393_v10, %v1983_v20  ;;  %v1970_v11 = vpop.permute.xlu1 %1969 }
 0xa27   :  { %v1986_v46 = vsel %vm119_vm2, %v3571_v32, %v1970_v11  ;;  %v2103_v31 = vmul.f32 %v2102_v23, %v3574_v40 }
 0xa28   :  { %v2041_v5 = vadd.f32 %v2040_v63, %v2039_v7  ;;  %v2053_v37 = vadd.f32 %v2052_v53, %v2051_v59  ;;  %v2065_v47 = vadd.f32 %v2064_v35, %v2063_v25  ;;  %v2077_v56 = vadd.f32 %v2076_v43, %v2075_v27  ;;  %v1966_v21 = vpop.permute.xlu0 %1965  ;;  %v3575_v7 = vld [vmem:[#allocation17_spill] sm:$0xff] }
 0xa29   :  { %v2090_v15 = vmul.f32 %v2088_v8, %v1986_v46  ;;  %v1985_v18 = vsel %vm119_vm2, %v3572_v49, %v1966_v21 }
 0xa2a   :  { %v2042_v13 = vsel %vm958_vm10, %v2041_v5, %v2028_v45  ;;  %v2054_v50 = vrot.slane %v2053_v37, 1  ;;  %v2066_v4 = vrot.slane %v2065_v47, 2  ;;  %v2078_v10 = vrot.slane %v2077_v56, 4  ;;  %v2286_v5 = vld [vmem:[%s3500_s1 + $0x10] sm:$0xff] }
 0xa2b   :  { %v2089_v57 = vmul.f32 %v2087_v30, %v1985_v18 }
 0xa2c   :  { %v2055_v51 = vadd.f32 %v2054_v50, %v2053_v37  ;;  %v2067_v39 = vadd.f32 %v2066_v4, %v2065_v47  ;;  %v2079_v12 = vadd.f32 %v2078_v10, %v2077_v56  ;;  %v2216_v37 = vrot.slane %v2286_v5, %v2603_v17 }
 0xa2d   :  { %v2091_v0 = vadd.f32 %v2090_v15, %v2089_v57 }
 0xa2e   :  { %v2056_v1 = vsel %vm975_vm11, %v2055_v51, %v2042_v13  ;;  %v2068_v6 = vrot.slane %v2067_v39, 1  ;;  %v2080_v8 = vrot.slane %v2079_v12, 2 }
 0xa2f   :  { %v2092_v62 = vrot.slane %v2091_v0, 4  ;;  %v2501_v54 = vpop.eup %2500 }
 0xa30   :  { %v2069_v42 = vadd.f32 %v2068_v6, %v2067_v39  ;;  %v2081_v36 = vadd.f32 %v2080_v8, %v2079_v12  ;;  %v2111_v2 = vmul.f32 %v2501_v54, %v3415_v29 }
 0xa31   :  { %v2093_v41 = vadd.f32 %v2092_v62, %v2091_v0 }
 0xa32   :  { %v2082_v48 = vrot.slane %v2081_v36, 1  ;;  %v2070_v61 = vsel %vm992_vm12, %v2069_v42, %v2056_v1 }
 0xa33   :  { %v2094_v14 = vrot.slane %v2093_v41, 2 }
 0xa34   :  { %v2083_v30 = vadd.f32 %v2082_v48, %v2081_v36 }
 0xa35   :  { %v2095_v52 = vadd.f32 %v2094_v14, %v2093_v41 }
 0xa36   :  { %v2084_v22 = vsel %vm1009_vm13, %v2083_v30, %v2070_v61 }
 0xa37   :  { %v2096_v55 = vrot.slane %v2095_v52, 1 }
 0xa39   :  { %v2097_v33 = vadd.f32 %v2096_v55, %v2095_v52 }
 0xa3b   :  { %v2098_v45 = vsel %vm1026_vm14, %v2097_v33, %v2084_v22 }
 0xa3c   :  { %v2104_v26 = vadd.f32 %v2103_v31, %v2098_v45 }
 0xa3e   :  { %v2112_v28 = vmul.f32 %v2111_v2, %v2104_v26 }
 0xa40   :  { %2114 = vrot.lane.b32.xlu0 %v2112_v28, %s2536_s7 }
 0xab2   :  { %v2115_v34 = vpop.permute.xlu0 %2114 }
 0xab3   :  { %v2117_v19 = vpack.c.bf16 %v2115_v34, %v2112_v28 }
 0xab5   :  { %2374 = vmatmul.mubr.msk.bf16.vlgmr.msra.gmra.mrb[8].mxu1 %vm119_vm2, %v2117_v19 }
 0xb88   :  { %v2188_v60 = vpop.f32.mrb[8].mxu1 }
 0xb89   :  { %v2189_v59 = vadd.f32 %v2188_v60, %v3575_v7  ;;  %v2375_v25 = vpop.f32.mrb[9].mxu1 }
 0xb8a   :  { %v2191_v43 = vpop.f32.mrb[10].mxu1 }
 0xb8b   :  { %v2197_v58 = vmul.f32 %v2189_v59, %v2189_v59  ;;  %v2192_v20 = vadd.f32 %v2191_v43, %v3576_v9  ;;  %v2376_v44 = vpop.f32.mrb[11].mxu1 }
 0xb8d   :  { %v2198_v63 = vmul.f32 %v2192_v20, %v2192_v20  ;;  %v2199_v29 = vsel %vm32_vm0, %v2197_v58, 0.0 }
 0xb8e   :  { %2200 = vadd.xlane.f32.xlu1 %v2199_v29 }
 0xb8f   :  { %v2202_v53 = vsel %vm32_vm0, %v2198_v63, 0.0 }
 0xb90   :  { %2203 = vadd.xlane.f32.xlu0 %v2202_v53 }
 0xc1b   :  { %v2201_v35 = vpop.xlane.xlu1 %2200 }
 0xc1c   :  { %v2205_v27 = vmul.f32 0.03125, %v2201_v35 }
 0xc1d   :  { %v2204_v11 = vpop.xlane.xlu0 %2203 }
 0xc1e   :  { %v2207_v3 = vadd.f32 1e-05, %v2205_v27  ;;  %v2206_v32 = vmul.f32 0.03125, %v2204_v11 }
 0xc20   :  { %2502 = vrsqrt.f32 %v2207_v3  ;;  %v2208_v46 = vadd.f32 1e-05, %v2206_v32 }
 0xc22   :  { %2504 = vrsqrt.f32 %v2208_v46 }
 0xc2a   :  { %v2503_v47 = vpop.eup %2502 }
 0xc2b   :  { %v2211_v56 = vmul.f32 %v2503_v47, %v2189_v59 }
 0xc2c   :  { %v2505_v21 = vpop.eup %2504 }
 0xc2d   :  { %v2212_v15 = vmul.f32 %v2505_v21, %v2192_v20  ;;  %v2217_v49 = vmul.f32 %v2216_v37, %v2211_v56 }
 0xc2f   :  { %v2218_v18 = vmul.f32 %v2216_v37, %v2212_v15  ;;  %2219 = vst.msk [vmem:[#allocation2] sm:$0xff] %vm32_vm0, %v2217_v49 }
 0xc31   :  { %2220 = vst.msk [vmem:[#allocation2 + $0x8] sm:$0xff] %vm32_vm0, %v2218_v18 }
 0xc32   :  { %2521 = shalt.err (!%p2518_p4)
}
 0xc33   :  { %s2522_s19 = scalar_lea.hbm %s3505_s6, 256 }
 0xc34   :  { %p2523_p5 = scmp.ne.s32.totalorder %s3505_s6, %s2522_s19  ;;  %p2526_p6 = scmp.lt.u32.totalorder %s2522_s19, %s3505_s6 }
 0xc36   :  { %p2528_p7 = pnand %p2526_p6, %p2523_p5 }
 0xc38   :  { %2531 = shalt.err (!%p2528_p7)
}
 0xc39   :  { %s2541_s23 = smov 128   ;;  %s2542_s24 = smov 8  }
 0xc3a   :  { %2232 = dma.vmem_to_hbm [thread:$0]  %s2227_s0, 256, %s3505_s6, [#allocation3], %s2541_s23, %s2541_s23, %s2542_s24  }
 0xc3b   :  { %2532 = dma.done.wait [#allocation3], 256  }
 0xc3c   :  { %2533 = vsyncadd [#allocation3], 4294967040 }
 0xc3d   :  { %2236 = vsyncpa [#allocation3], 1 }

</bundles_post_ra>
